<compile_context>
chip_gen: v5e
topology: v5e:2x2
jax: 0.10.0
libtpu: 0.0.40
codegen_flags: <defaults>
</compile_context>

<pallas_src>
import math
import functools

import jax
import jax.numpy as jnp
from jax.experimental import pallas as pl
from jax.experimental.pallas import tpu as pltpu  # noqa: F401

# ---- model hyper-params (small, consistent with the module's forward) ----
D_MODEL = 32
H_HEADS = 4
D_K = D_MODEL // H_HEADS
D_FF = 64
FF_PAD = 128          # D_FF zero-padded to a full 128-lane width
N_LAYERS = 2
VOCAB = 50
V_PAD = 128           # vocab zero-padded to a full 128-lane width
MAX_LEN = 16
EPS = 1e-5            # nn.LayerNorm default
NEG_INF = -1e9        # additive mask bias (avoids -inf -> NaN on masked rows)


# --------------------------- in-kernel helpers ---------------------------
def _layer_norm(x, gamma, beta):
    mu = jnp.mean(x, axis=-1, keepdims=True)
    var = jnp.mean((x - mu) ** 2, axis=-1, keepdims=True)
    return (x - mu) * jax.lax.rsqrt(var + EPS) * gamma + beta


def _mha(x_q, x_kv_b, wq_h, wk_h, wv_h, wo_h, bias):
    """Multi-head attention with heads on the leading (sublane) axis.

    x_q:    (N, D)       queries (one row per flattened (batch, position))
    x_kv_b: (H, M, D)    keys/values source, already broadcast over heads
    wq_h/wk_h/wv_h: (H, D, dk)   per-head projection weights (split at init)
    wo_h:   (H, dk, D)   per-head output-projection rows
    bias:   (N, M)       additive mask bias (0 allowed / -1e9 masked),
                         block-diagonal over batch
    """
    H, M, D = x_kv_b.shape
    N = x_q.shape[0]
    dk = wq_h.shape[-1]
    scale = 1.0 / math.sqrt(dk)

    xq_b = jnp.broadcast_to(x_q[None, :, :], (H, N, D))
    q = jnp.einsum('hnd,hdk->hnk', xq_b, wq_h, preferred_element_type=jnp.float32)
    k = jnp.einsum('hmd,hdk->hmk', x_kv_b, wk_h, preferred_element_type=jnp.float32)
    v = jnp.einsum('hmd,hdk->hmk', x_kv_b, wv_h, preferred_element_type=jnp.float32)

    s = jnp.einsum('hnk,hmk->hnm', q, k, preferred_element_type=jnp.float32) * scale
    s = s + bias[None, :, :]
    s = s - jnp.max(s, axis=-1, keepdims=True)
    e = jnp.exp(s)
    p = e * pl.reciprocal(jnp.sum(e, axis=-1, keepdims=True), approx=True)

    o = jnp.einsum('hnm,hmk->hnk', p, v, preferred_element_type=jnp.float32)
    # concat over heads followed by W_o  ==  sum_h head_h @ W_o[h*dk:(h+1)*dk]
    out = jnp.einsum('hnk,hkd->hnd', o, wo_h, preferred_element_type=jnp.float32)
    return jnp.sum(out, axis=0)


# --------------------------- fused decoder-stack kernel ---------------------------
def decoder_stack_kernel(x_ref, enc_ref, sbias_ref, cbias_ref,
                         wq1_ref, wk1_ref, wv1_ref, wo1_ref, g1_ref, b1_ref,
                         wq2_ref, wk2_ref, wv2_ref, wo2_ref, g2_ref, b2_ref,
                         wff1_ref, bff1_ref, wff2_ref, bff2_ref, g3_ref, b3_ref,
                         embt_ref, logits_ref, *, n_layers, h_heads):
    x = x_ref[...]            # (N, D)   N = B*T
    enc = enc_ref[...]        # (M, D)   M = B*S
    sbias = sbias_ref[...]    # (N, N)   causal + batch block-diagonal bias
    cbias = cbias_ref[...]    # (N, M)   memory mask + batch block-diagonal bias

    N, D = x.shape
    M = enc.shape[0]
    H = h_heads
    # hoisted across layers (encoder output is layer-invariant)
    enc_b = jnp.broadcast_to(enc[None, :, :], (H, M, D))

    for l in range(n_layers):                       # static unroll over layers
        # masked self-attention + residual + norm1
        x_b = jnp.broadcast_to(x[None, :, :], (H, N, D))
        sa = _mha(x, x_b, wq1_ref[l], wk1_ref[l], wv1_ref[l], wo1_ref[l], sbias)
        x = _layer_norm(x + sa, g1_ref[l], b1_ref[l])

        # cross-attention (K/V from encoder output) + residual + norm2
        ca = _mha(x, enc_b, wq2_ref[l], wk2_ref[l], wv2_ref[l], wo2_ref[l], cbias)
        x = _layer_norm(x + ca, g2_ref[l], b2_ref[l])

        # position-wise FFN (hidden padded to 128 lanes) + residual + norm3
        h = jnp.maximum(
            jnp.dot(x, wff1_ref[l], preferred_element_type=jnp.float32) + bff1_ref[l],
            0.0)
        f = jnp.dot(h, wff2_ref[l], preferred_element_type=jnp.float32) + bff2_ref[l]
        x = _layer_norm(x + f, g3_ref[l], b3_ref[l])

    # tied output projection: logits = x @ emb.T  (emb.T zero-padded to 128 lanes)
    logits_ref[...] = jnp.dot(x, embt_ref[...], preferred_element_type=jnp.float32)


# --------------------------- glue (plain JAX) ---------------------------
def positional_encoding(max_len, d_model):
    position = jnp.arange(max_len, dtype=jnp.float32)[:, None]
    div_term = jnp.exp(jnp.arange(0, d_model, 2, dtype=jnp.float32)
                       * (-math.log(10000.0) / d_model))
    pe = jnp.zeros((max_len, d_model), jnp.float32)
    pe = pe.at[:, 0::2].set(jnp.sin(position * div_term))
    pe = pe.at[:, 1::2].set(jnp.cos(position * div_term))
    return pe


def init_params(key):
    k_emb, k_layers = jax.random.split(key)
    emb = jax.random.normal(k_emb, (VOCAB, D_MODEL), jnp.float32) * 0.02
    layer_params = []
    s_d = 1.0 / math.sqrt(D_MODEL)
    s_f = 1.0 / math.sqrt(D_FF)
    for l in range(N_LAYERS):
        ks = jax.random.split(jax.random.fold_in(k_layers, l), 10)
        p = {
            "wq1": jax.random.normal(ks[0], (D_MODEL, D_MODEL)) * s_d,
            "wk1": jax.random.normal(ks[1], (D_MODEL, D_MODEL)) * s_d,
            "wv1": jax.random.normal(ks[2], (D_MODEL, D_MODEL)) * s_d,
            "wo1": jax.random.normal(ks[3], (D_MODEL, D_MODEL)) * s_d,
            "g1": jnp.ones((1, D_MODEL)), "b1": jnp.zeros((1, D_MODEL)),
            "wq2": jax.random.normal(ks[4], (D_MODEL, D_MODEL)) * s_d,
            "wk2": jax.random.normal(ks[5], (D_MODEL, D_MODEL)) * s_d,
            "wv2": jax.random.normal(ks[6], (D_MODEL, D_MODEL)) * s_d,
            "wo2": jax.random.normal(ks[7], (D_MODEL, D_MODEL)) * s_d,
            "g2": jnp.ones((1, D_MODEL)), "b2": jnp.zeros((1, D_MODEL)),
            "wff1": jax.random.normal(ks[8], (D_MODEL, D_FF)) * s_d,
            "bff1": jnp.zeros((1, D_FF)),
            "wff2": jax.random.normal(ks[9], (D_FF, D_MODEL)) * s_f,
            "bff2": jnp.zeros((1, D_MODEL)),
            "g3": jnp.ones((1, D_MODEL)), "b3": jnp.zeros((1, D_MODEL)),
        }
        layer_params.append(p)
    return emb, layer_params


def prepare_params(emb, layer_params):
    """Reorganize weights once at init into kernel-ready, lane-dense tensors."""
    def split_in(w):    # (D, D) -> (H, D, dk): per-head input-projection slices
        return w.reshape(D_MODEL, H_HEADS, D_K).transpose(1, 0, 2)

    def split_out(w):   # (D, D) -> (H, dk, D): per-head rows of W_o
        return w.reshape(H_HEADS, D_K, D_MODEL)

    per_layer = []
    for p in layer_params:
        wff1 = jnp.zeros((D_MODEL, FF_PAD), jnp.float32).at[:, :D_FF].set(p["wff1"])
        bff1 = jnp.zeros((1, FF_PAD), jnp.float32).at[:, :D_FF].set(p["bff1"])
        wff2 = jnp.zeros((FF_PAD, D_MODEL), jnp.float32).at[:D_FF, :].set(p["wff2"])
        per_layer.append([
            split_in(p["wq1"]), split_in(p["wk1"]), split_in(p["wv1"]),
            split_out(p["wo1"]), p["g1"], p["b1"],
            split_in(p["wq2"]), split_in(p["wk2"]), split_in(p["wv2"]),
            split_out(p["wo2"]), p["g2"], p["b2"],
            wff1, bff1, wff2, p["bff2"], p["g3"], p["b3"],
        ])
    n_w = len(per_layer[0])
    stacked = [jnp.stack([per_layer[l][i] for l in range(len(per_layer))])
               for i in range(n_w)]
    # tied output projection weight, transposed once and lane-padded to 128
    embt_pad = jnp.zeros((D_MODEL, V_PAD), jnp.float32).at[:, :VOCAB].set(emb.T)
    return stacked, embt_pad


def decoder_forward(tgt, encoder_output, tgt_mask, memory_mask,
                    emb, stacked, embt_pad, pe):
    B, T = tgt.shape
    S = encoder_output.shape[1]

    # TODO(synk): `shared_embedding`'s definition isn't provided; a plain table
    # lookup is used (no sqrt(d_model) scaling, no dropout), matching the
    # weight tying exactly.
    x = emb[tgt] + pe[:T, :][None, :, :]           # (B, T, D)
    x2 = x.reshape(B * T, D_MODEL)
    enc2 = encoder_output.reshape(B * S, D_MODEL)

    # Additive attention biases, block-diagonal over the flattened batch.
    causal = tgt_mask.reshape(T, T)                               # (T, T) 0/1
    allowed_self = jnp.kron(jnp.eye(B, dtype=jnp.float32), causal)  # (BT, BT)
    sbias = jnp.where(allowed_self > 0, 0.0, NEG_INF).astype(jnp.float32)

    mm_flat = memory_mask[:, 0, :].reshape(B * S)                 # (BS,)
    bq = jnp.repeat(jnp.arange(B), T)
    bk = jnp.repeat(jnp.arange(B), S)
    cross_allowed = jnp.logical_and(bq[:, None] == bk[None, :],
                                    mm_flat[None, :] > 0)
    cbias = jnp.where(cross_allowed, 0.0, NEG_INF).astype(jnp.float32)

    # One fused kernel: both decoder layers + tied output projection.
    logits_pad = pl.pallas_call(
        functools.partial(decoder_stack_kernel,
                          n_layers=N_LAYERS, h_heads=H_HEADS),
        out_shape=jax.ShapeDtypeStruct((B * T, V_PAD), jnp.float32),
    )(x2, enc2, sbias, cbias, *stacked, embt_pad)

    return logits_pad.reshape(B, T, V_PAD)[:, :, :VOCAB]


# --------------------------------- main ---------------------------------
if __name__ == "__main__":
    key = jax.random.PRNGKey(0)
    B, T, S = 2, 8, 8
    k_params, k_tgt, k_enc = jax.random.split(key, 3)

    emb, layer_params = init_params(k_params)
    stacked, embt_pad = prepare_params(emb, layer_params)
    pe = positional_encoding(MAX_LEN, D_MODEL)

    tgt = jax.random.randint(k_tgt, (B, T), 0, VOCAB)                  # (B, T)
    encoder_output = jax.random.normal(k_enc, (B, S, D_MODEL), jnp.float32)

    # tgt_mask: causal (1, tgt_len, tgt_len); memory_mask: (B, 1, src_len)
    tgt_mask = jnp.tril(jnp.ones((T, T), jnp.float32))[None, :, :]
    memory_mask = jnp.ones((B, 1, S), jnp.float32).at[1, 0, S - 2:].set(0.0)

    fwd = jax.jit(decoder_forward)
    logits = fwd(tgt, encoder_output, tgt_mask, memory_mask,
                 emb, stacked, embt_pad, pe)
    jax.block_until_ready(logits)

    assert logits.shape == (B, T, VOCAB), logits.shape
    assert bool(jnp.all(jnp.isfinite(logits)))
    print("KERNEL_OK")
</pallas_src>

<mosaic_0001>
module attributes {stable_mosaic.version = 11 : i64} {
  func.func @decoder_stack_kernel(%arg0: memref<16x32xf32, #tpu.memory_space<vmem>>, %arg1: memref<16x32xf32, #tpu.memory_space<vmem>>, %arg2: memref<16x16xf32, #tpu.memory_space<vmem>>, %arg3: memref<16x16xf32, #tpu.memory_space<vmem>>, %arg4: memref<2x4x32x8xf32, #tpu.memory_space<vmem>>, %arg5: memref<2x4x32x8xf32, #tpu.memory_space<vmem>>, %arg6: memref<2x4x32x8xf32, #tpu.memory_space<vmem>>, %arg7: memref<2x4x8x32xf32, #tpu.memory_space<vmem>>, %arg8: memref<2x1x32xf32, #tpu.memory_space<vmem>>, %arg9: memref<2x1x32xf32, #tpu.memory_space<vmem>>, %arg10: memref<2x4x32x8xf32, #tpu.memory_space<vmem>>, %arg11: memref<2x4x32x8xf32, #tpu.memory_space<vmem>>, %arg12: memref<2x4x32x8xf32, #tpu.memory_space<vmem>>, %arg13: memref<2x4x8x32xf32, #tpu.memory_space<vmem>>, %arg14: memref<2x1x32xf32, #tpu.memory_space<vmem>>, %arg15: memref<2x1x32xf32, #tpu.memory_space<vmem>>, %arg16: memref<2x32x128xf32, #tpu.memory_space<vmem>>, %arg17: memref<2x1x128xf32, #tpu.memory_space<vmem>>, %arg18: memref<2x128x32xf32, #tpu.memory_space<vmem>>, %arg19: memref<2x1x32xf32, #tpu.memory_space<vmem>>, %arg20: memref<2x1x32xf32, #tpu.memory_space<vmem>>, %arg21: memref<2x1x32xf32, #tpu.memory_space<vmem>>, %arg22: memref<32x128xf32, #tpu.memory_space<vmem>>, %arg23: memref<16x128xf32, #tpu.memory_space<vmem>>) attributes {dimension_semantics = [], scalar_prefetch = 0 : i64, scratch_operands = 0 : i64, tpu.core_type = #tpu.core_type<tc>} {
    %c0 = arith.constant 0 : index
    %c0_0 = arith.constant 0 : index
    %0 = vector.load %arg0[%c0, %c0_0] : memref<16x32xf32, #tpu.memory_space<vmem>>, vector<16x32xf32>
    %c0_1 = arith.constant 0 : index
    %c0_2 = arith.constant 0 : index
    %1 = vector.load %arg1[%c0_1, %c0_2] : memref<16x32xf32, #tpu.memory_space<vmem>>, vector<16x32xf32>
    %c0_3 = arith.constant 0 : index
    %c0_4 = arith.constant 0 : index
    %2 = vector.load %arg2[%c0_3, %c0_4] : memref<16x16xf32, #tpu.memory_space<vmem>>, vector<16x16xf32>
    %c0_5 = arith.constant 0 : index
    %c0_6 = arith.constant 0 : index
    %3 = vector.load %arg3[%c0_5, %c0_6] : memref<16x16xf32, #tpu.memory_space<vmem>>, vector<16x16xf32>
    %4 = vector.shape_cast %1 : vector<16x32xf32> to vector<1x16x32xf32>
    %5 = vector.shape_cast %4 : vector<1x16x32xf32> to vector<1x16x32xf32>
    %6 = vector.broadcast %5 : vector<1x16x32xf32> to vector<4x16x32xf32>
    %7 = vector.shape_cast %0 : vector<16x32xf32> to vector<1x16x32xf32>
    %8 = vector.shape_cast %7 : vector<1x16x32xf32> to vector<1x16x32xf32>
    %9 = vector.broadcast %8 : vector<1x16x32xf32> to vector<4x16x32xf32>
    %c0_7 = arith.constant 0 : index
    %c0_8 = arith.constant 0 : index
    %c0_9 = arith.constant 0 : index
    %c0_10 = arith.constant 0 : index
    %10 = vector.load %arg4[%c0_7, %c0_8, %c0_9, %c0_10] : memref<2x4x32x8xf32, #tpu.memory_space<vmem>>, vector<1x4x32x8xf32>
    %11 = vector.shape_cast %10 : vector<1x4x32x8xf32> to vector<4x32x8xf32>
    %c0_11 = arith.constant 0 : index
    %c0_12 = arith.constant 0 : index
    %c0_13 = arith.constant 0 : index
    %c0_14 = arith.constant 0 : index
    %12 = vector.load %arg5[%c0_11, %c0_12, %c0_13, %c0_14] : memref<2x4x32x8xf32, #tpu.memory_space<vmem>>, vector<1x4x32x8xf32>
    %13 = vector.shape_cast %12 : vector<1x4x32x8xf32> to vector<4x32x8xf32>
    %c0_15 = arith.constant 0 : index
    %c0_16 = arith.constant 0 : index
    %c0_17 = arith.constant 0 : index
    %c0_18 = arith.constant 0 : index
    %14 = vector.load %arg6[%c0_15, %c0_16, %c0_17, %c0_18] : memref<2x4x32x8xf32, #tpu.memory_space<vmem>>, vector<1x4x32x8xf32>
    %15 = vector.shape_cast %14 : vector<1x4x32x8xf32> to vector<4x32x8xf32>
    %c0_19 = arith.constant 0 : index
    %c0_20 = arith.constant 0 : index
    %c0_21 = arith.constant 0 : index
    %c0_22 = arith.constant 0 : index
    %16 = vector.load %arg7[%c0_19, %c0_20, %c0_21, %c0_22] : memref<2x4x8x32xf32, #tpu.memory_space<vmem>>, vector<1x4x8x32xf32>
    %17 = vector.shape_cast %16 : vector<1x4x8x32xf32> to vector<4x8x32xf32>
    %18 = vector.shape_cast %0 : vector<16x32xf32> to vector<1x16x32xf32>
    %19 = vector.shape_cast %18 : vector<1x16x32xf32> to vector<1x16x32xf32>
    %20 = vector.broadcast %19 : vector<1x16x32xf32> to vector<4x16x32xf32>
    "tpu.trace_start"() <{level = 10 : i32, message = "hnd,hdk->hnk"}> : () -> ()
    %cst = arith.constant dense<0.000000e+00> : vector<4x16x8xf32>
    %21 = tpu.matmul %20, %11, %cst {dimension_numbers = #tpu.dot_dimension_numbers<[2], [1], [1], [2], [0, 0, 0, 1, 1, 2], [0], [0]>} : vector<4x16x32xf32>, vector<4x32x8xf32>, vector<4x16x8xf32> -> vector<4x16x8xf32>
    "tpu.trace_stop"() : () -> ()
    "tpu.trace_start"() <{level = 10 : i32, message = "hmd,hdk->hmk"}> : () -> ()
    %cst_23 = arith.constant dense<0.000000e+00> : vector<4x16x8xf32>
    %22 = tpu.matmul %9, %13, %cst_23 {dimension_numbers = #tpu.dot_dimension_numbers<[2], [1], [1], [2], [0, 0, 0, 1, 1, 2], [0], [0]>} : vector<4x16x32xf32>, vector<4x32x8xf32>, vector<4x16x8xf32> -> vector<4x16x8xf32>
    %cst_24 = arith.constant dense<0.000000e+00> : vector<4x16x8xf32>
    %23 = tpu.matmul %9, %15, %cst_24 {dimension_numbers = #tpu.dot_dimension_numbers<[2], [1], [1], [2], [0, 0, 0, 1, 1, 2], [0], [0]>} : vector<4x16x32xf32>, vector<4x32x8xf32>, vector<4x16x8xf32> -> vector<4x16x8xf32>
    "tpu.trace_stop"() : () -> ()
    "tpu.trace_start"() <{level = 10 : i32, message = "hnk,hmk->hnm"}> : () -> ()
    %cst_25 = arith.constant dense<0.000000e+00> : vector<4x16x16xf32>
    %24 = tpu.matmul %21, %22, %cst_25 {dimension_numbers = #tpu.dot_dimension_numbers<[2], [2], [1], [1], [0, 0, 0, 1, 1, 1], [0], [0]>} : vector<4x16x8xf32>, vector<4x16x8xf32>, vector<4x16x16xf32> -> vector<4x16x16xf32>
    "tpu.trace_stop"() : () -> ()
    %cst_26 = arith.constant 0.353553385 : f32
    %25 = vector.broadcast %cst_26 : f32 to vector<4x16x16xf32>
    %26 = arith.mulf %24, %25 : vector<4x16x16xf32>
    %27 = vector.shape_cast %2 : vector<16x16xf32> to vector<1x16x16xf32>
    %28 = vector.broadcast %27 : vector<1x16x16xf32> to vector<4x16x16xf32>
    %29 = arith.addf %26, %28 : vector<4x16x16xf32>
    %cst_27 = arith.constant dense<0xFF800000> : vector<4x16xf32>
    %30 = vector.multi_reduction <maximumf>, %29, %cst_27 [2] : vector<4x16x16xf32> to vector<4x16xf32>
    %31 = vector.shape_cast %30 : vector<4x16xf32> to vector<4x16x1xf32>
    %32 = vector.broadcast %31 : vector<4x16x1xf32> to vector<4x16x16xf32>
    %33 = arith.subf %29, %32 : vector<4x16x16xf32>
    %34 = math.exp %33 : vector<4x16x16xf32>
    %cst_28 = arith.constant dense<0.000000e+00> : vector<4x16xf32>
    %35 = vector.multi_reduction <add>, %34, %cst_28 [2] : vector<4x16x16xf32> to vector<4x16xf32>
    %36 = vector.shape_cast %35 : vector<4x16xf32> to vector<4x16x1xf32>
    %37 = tpu.reciprocal %36 {approx = true} : vector<4x16x1xf32> -> vector<4x16x1xf32>
    %38 = vector.broadcast %37 : vector<4x16x1xf32> to vector<4x16x16xf32>
    %39 = arith.mulf %34, %38 : vector<4x16x16xf32>
    "tpu.trace_start"() <{level = 10 : i32, message = "hnm,hmk->hnk"}> : () -> ()
    %cst_29 = arith.constant dense<0.000000e+00> : vector<4x16x8xf32>
    %40 = tpu.matmul %39, %23, %cst_29 {dimension_numbers = #tpu.dot_dimension_numbers<[2], [1], [1], [2], [0, 0, 0, 1, 1, 2], [0], [0]>} : vector<4x16x16xf32>, vector<4x16x8xf32>, vector<4x16x8xf32> -> vector<4x16x8xf32>
    "tpu.trace_stop"() : () -> ()
    "tpu.trace_start"() <{level = 10 : i32, message = "hnk,hkd->hnd"}> : () -> ()
    %cst_30 = arith.constant dense<0.000000e+00> : vector<4x16x32xf32>
    %41 = tpu.matmul %40, %17, %cst_30 {dimension_numbers = #tpu.dot_dimension_numbers<[2], [1], [1], [2], [0, 0, 0, 1, 1, 2], [0], [0]>} : vector<4x16x8xf32>, vector<4x8x32xf32>, vector<4x16x32xf32> -> vector<4x16x32xf32>
    "tpu.trace_stop"() : () -> ()
    %cst_31 = arith.constant dense<0.000000e+00> : vector<16x32xf32>
    %42 = vector.multi_reduction <add>, %41, %cst_31 [0] : vector<4x16x32xf32> to vector<16x32xf32>
    %43 = arith.addf %0, %42 : vector<16x32xf32>
    %c0_32 = arith.constant 0 : index
    %c0_33 = arith.constant 0 : index
    %c0_34 = arith.constant 0 : index
    %44 = vector.load %arg8[%c0_32, %c0_33, %c0_34] : memref<2x1x32xf32, #tpu.memory_space<vmem>>, vector<1x1x32xf32>
    %45 = vector.shape_cast %44 : vector<1x1x32xf32> to vector<1x32xf32>
    %c0_35 = arith.constant 0 : index
    %c0_36 = arith.constant 0 : index
    %c0_37 = arith.constant 0 : index
    %46 = vector.load %arg9[%c0_35, %c0_36, %c0_37] : memref<2x1x32xf32, #tpu.memory_space<vmem>>, vector<1x1x32xf32>
    %47 = vector.shape_cast %46 : vector<1x1x32xf32> to vector<1x32xf32>
    %cst_38 = arith.constant dense<0.000000e+00> : vector<16xf32>
    %48 = vector.multi_reduction <add>, %43, %cst_38 [1] : vector<16x32xf32> to vector<16xf32>
    %49 = vector.shape_cast %48 : vector<16xf32> to vector<16x1xf32>
    %cst_39 = arith.constant 3.200000e+01 : f32
    %50 = vector.broadcast %cst_39 : f32 to vector<16x1xf32>
    %51 = arith.divf %49, %50 : vector<16x1xf32>
    %52 = vector.broadcast %51 : vector<16x1xf32> to vector<16x32xf32>
    %53 = arith.subf %43, %52 : vector<16x32xf32>
    %54 = arith.mulf %53, %53 : vector<16x32xf32>
    %cst_40 = arith.constant dense<0.000000e+00> : vector<16xf32>
    %55 = vector.multi_reduction <add>, %54, %cst_40 [1] : vector<16x32xf32> to vector<16xf32>
    %56 = vector.shape_cast %55 : vector<16xf32> to vector<16x1xf32>
    %cst_41 = arith.constant 3.200000e+01 : f32
    %57 = vector.broadcast %cst_41 : f32 to vector<16x1xf32>
    %58 = arith.divf %56, %57 : vector<16x1xf32>
    %59 = vector.broadcast %51 : vector<16x1xf32> to vector<16x32xf32>
    %60 = arith.subf %43, %59 : vector<16x32xf32>
    %cst_42 = arith.constant 9.99999974E-6 : f32
    %61 = vector.broadcast %cst_42 : f32 to vector<16x1xf32>
    %62 = arith.addf %58, %61 : vector<16x1xf32>
    %63 = math.rsqrt %62 : vector<16x1xf32>
    %64 = vector.broadcast %63 : vector<16x1xf32> to vector<16x32xf32>
    %65 = arith.mulf %60, %64 : vector<16x32xf32>
    %66 = vector.broadcast %45 : vector<1x32xf32> to vector<16x32xf32>
    %67 = arith.mulf %65, %66 : vector<16x32xf32>
    %68 = vector.broadcast %47 : vector<1x32xf32> to vector<16x32xf32>
    %69 = arith.addf %67, %68 : vector<16x32xf32>
    %c0_43 = arith.constant 0 : index
    %c0_44 = arith.constant 0 : index
    %c0_45 = arith.constant 0 : index
    %c0_46 = arith.constant 0 : index
    %70 = vector.load %arg10[%c0_43, %c0_44, %c0_45, %c0_46] : memref<2x4x32x8xf32, #tpu.memory_space<vmem>>, vector<1x4x32x8xf32>
    %71 = vector.shape_cast %70 : vector<1x4x32x8xf32> to vector<4x32x8xf32>
    %c0_47 = arith.constant 0 : index
    %c0_48 = arith.constant 0 : index
    %c0_49 = arith.constant 0 : index
    %c0_50 = arith.constant 0 : index
    %72 = vector.load %arg11[%c0_47, %c0_48, %c0_49, %c0_50] : memref<2x4x32x8xf32, #tpu.memory_space<vmem>>, vector<1x4x32x8xf32>
    %73 = vector.shape_cast %72 : vector<1x4x32x8xf32> to vector<4x32x8xf32>
    %c0_51 = arith.constant 0 : index
    %c0_52 = arith.constant 0 : index
    %c0_53 = arith.constant 0 : index
    %c0_54 = arith.constant 0 : index
    %74 = vector.load %arg12[%c0_51, %c0_52, %c0_53, %c0_54] : memref<2x4x32x8xf32, #tpu.memory_space<vmem>>, vector<1x4x32x8xf32>
    %75 = vector.shape_cast %74 : vector<1x4x32x8xf32> to vector<4x32x8xf32>
    %c0_55 = arith.constant 0 : index
    %c0_56 = arith.constant 0 : index
    %c0_57 = arith.constant 0 : index
    %c0_58 = arith.constant 0 : index
    %76 = vector.load %arg13[%c0_55, %c0_56, %c0_57, %c0_58] : memref<2x4x8x32xf32, #tpu.memory_space<vmem>>, vector<1x4x8x32xf32>
    %77 = vector.shape_cast %76 : vector<1x4x8x32xf32> to vector<4x8x32xf32>
    %78 = vector.shape_cast %69 : vector<16x32xf32> to vector<1x16x32xf32>
    %79 = vector.shape_cast %78 : vector<1x16x32xf32> to vector<1x16x32xf32>
    %80 = vector.broadcast %79 : vector<1x16x32xf32> to vector<4x16x32xf32>
    "tpu.trace_start"() <{level = 10 : i32, message = "hnd,hdk->hnk"}> : () -> ()
    %cst_59 = arith.constant dense<0.000000e+00> : vector<4x16x8xf32>
    %81 = tpu.matmul %80, %71, %cst_59 {dimension_numbers = #tpu.dot_dimension_numbers<[2], [1], [1], [2], [0, 0, 0, 1, 1, 2], [0], [0]>} : vector<4x16x32xf32>, vector<4x32x8xf32>, vector<4x16x8xf32> -> vector<4x16x8xf32>
    "tpu.trace_stop"() : () -> ()
    "tpu.trace_start"() <{level = 10 : i32, message = "hmd,hdk->hmk"}> : () -> ()
    %cst_60 = arith.constant dense<0.000000e+00> : vector<4x16x8xf32>
    %82 = tpu.matmul %6, %73, %cst_60 {dimension_numbers = #tpu.dot_dimension_numbers<[2], [1], [1], [2], [0, 0, 0, 1, 1, 2], [0], [0]>} : vector<4x16x32xf32>, vector<4x32x8xf32>, vector<4x16x8xf32> -> vector<4x16x8xf32>
    %cst_61 = arith.constant dense<0.000000e+00> : vector<4x16x8xf32>
    %83 = tpu.matmul %6, %75, %cst_61 {dimension_numbers = #tpu.dot_dimension_numbers<[2], [1], [1], [2], [0, 0, 0, 1, 1, 2], [0], [0]>} : vector<4x16x32xf32>, vector<4x32x8xf32>, vector<4x16x8xf32> -> vector<4x16x8xf32>
    "tpu.trace_stop"() : () -> ()
    "tpu.trace_start"() <{level = 10 : i32, message = "hnk,hmk->hnm"}> : () -> ()
    %cst_62 = arith.constant dense<0.000000e+00> : vector<4x16x16xf32>
    %84 = tpu.matmul %81, %82, %cst_62 {dimension_numbers = #tpu.dot_dimension_numbers<[2], [2], [1], [1], [0, 0, 0, 1, 1, 1], [0], [0]>} : vector<4x16x8xf32>, vector<4x16x8xf32>, vector<4x16x16xf32> -> vector<4x16x16xf32>
    "tpu.trace_stop"() : () -> ()
    %cst_63 = arith.constant 0.353553385 : f32
    %85 = vector.broadcast %cst_63 : f32 to vector<4x16x16xf32>
    %86 = arith.mulf %84, %85 : vector<4x16x16xf32>
    %87 = vector.shape_cast %3 : vector<16x16xf32> to vector<1x16x16xf32>
    %88 = vector.broadcast %87 : vector<1x16x16xf32> to vector<4x16x16xf32>
    %89 = arith.addf %86, %88 : vector<4x16x16xf32>
    %cst_64 = arith.constant dense<0xFF800000> : vector<4x16xf32>
    %90 = vector.multi_reduction <maximumf>, %89, %cst_64 [2] : vector<4x16x16xf32> to vector<4x16xf32>
    %91 = vector.shape_cast %90 : vector<4x16xf32> to vector<4x16x1xf32>
    %92 = vector.broadcast %91 : vector<4x16x1xf32> to vector<4x16x16xf32>
    %93 = arith.subf %89, %92 : vector<4x16x16xf32>
    %94 = math.exp %93 : vector<4x16x16xf32>
    %cst_65 = arith.constant dense<0.000000e+00> : vector<4x16xf32>
    %95 = vector.multi_reduction <add>, %94, %cst_65 [2] : vector<4x16x16xf32> to vector<4x16xf32>
    %96 = vector.shape_cast %95 : vector<4x16xf32> to vector<4x16x1xf32>
    %97 = tpu.reciprocal %96 {approx = true} : vector<4x16x1xf32> -> vector<4x16x1xf32>
    %98 = vector.broadcast %97 : vector<4x16x1xf32> to vector<4x16x16xf32>
    %99 = arith.mulf %94, %98 : vector<4x16x16xf32>
    "tpu.trace_start"() <{level = 10 : i32, message = "hnm,hmk->hnk"}> : () -> ()
    %cst_66 = arith.constant dense<0.000000e+00> : vector<4x16x8xf32>
    %100 = tpu.matmul %99, %83, %cst_66 {dimension_numbers = #tpu.dot_dimension_numbers<[2], [1], [1], [2], [0, 0, 0, 1, 1, 2], [0], [0]>} : vector<4x16x16xf32>, vector<4x16x8xf32>, vector<4x16x8xf32> -> vector<4x16x8xf32>
    "tpu.trace_stop"() : () -> ()
    "tpu.trace_start"() <{level = 10 : i32, message = "hnk,hkd->hnd"}> : () -> ()
    %cst_67 = arith.constant dense<0.000000e+00> : vector<4x16x32xf32>
    %101 = tpu.matmul %100, %77, %cst_67 {dimension_numbers = #tpu.dot_dimension_numbers<[2], [1], [1], [2], [0, 0, 0, 1, 1, 2], [0], [0]>} : vector<4x16x8xf32>, vector<4x8x32xf32>, vector<4x16x32xf32> -> vector<4x16x32xf32>
    "tpu.trace_stop"() : () -> ()
    %cst_68 = arith.constant dense<0.000000e+00> : vector<16x32xf32>
    %102 = vector.multi_reduction <add>, %101, %cst_68 [0] : vector<4x16x32xf32> to vector<16x32xf32>
    %103 = arith.addf %69, %102 : vector<16x32xf32>
    %c0_69 = arith.constant 0 : index
    %c0_70 = arith.constant 0 : index
    %c0_71 = arith.constant 0 : index
    %104 = vector.load %arg14[%c0_69, %c0_70, %c0_71] : memref<2x1x32xf32, #tpu.memory_space<vmem>>, vector<1x1x32xf32>
    %105 = vector.shape_cast %104 : vector<1x1x32xf32> to vector<1x32xf32>
    %c0_72 = arith.constant 0 : index
    %c0_73 = arith.constant 0 : index
    %c0_74 = arith.constant 0 : index
    %106 = vector.load %arg15[%c0_72, %c0_73, %c0_74] : memref<2x1x32xf32, #tpu.memory_space<vmem>>, vector<1x1x32xf32>
    %107 = vector.shape_cast %106 : vector<1x1x32xf32> to vector<1x32xf32>
    %cst_75 = arith.constant dense<0.000000e+00> : vector<16xf32>
    %108 = vector.multi_reduction <add>, %103, %cst_75 [1] : vector<16x32xf32> to vector<16xf32>
    %109 = vector.shape_cast %108 : vector<16xf32> to vector<16x1xf32>
    %cst_76 = arith.constant 3.200000e+01 : f32
    %110 = vector.broadcast %cst_76 : f32 to vector<16x1xf32>
    %111 = arith.divf %109, %110 : vector<16x1xf32>
    %112 = vector.broadcast %111 : vector<16x1xf32> to vector<16x32xf32>
    %113 = arith.subf %103, %112 : vector<16x32xf32>
    %114 = arith.mulf %113, %113 : vector<16x32xf32>
    %cst_77 = arith.constant dense<0.000000e+00> : vector<16xf32>
    %115 = vector.multi_reduction <add>, %114, %cst_77 [1] : vector<16x32xf32> to vector<16xf32>
    %116 = vector.shape_cast %115 : vector<16xf32> to vector<16x1xf32>
    %cst_78 = arith.constant 3.200000e+01 : f32
    %117 = vector.broadcast %cst_78 : f32 to vector<16x1xf32>
    %118 = arith.divf %116, %117 : vector<16x1xf32>
    %119 = vector.broadcast %111 : vector<16x1xf32> to vector<16x32xf32>
    %120 = arith.subf %103, %119 : vector<16x32xf32>
    %cst_79 = arith.constant 9.99999974E-6 : f32
    %121 = vector.broadcast %cst_79 : f32 to vector<16x1xf32>
    %122 = arith.addf %118, %121 : vector<16x1xf32>
    %123 = math.rsqrt %122 : vector<16x1xf32>
    %124 = vector.broadcast %123 : vector<16x1xf32> to vector<16x32xf32>
    %125 = arith.mulf %120, %124 : vector<16x32xf32>
    %126 = vector.broadcast %105 : vector<1x32xf32> to vector<16x32xf32>
    %127 = arith.mulf %125, %126 : vector<16x32xf32>
    %128 = vector.broadcast %107 : vector<1x32xf32> to vector<16x32xf32>
    %129 = arith.addf %127, %128 : vector<16x32xf32>
    %c0_80 = arith.constant 0 : index
    %c0_81 = arith.constant 0 : index
    %c0_82 = arith.constant 0 : index
    %130 = vector.load %arg16[%c0_80, %c0_81, %c0_82] : memref<2x32x128xf32, #tpu.memory_space<vmem>>, vector<1x32x128xf32>
    %131 = vector.shape_cast %130 : vector<1x32x128xf32> to vector<32x128xf32>
    %cst_83 = arith.constant dense<0.000000e+00> : vector<16x128xf32>
    %132 = tpu.matmul %129, %131, %cst_83 {dimension_numbers = #tpu.dot_dimension_numbers<[1], [0], [0], [1], [0, 0, 1, 1], [], []>} : vector<16x32xf32>, vector<32x128xf32>, vector<16x128xf32> -> vector<16x128xf32>
    %c0_84 = arith.constant 0 : index
    %c0_85 = arith.constant 0 : index
    %c0_86 = arith.constant 0 : index
    %133 = vector.load %arg17[%c0_84, %c0_85, %c0_86] : memref<2x1x128xf32, #tpu.memory_space<vmem>>, vector<1x1x128xf32>
    %134 = vector.shape_cast %133 : vector<1x1x128xf32> to vector<1x128xf32>
    %135 = vector.broadcast %134 : vector<1x128xf32> to vector<16x128xf32>
    %136 = arith.addf %132, %135 : vector<16x128xf32>
    %cst_87 = arith.constant 0.000000e+00 : f32
    %137 = vector.broadcast %cst_87 : f32 to vector<16x128xf32>
    %138 = arith.maximumf %136, %137 : vector<16x128xf32>
    %c0_88 = arith.constant 0 : index
    %c0_89 = arith.constant 0 : index
    %c0_90 = arith.constant 0 : index
    %139 = vector.load %arg18[%c0_88, %c0_89, %c0_90] : memref<2x128x32xf32, #tpu.memory_space<vmem>>, vector<1x128x32xf32>
    %140 = vector.shape_cast %139 : vector<1x128x32xf32> to vector<128x32xf32>
    %cst_91 = arith.constant dense<0.000000e+00> : vector<16x32xf32>
    %141 = tpu.matmul %138, %140, %cst_91 {dimension_numbers = #tpu.dot_dimension_numbers<[1], [0], [0], [1], [0, 0, 1, 1], [], []>} : vector<16x128xf32>, vector<128x32xf32>, vector<16x32xf32> -> vector<16x32xf32>
    %c0_92 = arith.constant 0 : index
    %c0_93 = arith.constant 0 : index
    %c0_94 = arith.constant 0 : index
    %142 = vector.load %arg19[%c0_92, %c0_93, %c0_94] : memref<2x1x32xf32, #tpu.memory_space<vmem>>, vector<1x1x32xf32>
    %143 = vector.shape_cast %142 : vector<1x1x32xf32> to vector<1x32xf32>
    %144 = vector.broadcast %143 : vector<1x32xf32> to vector<16x32xf32>
    %145 = arith.addf %141, %144 : vector<16x32xf32>
    %146 = arith.addf %129, %145 : vector<16x32xf32>
    %c0_95 = arith.constant 0 : index
    %c0_96 = arith.constant 0 : index
    %c0_97 = arith.constant 0 : index
    %147 = vector.load %arg20[%c0_95, %c0_96, %c0_97] : memref<2x1x32xf32, #tpu.memory_space<vmem>>, vector<1x1x32xf32>
    %148 = vector.shape_cast %147 : vector<1x1x32xf32> to vector<1x32xf32>
    %c0_98 = arith.constant 0 : index
    %c0_99 = arith.constant 0 : index
    %c0_100 = arith.constant 0 : index
    %149 = vector.load %arg21[%c0_98, %c0_99, %c0_100] : memref<2x1x32xf32, #tpu.memory_space<vmem>>, vector<1x1x32xf32>
    %150 = vector.shape_cast %149 : vector<1x1x32xf32> to vector<1x32xf32>
    %cst_101 = arith.constant dense<0.000000e+00> : vector<16xf32>
    %151 = vector.multi_reduction <add>, %146, %cst_101 [1] : vector<16x32xf32> to vector<16xf32>
    %152 = vector.shape_cast %151 : vector<16xf32> to vector<16x1xf32>
    %cst_102 = arith.constant 3.200000e+01 : f32
    %153 = vector.broadcast %cst_102 : f32 to vector<16x1xf32>
    %154 = arith.divf %152, %153 : vector<16x1xf32>
    %155 = vector.broadcast %154 : vector<16x1xf32> to vector<16x32xf32>
    %156 = arith.subf %146, %155 : vector<16x32xf32>
    %157 = arith.mulf %156, %156 : vector<16x32xf32>
    %cst_103 = arith.constant dense<0.000000e+00> : vector<16xf32>
    %158 = vector.multi_reduction <add>, %157, %cst_103 [1] : vector<16x32xf32> to vector<16xf32>
    %159 = vector.shape_cast %158 : vector<16xf32> to vector<16x1xf32>
    %cst_104 = arith.constant 3.200000e+01 : f32
    %160 = vector.broadcast %cst_104 : f32 to vector<16x1xf32>
    %161 = arith.divf %159, %160 : vector<16x1xf32>
    %162 = vector.broadcast %154 : vector<16x1xf32> to vector<16x32xf32>
    %163 = arith.subf %146, %162 : vector<16x32xf32>
    %cst_105 = arith.constant 9.99999974E-6 : f32
    %164 = vector.broadcast %cst_105 : f32 to vector<16x1xf32>
    %165 = arith.addf %161, %164 : vector<16x1xf32>
    %166 = math.rsqrt %165 : vector<16x1xf32>
    %167 = vector.broadcast %166 : vector<16x1xf32> to vector<16x32xf32>
    %168 = arith.mulf %163, %167 : vector<16x32xf32>
    %169 = vector.broadcast %148 : vector<1x32xf32> to vector<16x32xf32>
    %170 = arith.mulf %168, %169 : vector<16x32xf32>
    %171 = vector.broadcast %150 : vector<1x32xf32> to vector<16x32xf32>
    %172 = arith.addf %170, %171 : vector<16x32xf32>
    %173 = vector.shape_cast %172 : vector<16x32xf32> to vector<1x16x32xf32>
    %174 = vector.shape_cast %173 : vector<1x16x32xf32> to vector<1x16x32xf32>
    %175 = vector.broadcast %174 : vector<1x16x32xf32> to vector<4x16x32xf32>
    %c1 = arith.constant 1 : index
    %c0_106 = arith.constant 0 : index
    %c0_107 = arith.constant 0 : index
    %c0_108 = arith.constant 0 : index
    %176 = vector.load %arg4[%c1, %c0_106, %c0_107, %c0_108] : memref<2x4x32x8xf32, #tpu.memory_space<vmem>>, vector<1x4x32x8xf32>
    %177 = vector.shape_cast %176 : vector<1x4x32x8xf32> to vector<4x32x8xf32>
    %c1_109 = arith.constant 1 : index
    %c0_110 = arith.constant 0 : index
    %c0_111 = arith.constant 0 : index
    %c0_112 = arith.constant 0 : index
    %178 = vector.load %arg5[%c1_109, %c0_110, %c0_111, %c0_112] : memref<2x4x32x8xf32, #tpu.memory_space<vmem>>, vector<1x4x32x8xf32>
    %179 = vector.shape_cast %178 : vector<1x4x32x8xf32> to vector<4x32x8xf32>
    %c1_113 = arith.constant 1 : index
    %c0_114 = arith.constant 0 : index
    %c0_115 = arith.constant 0 : index
    %c0_116 = arith.constant 0 : index
    %180 = vector.load %arg6[%c1_113, %c0_114, %c0_115, %c0_116] : memref<2x4x32x8xf32, #tpu.memory_space<vmem>>, vector<1x4x32x8xf32>
    %181 = vector.shape_cast %180 : vector<1x4x32x8xf32> to vector<4x32x8xf32>
    %c1_117 = arith.constant 1 : index
    %c0_118 = arith.constant 0 : index
    %c0_119 = arith.constant 0 : index
    %c0_120 = arith.constant 0 : index
    %182 = vector.load %arg7[%c1_117, %c0_118, %c0_119, %c0_120] : memref<2x4x8x32xf32, #tpu.memory_space<vmem>>, vector<1x4x8x32xf32>
    %183 = vector.shape_cast %182 : vector<1x4x8x32xf32> to vector<4x8x32xf32>
    %184 = vector.shape_cast %172 : vector<16x32xf32> to vector<1x16x32xf32>
    %185 = vector.shape_cast %184 : vector<1x16x32xf32> to vector<1x16x32xf32>
    %186 = vector.broadcast %185 : vector<1x16x32xf32> to vector<4x16x32xf32>
    "tpu.trace_start"() <{level = 10 : i32, message = "hnd,hdk->hnk"}> : () -> ()
    %cst_121 = arith.constant dense<0.000000e+00> : vector<4x16x8xf32>
    %187 = tpu.matmul %186, %177, %cst_121 {dimension_numbers = #tpu.dot_dimension_numbers<[2], [1], [1], [2], [0, 0, 0, 1, 1, 2], [0], [0]>} : vector<4x16x32xf32>, vector<4x32x8xf32>, vector<4x16x8xf32> -> vector<4x16x8xf32>
    "tpu.trace_stop"() : () -> ()
    "tpu.trace_start"() <{level = 10 : i32, message = "hmd,hdk->hmk"}> : () -> ()
    %cst_122 = arith.constant dense<0.000000e+00> : vector<4x16x8xf32>
    %188 = tpu.matmul %175, %179, %cst_122 {dimension_numbers = #tpu.dot_dimension_numbers<[2], [1], [1], [2], [0, 0, 0, 1, 1, 2], [0], [0]>} : vector<4x16x32xf32>, vector<4x32x8xf32>, vector<4x16x8xf32> -> vector<4x16x8xf32>
    %cst_123 = arith.constant dense<0.000000e+00> : vector<4x16x8xf32>
    %189 = tpu.matmul %175, %181, %cst_123 {dimension_numbers = #tpu.dot_dimension_numbers<[2], [1], [1], [2], [0, 0, 0, 1, 1, 2], [0], [0]>} : vector<4x16x32xf32>, vector<4x32x8xf32>, vector<4x16x8xf32> -> vector<4x16x8xf32>
    "tpu.trace_stop"() : () -> ()
    "tpu.trace_start"() <{level = 10 : i32, message = "hnk,hmk->hnm"}> : () -> ()
    %cst_124 = arith.constant dense<0.000000e+00> : vector<4x16x16xf32>
    %190 = tpu.matmul %187, %188, %cst_124 {dimension_numbers = #tpu.dot_dimension_numbers<[2], [2], [1], [1], [0, 0, 0, 1, 1, 1], [0], [0]>} : vector<4x16x8xf32>, vector<4x16x8xf32>, vector<4x16x16xf32> -> vector<4x16x16xf32>
    "tpu.trace_stop"() : () -> ()
    %cst_125 = arith.constant 0.353553385 : f32
    %191 = vector.broadcast %cst_125 : f32 to vector<4x16x16xf32>
    %192 = arith.mulf %190, %191 : vector<4x16x16xf32>
    %193 = vector.shape_cast %2 : vector<16x16xf32> to vector<1x16x16xf32>
    %194 = vector.broadcast %193 : vector<1x16x16xf32> to vector<4x16x16xf32>
    %195 = arith.addf %192, %194 : vector<4x16x16xf32>
    %cst_126 = arith.constant dense<0xFF800000> : vector<4x16xf32>
    %196 = vector.multi_reduction <maximumf>, %195, %cst_126 [2] : vector<4x16x16xf32> to vector<4x16xf32>
    %197 = vector.shape_cast %196 : vector<4x16xf32> to vector<4x16x1xf32>
    %198 = vector.broadcast %197 : vector<4x16x1xf32> to vector<4x16x16xf32>
    %199 = arith.subf %195, %198 : vector<4x16x16xf32>
    %200 = math.exp %199 : vector<4x16x16xf32>
    %cst_127 = arith.constant dense<0.000000e+00> : vector<4x16xf32>
    %201 = vector.multi_reduction <add>, %200, %cst_127 [2] : vector<4x16x16xf32> to vector<4x16xf32>
    %202 = vector.shape_cast %201 : vector<4x16xf32> to vector<4x16x1xf32>
    %203 = tpu.reciprocal %202 {approx = true} : vector<4x16x1xf32> -> vector<4x16x1xf32>
    %204 = vector.broadcast %203 : vector<4x16x1xf32> to vector<4x16x16xf32>
    %205 = arith.mulf %200, %204 : vector<4x16x16xf32>
    "tpu.trace_start"() <{level = 10 : i32, message = "hnm,hmk->hnk"}> : () -> ()
    %cst_128 = arith.constant dense<0.000000e+00> : vector<4x16x8xf32>
    %206 = tpu.matmul %205, %189, %cst_128 {dimension_numbers = #tpu.dot_dimension_numbers<[2], [1], [1], [2], [0, 0, 0, 1, 1, 2], [0], [0]>} : vector<4x16x16xf32>, vector<4x16x8xf32>, vector<4x16x8xf32> -> vector<4x16x8xf32>
    "tpu.trace_stop"() : () -> ()
    "tpu.trace_start"() <{level = 10 : i32, message = "hnk,hkd->hnd"}> : () -> ()
    %cst_129 = arith.constant dense<0.000000e+00> : vector<4x16x32xf32>
    %207 = tpu.matmul %206, %183, %cst_129 {dimension_numbers = #tpu.dot_dimension_numbers<[2], [1], [1], [2], [0, 0, 0, 1, 1, 2], [0], [0]>} : vector<4x16x8xf32>, vector<4x8x32xf32>, vector<4x16x32xf32> -> vector<4x16x32xf32>
    "tpu.trace_stop"() : () -> ()
    %cst_130 = arith.constant dense<0.000000e+00> : vector<16x32xf32>
    %208 = vector.multi_reduction <add>, %207, %cst_130 [0] : vector<4x16x32xf32> to vector<16x32xf32>
    %209 = arith.addf %172, %208 : vector<16x32xf32>
    %c1_131 = arith.constant 1 : index
    %c0_132 = arith.constant 0 : index
    %c0_133 = arith.constant 0 : index
    %210 = vector.load %arg8[%c1_131, %c0_132, %c0_133] : memref<2x1x32xf32, #tpu.memory_space<vmem>>, vector<1x1x32xf32>
    %211 = vector.shape_cast %210 : vector<1x1x32xf32> to vector<1x32xf32>
    %c1_134 = arith.constant 1 : index
    %c0_135 = arith.constant 0 : index
    %c0_136 = arith.constant 0 : index
    %212 = vector.load %arg9[%c1_134, %c0_135, %c0_136] : memref<2x1x32xf32, #tpu.memory_space<vmem>>, vector<1x1x32xf32>
    %213 = vector.shape_cast %212 : vector<1x1x32xf32> to vector<1x32xf32>
    %cst_137 = arith.constant dense<0.000000e+00> : vector<16xf32>
    %214 = vector.multi_reduction <add>, %209, %cst_137 [1] : vector<16x32xf32> to vector<16xf32>
    %215 = vector.shape_cast %214 : vector<16xf32> to vector<16x1xf32>
    %cst_138 = arith.constant 3.200000e+01 : f32
    %216 = vector.broadcast %cst_138 : f32 to vector<16x1xf32>
    %217 = arith.divf %215, %216 : vector<16x1xf32>
    %218 = vector.broadcast %217 : vector<16x1xf32> to vector<16x32xf32>
    %219 = arith.subf %209, %218 : vector<16x32xf32>
    %220 = arith.mulf %219, %219 : vector<16x32xf32>
    %cst_139 = arith.constant dense<0.000000e+00> : vector<16xf32>
    %221 = vector.multi_reduction <add>, %220, %cst_139 [1] : vector<16x32xf32> to vector<16xf32>
    %222 = vector.shape_cast %221 : vector<16xf32> to vector<16x1xf32>
    %cst_140 = arith.constant 3.200000e+01 : f32
    %223 = vector.broadcast %cst_140 : f32 to vector<16x1xf32>
    %224 = arith.divf %222, %223 : vector<16x1xf32>
    %225 = vector.broadcast %217 : vector<16x1xf32> to vector<16x32xf32>
    %226 = arith.subf %209, %225 : vector<16x32xf32>
    %cst_141 = arith.constant 9.99999974E-6 : f32
    %227 = vector.broadcast %cst_141 : f32 to vector<16x1xf32>
    %228 = arith.addf %224, %227 : vector<16x1xf32>
    %229 = math.rsqrt %228 : vector<16x1xf32>
    %230 = vector.broadcast %229 : vector<16x1xf32> to vector<16x32xf32>
    %231 = arith.mulf %226, %230 : vector<16x32xf32>
    %232 = vector.broadcast %211 : vector<1x32xf32> to vector<16x32xf32>
    %233 = arith.mulf %231, %232 : vector<16x32xf32>
    %234 = vector.broadcast %213 : vector<1x32xf32> to vector<16x32xf32>
    %235 = arith.addf %233, %234 : vector<16x32xf32>
    %c1_142 = arith.constant 1 : index
    %c0_143 = arith.constant 0 : index
    %c0_144 = arith.constant 0 : index
    %c0_145 = arith.constant 0 : index
    %236 = vector.load %arg10[%c1_142, %c0_143, %c0_144, %c0_145] : memref<2x4x32x8xf32, #tpu.memory_space<vmem>>, vector<1x4x32x8xf32>
    %237 = vector.shape_cast %236 : vector<1x4x32x8xf32> to vector<4x32x8xf32>
    %c1_146 = arith.constant 1 : index
    %c0_147 = arith.constant 0 : index
    %c0_148 = arith.constant 0 : index
    %c0_149 = arith.constant 0 : index
    %238 = vector.load %arg11[%c1_146, %c0_147, %c0_148, %c0_149] : memref<2x4x32x8xf32, #tpu.memory_space<vmem>>, vector<1x4x32x8xf32>
    %239 = vector.shape_cast %238 : vector<1x4x32x8xf32> to vector<4x32x8xf32>
    %c1_150 = arith.constant 1 : index
    %c0_151 = arith.constant 0 : index
    %c0_152 = arith.constant 0 : index
    %c0_153 = arith.constant 0 : index
    %240 = vector.load %arg12[%c1_150, %c0_151, %c0_152, %c0_153] : memref<2x4x32x8xf32, #tpu.memory_space<vmem>>, vector<1x4x32x8xf32>
    %241 = vector.shape_cast %240 : vector<1x4x32x8xf32> to vector<4x32x8xf32>
    %c1_154 = arith.constant 1 : index
    %c0_155 = arith.constant 0 : index
    %c0_156 = arith.constant 0 : index
    %c0_157 = arith.constant 0 : index
    %242 = vector.load %arg13[%c1_154, %c0_155, %c0_156, %c0_157] : memref<2x4x8x32xf32, #tpu.memory_space<vmem>>, vector<1x4x8x32xf32>
    %243 = vector.shape_cast %242 : vector<1x4x8x32xf32> to vector<4x8x32xf32>
    %244 = vector.shape_cast %235 : vector<16x32xf32> to vector<1x16x32xf32>
    %245 = vector.shape_cast %244 : vector<1x16x32xf32> to vector<1x16x32xf32>
    %246 = vector.broadcast %245 : vector<1x16x32xf32> to vector<4x16x32xf32>
    "tpu.trace_start"() <{level = 10 : i32, message = "hnd,hdk->hnk"}> : () -> ()
    %cst_158 = arith.constant dense<0.000000e+00> : vector<4x16x8xf32>
    %247 = tpu.matmul %246, %237, %cst_158 {dimension_numbers = #tpu.dot_dimension_numbers<[2], [1], [1], [2], [0, 0, 0, 1, 1, 2], [0], [0]>} : vector<4x16x32xf32>, vector<4x32x8xf32>, vector<4x16x8xf32> -> vector<4x16x8xf32>
    "tpu.trace_stop"() : () -> ()
    "tpu.trace_start"() <{level = 10 : i32, message = "hmd,hdk->hmk"}> : () -> ()
    %cst_159 = arith.constant dense<0.000000e+00> : vector<4x16x8xf32>
    %248 = tpu.matmul %6, %239, %cst_159 {dimension_numbers = #tpu.dot_dimension_numbers<[2], [1], [1], [2], [0, 0, 0, 1, 1, 2], [0], [0]>} : vector<4x16x32xf32>, vector<4x32x8xf32>, vector<4x16x8xf32> -> vector<4x16x8xf32>
    %cst_160 = arith.constant dense<0.000000e+00> : vector<4x16x8xf32>
    %249 = tpu.matmul %6, %241, %cst_160 {dimension_numbers = #tpu.dot_dimension_numbers<[2], [1], [1], [2], [0, 0, 0, 1, 1, 2], [0], [0]>} : vector<4x16x32xf32>, vector<4x32x8xf32>, vector<4x16x8xf32> -> vector<4x16x8xf32>
    "tpu.trace_stop"() : () -> ()
    "tpu.trace_start"() <{level = 10 : i32, message = "hnk,hmk->hnm"}> : () -> ()
    %cst_161 = arith.constant dense<0.000000e+00> : vector<4x16x16xf32>
    %250 = tpu.matmul %247, %248, %cst_161 {dimension_numbers = #tpu.dot_dimension_numbers<[2], [2], [1], [1], [0, 0, 0, 1, 1, 1], [0], [0]>} : vector<4x16x8xf32>, vector<4x16x8xf32>, vector<4x16x16xf32> -> vector<4x16x16xf32>
    "tpu.trace_stop"() : () -> ()
    %cst_162 = arith.constant 0.353553385 : f32
    %251 = vector.broadcast %cst_162 : f32 to vector<4x16x16xf32>
    %252 = arith.mulf %250, %251 : vector<4x16x16xf32>
    %253 = vector.shape_cast %3 : vector<16x16xf32> to vector<1x16x16xf32>
    %254 = vector.broadcast %253 : vector<1x16x16xf32> to vector<4x16x16xf32>
    %255 = arith.addf %252, %254 : vector<4x16x16xf32>
    %cst_163 = arith.constant dense<0xFF800000> : vector<4x16xf32>
    %256 = vector.multi_reduction <maximumf>, %255, %cst_163 [2] : vector<4x16x16xf32> to vector<4x16xf32>
    %257 = vector.shape_cast %256 : vector<4x16xf32> to vector<4x16x1xf32>
    %258 = vector.broadcast %257 : vector<4x16x1xf32> to vector<4x16x16xf32>
    %259 = arith.subf %255, %258 : vector<4x16x16xf32>
    %260 = math.exp %259 : vector<4x16x16xf32>
    %cst_164 = arith.constant dense<0.000000e+00> : vector<4x16xf32>
    %261 = vector.multi_reduction <add>, %260, %cst_164 [2] : vector<4x16x16xf32> to vector<4x16xf32>
    %262 = vector.shape_cast %261 : vector<4x16xf32> to vector<4x16x1xf32>
    %263 = tpu.reciprocal %262 {approx = true} : vector<4x16x1xf32> -> vector<4x16x1xf32>
    %264 = vector.broadcast %263 : vector<4x16x1xf32> to vector<4x16x16xf32>
    %265 = arith.mulf %260, %264 : vector<4x16x16xf32>
    "tpu.trace_start"() <{level = 10 : i32, message = "hnm,hmk->hnk"}> : () -> ()
    %cst_165 = arith.constant dense<0.000000e+00> : vector<4x16x8xf32>
    %266 = tpu.matmul %265, %249, %cst_165 {dimension_numbers = #tpu.dot_dimension_numbers<[2], [1], [1], [2], [0, 0, 0, 1, 1, 2], [0], [0]>} : vector<4x16x16xf32>, vector<4x16x8xf32>, vector<4x16x8xf32> -> vector<4x16x8xf32>
    "tpu.trace_stop"() : () -> ()
    "tpu.trace_start"() <{level = 10 : i32, message = "hnk,hkd->hnd"}> : () -> ()
    %cst_166 = arith.constant dense<0.000000e+00> : vector<4x16x32xf32>
    %267 = tpu.matmul %266, %243, %cst_166 {dimension_numbers = #tpu.dot_dimension_numbers<[2], [1], [1], [2], [0, 0, 0, 1, 1, 2], [0], [0]>} : vector<4x16x8xf32>, vector<4x8x32xf32>, vector<4x16x32xf32> -> vector<4x16x32xf32>
    "tpu.trace_stop"() : () -> ()
    %cst_167 = arith.constant dense<0.000000e+00> : vector<16x32xf32>
    %268 = vector.multi_reduction <add>, %267, %cst_167 [0] : vector<4x16x32xf32> to vector<16x32xf32>
    %269 = arith.addf %235, %268 : vector<16x32xf32>
    %c1_168 = arith.constant 1 : index
    %c0_169 = arith.constant 0 : index
    %c0_170 = arith.constant 0 : index
    %270 = vector.load %arg14[%c1_168, %c0_169, %c0_170] : memref<2x1x32xf32, #tpu.memory_space<vmem>>, vector<1x1x32xf32>
    %271 = vector.shape_cast %270 : vector<1x1x32xf32> to vector<1x32xf32>
    %c1_171 = arith.constant 1 : index
    %c0_172 = arith.constant 0 : index
    %c0_173 = arith.constant 0 : index
    %272 = vector.load %arg15[%c1_171, %c0_172, %c0_173] : memref<2x1x32xf32, #tpu.memory_space<vmem>>, vector<1x1x32xf32>
    %273 = vector.shape_cast %272 : vector<1x1x32xf32> to vector<1x32xf32>
    %cst_174 = arith.constant dense<0.000000e+00> : vector<16xf32>
    %274 = vector.multi_reduction <add>, %269, %cst_174 [1] : vector<16x32xf32> to vector<16xf32>
    %275 = vector.shape_cast %274 : vector<16xf32> to vector<16x1xf32>
    %cst_175 = arith.constant 3.200000e+01 : f32
    %276 = vector.broadcast %cst_175 : f32 to vector<16x1xf32>
    %277 = arith.divf %275, %276 : vector<16x1xf32>
    %278 = vector.broadcast %277 : vector<16x1xf32> to vector<16x32xf32>
    %279 = arith.subf %269, %278 : vector<16x32xf32>
    %280 = arith.mulf %279, %279 : vector<16x32xf32>
    %cst_176 = arith.constant dense<0.000000e+00> : vector<16xf32>
    %281 = vector.multi_reduction <add>, %280, %cst_176 [1] : vector<16x32xf32> to vector<16xf32>
    %282 = vector.shape_cast %281 : vector<16xf32> to vector<16x1xf32>
    %cst_177 = arith.constant 3.200000e+01 : f32
    %283 = vector.broadcast %cst_177 : f32 to vector<16x1xf32>
    %284 = arith.divf %282, %283 : vector<16x1xf32>
    %285 = vector.broadcast %277 : vector<16x1xf32> to vector<16x32xf32>
    %286 = arith.subf %269, %285 : vector<16x32xf32>
    %cst_178 = arith.constant 9.99999974E-6 : f32
    %287 = vector.broadcast %cst_178 : f32 to vector<16x1xf32>
    %288 = arith.addf %284, %287 : vector<16x1xf32>
    %289 = math.rsqrt %288 : vector<16x1xf32>
    %290 = vector.broadcast %289 : vector<16x1xf32> to vector<16x32xf32>
    %291 = arith.mulf %286, %290 : vector<16x32xf32>
    %292 = vector.broadcast %271 : vector<1x32xf32> to vector<16x32xf32>
    %293 = arith.mulf %291, %292 : vector<16x32xf32>
    %294 = vector.broadcast %273 : vector<1x32xf32> to vector<16x32xf32>
    %295 = arith.addf %293, %294 : vector<16x32xf32>
    %c1_179 = arith.constant 1 : index
    %c0_180 = arith.constant 0 : index
    %c0_181 = arith.constant 0 : index
    %296 = vector.load %arg16[%c1_179, %c0_180, %c0_181] : memref<2x32x128xf32, #tpu.memory_space<vmem>>, vector<1x32x128xf32>
    %297 = vector.shape_cast %296 : vector<1x32x128xf32> to vector<32x128xf32>
    %cst_182 = arith.constant dense<0.000000e+00> : vector<16x128xf32>
    %298 = tpu.matmul %295, %297, %cst_182 {dimension_numbers = #tpu.dot_dimension_numbers<[1], [0], [0], [1], [0, 0, 1, 1], [], []>} : vector<16x32xf32>, vector<32x128xf32>, vector<16x128xf32> -> vector<16x128xf32>
    %c1_183 = arith.constant 1 : index
    %c0_184 = arith.constant 0 : index
    %c0_185 = arith.constant 0 : index
    %299 = vector.load %arg17[%c1_183, %c0_184, %c0_185] : memref<2x1x128xf32, #tpu.memory_space<vmem>>, vector<1x1x128xf32>
    %300 = vector.shape_cast %299 : vector<1x1x128xf32> to vector<1x128xf32>
    %301 = vector.broadcast %300 : vector<1x128xf32> to vector<16x128xf32>
    %302 = arith.addf %298, %301 : vector<16x128xf32>
    %cst_186 = arith.constant 0.000000e+00 : f32
    %303 = vector.broadcast %cst_186 : f32 to vector<16x128xf32>
    %304 = arith.maximumf %302, %303 : vector<16x128xf32>
    %c1_187 = arith.constant 1 : index
    %c0_188 = arith.constant 0 : index
    %c0_189 = arith.constant 0 : index
    %305 = vector.load %arg18[%c1_187, %c0_188, %c0_189] : memref<2x128x32xf32, #tpu.memory_space<vmem>>, vector<1x128x32xf32>
    %306 = vector.shape_cast %305 : vector<1x128x32xf32> to vector<128x32xf32>
    %cst_190 = arith.constant dense<0.000000e+00> : vector<16x32xf32>
    %307 = tpu.matmul %304, %306, %cst_190 {dimension_numbers = #tpu.dot_dimension_numbers<[1], [0], [0], [1], [0, 0, 1, 1], [], []>} : vector<16x128xf32>, vector<128x32xf32>, vector<16x32xf32> -> vector<16x32xf32>
    %c1_191 = arith.constant 1 : index
    %c0_192 = arith.constant 0 : index
    %c0_193 = arith.constant 0 : index
    %308 = vector.load %arg19[%c1_191, %c0_192, %c0_193] : memref<2x1x32xf32, #tpu.memory_space<vmem>>, vector<1x1x32xf32>
    %309 = vector.shape_cast %308 : vector<1x1x32xf32> to vector<1x32xf32>
    %310 = vector.broadcast %309 : vector<1x32xf32> to vector<16x32xf32>
    %311 = arith.addf %307, %310 : vector<16x32xf32>
    %312 = arith.addf %295, %311 : vector<16x32xf32>
    %c1_194 = arith.constant 1 : index
    %c0_195 = arith.constant 0 : index
    %c0_196 = arith.constant 0 : index
    %313 = vector.load %arg20[%c1_194, %c0_195, %c0_196] : memref<2x1x32xf32, #tpu.memory_space<vmem>>, vector<1x1x32xf32>
    %314 = vector.shape_cast %313 : vector<1x1x32xf32> to vector<1x32xf32>
    %c1_197 = arith.constant 1 : index
    %c0_198 = arith.constant 0 : index
    %c0_199 = arith.constant 0 : index
    %315 = vector.load %arg21[%c1_197, %c0_198, %c0_199] : memref<2x1x32xf32, #tpu.memory_space<vmem>>, vector<1x1x32xf32>
    %316 = vector.shape_cast %315 : vector<1x1x32xf32> to vector<1x32xf32>
    %cst_200 = arith.constant dense<0.000000e+00> : vector<16xf32>
    %317 = vector.multi_reduction <add>, %312, %cst_200 [1] : vector<16x32xf32> to vector<16xf32>
    %318 = vector.shape_cast %317 : vector<16xf32> to vector<16x1xf32>
    %cst_201 = arith.constant 3.200000e+01 : f32
    %319 = vector.broadcast %cst_201 : f32 to vector<16x1xf32>
    %320 = arith.divf %318, %319 : vector<16x1xf32>
    %321 = vector.broadcast %320 : vector<16x1xf32> to vector<16x32xf32>
    %322 = arith.subf %312, %321 : vector<16x32xf32>
    %323 = arith.mulf %322, %322 : vector<16x32xf32>
    %cst_202 = arith.constant dense<0.000000e+00> : vector<16xf32>
    %324 = vector.multi_reduction <add>, %323, %cst_202 [1] : vector<16x32xf32> to vector<16xf32>
    %325 = vector.shape_cast %324 : vector<16xf32> to vector<16x1xf32>
    %cst_203 = arith.constant 3.200000e+01 : f32
    %326 = vector.broadcast %cst_203 : f32 to vector<16x1xf32>
    %327 = arith.divf %325, %326 : vector<16x1xf32>
    %328 = vector.broadcast %320 : vector<16x1xf32> to vector<16x32xf32>
    %329 = arith.subf %312, %328 : vector<16x32xf32>
    %cst_204 = arith.constant 9.99999974E-6 : f32
    %330 = vector.broadcast %cst_204 : f32 to vector<16x1xf32>
    %331 = arith.addf %327, %330 : vector<16x1xf32>
    %332 = math.rsqrt %331 : vector<16x1xf32>
    %333 = vector.broadcast %332 : vector<16x1xf32> to vector<16x32xf32>
    %334 = arith.mulf %329, %333 : vector<16x32xf32>
    %335 = vector.broadcast %314 : vector<1x32xf32> to vector<16x32xf32>
    %336 = arith.mulf %334, %335 : vector<16x32xf32>
    %337 = vector.broadcast %316 : vector<1x32xf32> to vector<16x32xf32>
    %338 = arith.addf %336, %337 : vector<16x32xf32>
    %c0_205 = arith.constant 0 : index
    %c0_206 = arith.constant 0 : index
    %339 = vector.load %arg22[%c0_205, %c0_206] : memref<32x128xf32, #tpu.memory_space<vmem>>, vector<32x128xf32>
    %cst_207 = arith.constant dense<0.000000e+00> : vector<16x128xf32>
    %340 = tpu.matmul %338, %339, %cst_207 {dimension_numbers = #tpu.dot_dimension_numbers<[1], [0], [0], [1], [0, 0, 1, 1], [], []>} : vector<16x32xf32>, vector<32x128xf32>, vector<16x128xf32> -> vector<16x128xf32>
    %c0_208 = arith.constant 0 : index
    %c0_209 = arith.constant 0 : index
    %341 = vector.load %arg23[%c0_208, %c0_209] : memref<16x128xf32, #tpu.memory_space<vmem>>, vector<16x128xf32>
    tpu.vector_store %arg23[%c0_208, %c0_209], %340 {strides = array<i32>} : memref<16x128xf32, #tpu.memory_space<vmem>>, vector<16x128xf32>,
    return
  }
}

</mosaic_0001>

<bundles_post_ra>
// kernel: decoder_forward.1
= control target key start
LH: loop header
LB: loop body
LE: loop exit
PB: predicated region body
PF: predicated region fallthrough
CT: control target
= control target key end

     0   :  { %s6027_s0 = inlined_call_operand.vmem [shape: f32[16,32], index: 0, kind: input, shape index: {}]   ;;  %s6028_s1 = inlined_call_operand.vmem [shape: f32[16,32], index: 1, kind: input, shape index: {}]   ;;  %s6029_s2 = inlined_call_operand.vmem [shape: f32[16,16], index: 2, kind: input, shape index: {}]   ;;  %s6030_s3 = inlined_call_operand.vmem [shape: f32[16,16], index: 3, kind: input, shape index: {}]   ;;  %s6031_s4 = inlined_call_operand.vmem [shape: f32[2,4,32,8], index: 4, kind: input, shape index: {}]   ;;  %s6032_s5 = inlined_call_operand.vmem [shape: f32[2,4,32,8], index: 5, kind: input, shape index: {}]   ;;  %s6033_s6 = inlined_call_operand.vmem [shape: f32[2,4,32,8], index: 6, kind: input, shape index: {}]   ;;  %s6034_s7 = inlined_call_operand.vmem [shape: f32[2,4,8,32], index: 7, kind: input, shape index: {}]   ;;  %s6035_s8 = inlined_call_operand.vmem [shape: f32[2,1,32], index: 8, kind: input, shape index: {}]   ;;  %s6036_s9 = inlined_call_operand.vmem [shape: f32[2,1,32], index: 9, kind: input, shape index: {}]   ;;  %s6037_s10 = inlined_call_operand.vmem [shape: f32[2,4,32,8], index: 10, kind: input, shape index: {}]   ;;  %s6038_s11 = inlined_call_operand.vmem [shape: f32[2,4,32,8], index: 11, kind: input, shape index: {}]   ;;  %s6039_s12 = inlined_call_operand.vmem [shape: f32[2,4,32,8], index: 12, kind: input, shape index: {}]   ;;  %s6040_s13 = inlined_call_operand.vmem [shape: f32[2,4,8,32], index: 13, kind: input, shape index: {}]   ;;  %s6041_s14 = inlined_call_operand.vmem [shape: f32[2,1,32], index: 14, kind: input, shape index: {}]   ;;  %s6042_s15 = inlined_call_operand.vmem [shape: f32[2,1,32], index: 15, kind: input, shape index: {}]   ;;  %s6043_s16 = inlined_call_operand.vmem [shape: f32[2,32,128], index: 16, kind: input, shape index: {}]   ;;  %s6044_s17 = inlined_call_operand.vmem [shape: f32[2,1,128], index: 17, kind: input, shape index: {}]   ;;  %s6045_s18 = inlined_call_operand.vmem [shape: f32[2,128,32], index: 18, kind: input, shape index: {}]   ;;  %s6046_s19 = inlined_call_operand.vmem [shape: f32[2,1,32], index: 19, kind: input, shape index: {}]   ;;  %s6047_s20 = inlined_call_operand.vmem [shape: f32[2,1,32], index: 20, kind: input, shape index: {}]   ;;  %s6048_s21 = inlined_call_operand.vmem [shape: f32[2,1,32], index: 21, kind: input, shape index: {}]   ;;  %s6049_s22 = inlined_call_operand.vmem [shape: f32[32,128], index: 22, kind: input, shape index: {}]   ;;  %s6050_s23 = inlined_call_operand.hbm [shape: f32[16,128], index: 23, kind: output, shape index: {}]  }
   0x1   :  { %6060 = sst [smem:[#allocation5_spill]] %s6027_s0 }
   0x2   :  { %6061 = sst [smem:[#allocation6_spill]] %s6028_s1 }
   0x3   :  { %6062 = sst [smem:[#allocation7_spill]] %s6029_s2 }
   0x4   :  { %6063 = sst [smem:[#allocation8_spill]] %s6030_s3 }
   0x5   :  { %6064 = sst [smem:[#allocation9_spill]] %s6031_s4 }
   0x6   :  { %6065 = sst [smem:[#allocation10_spill]] %s6032_s5 }
   0x7   :  { %6066 = sst [smem:[#allocation11_spill]] %s6033_s6 }
   0x8   :  { %6067 = sst [smem:[#allocation12_spill]] %s6034_s7 }
   0x9   :  { %6068 = sst [smem:[#allocation13_spill]] %s6049_s22 }
   0xa   :  { %6069 = sst [smem:[#allocation14_spill]] %s6050_s23 }
   0xb   :  { %s6070_s24 = sld [smem:[#allocation9_spill]]  ;;  %vm135_vm0 = vcmask 261120  }
   0xc   :  { %s6071_s3 = sld [smem:[#allocation5_spill]] }
   0xd   :  { %s6072_s30 = sld [smem:[#allocation10_spill]] }
  0x11   :  { %v86_v0 = vld [vmem:[%s6070_s24 + $0x18] sm:$0xff]  ;;  %v85_v3 = vld [vmem:[%s6070_s24 + $0x10] sm:$0xff]  ;;  %v84_v6 = vld [vmem:[%s6070_s24 + $0x8] sm:$0xff] }
  0x12   :  { %v90_v1 = vld [vmem:[%s6070_s24 + $0x38] sm:$0xff]  ;;  %154 = vmatpush.msra.mxu2 %v86_v0  ;;  %v89_v4 = vld [vmem:[%s6070_s24 + $0x30] sm:$0xff]  ;;  %v88_v7 = vld [vmem:[%s6070_s24 + $0x28] sm:$0xff] }
  0x13   :  { %v98_v2 = vld [vmem:[%s6070_s24 + $0x78] sm:$0xff]  ;;  %177 = vmatpush.msra.mxu1 %v90_v1  ;;  %v97_v5 = vld [vmem:[%s6070_s24 + $0x70] sm:$0xff]  ;;  %v96_v8 = vld [vmem:[%s6070_s24 + $0x68] sm:$0xff] }
  0x14   :  { %223 = vmatpush.msra.mxu3 %v98_v2  ;;  %155 = vmatpush.msra.mxu2 %v85_v3  ;;  %v83_v9 = vld [vmem:[%s6070_s24] sm:$0xff]  ;;  %v102_v13 = vld [vmem:[%s6072_s30 + $0x18] sm:$0xff]  ;;  %v93_v16 = vld [vmem:[%s6070_s24 + $0x50] sm:$0xff] }
  0x15   :  { %178 = vmatpush.msra.mxu1 %v89_v4  ;;  %v87_v10 = vld [vmem:[%s6070_s24 + $0x20] sm:$0xff]  ;;  %246 = vmatpush.msra.mxu0 %v102_v13  ;;  %v94_v14 = vld [vmem:[%s6070_s24 + $0x58] sm:$0xff]  ;;  %v101_v17 = vld [vmem:[%s6072_s30 + $0x10] sm:$0xff] }
  0x16   :  { %224 = vmatpush.msra.mxu3 %v97_v5  ;;  %156 = vmatpush.msra.mxu2 %v84_v6  ;;  %v95_v11 = vld [vmem:[%s6070_s24 + $0x60] sm:$0xff]  ;;  %v106_v15 = vld [vmem:[%s6072_s30 + $0x38] sm:$0xff]  ;;  %v105_v18 = vld [vmem:[%s6072_s30 + $0x30] sm:$0xff] }
  0x17   :  { %179 = vmatpush.msra.mxu1 %v88_v7  ;;  %v4713_v12 = vld [vmem:[%s6071_s3] sm:$0xff]  ;;  %v92_v19 = vld [vmem:[%s6070_s24 + $0x48] sm:$0xff]  ;;  %247 = vmatpush.msra.mxu0 %v101_v17  ;;  %v114_v26 = vld [vmem:[%s6072_s30 + $0x78] sm:$0xff] }
  0x18   :  { %225 = vmatpush.msra.mxu3 %v96_v8  ;;  %157 = vmatpush.msra.mxu2 %v83_v9  ;;  %v100_v20 = vld [vmem:[%s6072_s30 + $0x8] sm:$0xff]  ;;  %v99_v23 = vld [vmem:[%s6072_s30] sm:$0xff]  ;;  %v110_v27 = vld [vmem:[%s6072_s30 + $0x58] sm:$0xff] }
  0x19   :  { %180 = vmatpush.msra.mxu1 %v87_v10  ;;  %3978 = vmatmul.msk.f32.vlgmr.msra.gmra.mxu2 %vm135_vm0, %v4713_v12  ;;  %v104_v21 = vld [vmem:[%s6072_s30 + $0x28] sm:$0xff]  ;;  %v91_v24 = vld [vmem:[%s6070_s24 + $0x40] sm:$0xff] }
  0x1a   :  { %226 = vmatpush.msra.mxu3 %v95_v11  ;;  %3980 = vmatmul.msk.f32.vlgmr.msra.gmra.mxu1 %vm135_vm0, %v4713_v12  ;;  %v4751_v22 = vld [vmem:[%s6071_s3 + $0x8] sm:$0xff]  ;;  %v103_v25 = vld [vmem:[%s6072_s30 + $0x20] sm:$0xff] }
  0x1b   :  { %3984 = vmatmul.msk.f32.vlgmr.msra.gmra.mxu3 %vm135_vm0, %v4713_v12  ;;  %200 = vmatpush.msrb.mxu2 %v94_v14 }
  0x1c   :  { %4340 = vmatpush.msrb.mxu3 %v102_v13  ;;  %269 = vmatpush.msrb.mxu1 %v106_v15 }
  0x1d   :  { %201 = vmatpush.msrb.mxu2 %v93_v16  ;;  %248 = vmatpush.msra.mxu0 %v100_v20 }
  0x1e   :  { %4341 = vmatpush.msrb.mxu3 %v101_v17  ;;  %270 = vmatpush.msrb.mxu1 %v105_v18 }
  0x1f   :  { %202 = vmatpush.msrb.mxu2 %v92_v19  ;;  %249 = vmatpush.msra.mxu0 %v99_v23 }
  0x20   :  { %4342 = vmatpush.msrb.mxu3 %v100_v20  ;;  %271 = vmatpush.msrb.mxu1 %v104_v21 }
  0x21   :  { %3979 = vmatmul.msk.f32.gmra.mxu2 %vm135_vm0, %v4751_v22 }
  0x22   :  { %4343 = vmatpush.msrb.mxu3 %v99_v23 }
  0x23   :  { %28 = vsyncpa [#allocation3], 0  ;;  %3981 = vmatmul.msk.f32.gmra.mxu1 %vm135_vm0, %v4751_v22  ;;  %3985 = vmatmul.msk.f32.gmra.mxu3 %vm135_vm0, %v4751_v22  ;;  %v113_v28 = vld [vmem:[%s6072_s30 + $0x70] sm:$0xff]  ;;  %v112_v30 = vld [vmem:[%s6072_s30 + $0x68] sm:$0xff]  ;;  %s6073_s2 = sld [smem:[#allocation11_spill]]  ;;  %vm418_vm1 = vcmask 64512  }
  0x24   :  { %203 = vmatpush.msrb.mxu2 %v91_v24  ;;  %272 = vmatpush.msrb.mxu1 %v103_v25  ;;  %v109_v29 = vld [vmem:[%s6072_s30 + $0x50] sm:$0xff]  ;;  %v108_v31 = vld [vmem:[%s6072_s30 + $0x48] sm:$0xff]  ;;  %v111_v32 = vld [vmem:[%s6072_s30 + $0x60] sm:$0xff]  ;;  %s6074_s25 = sld [smem:[#allocation7_spill]]  ;;  %vm575_vm2 = vcmask 130048   ;;  %s4553_s29 = smov 8  }
  0x25   :  { %315 = vmatpush.msra.mxu3 %v114_v26  ;;  %3986 = vmatmul.msk.f32.vlgmr.msra.gmra.mxu0 %vm135_vm0, %v4713_v12  ;;  %v107_v33 = vld [vmem:[%s6072_s30 + $0x40] sm:$0xff]  ;;  %s6075_s27 = sld [smem:[#allocation12_spill]] }
  0x26   :  { %292 = vmatpush.msra.mxu2 %v110_v27  ;;  %s6076_s5 = sld [smem:[#allocation6_spill]] }
  0x27   :  { %316 = vmatpush.msra.mxu3 %v113_v28  ;;  %s6077_s0 = sld [smem:[#allocation8_spill]] }
  0x28   :  { %293 = vmatpush.msra.mxu2 %v109_v29 }
  0x29   :  { %317 = vmatpush.msra.mxu3 %v112_v30  ;;  %3982 = vmatmul.msk.f32.vlgmr.msrb.gmra.mxu2 %vm135_vm0, %v4713_v12  ;;  %v118_v34 = vld [vmem:[%s6073_s2 + $0x18] sm:$0xff]  ;;  %v117_v35 = vld [vmem:[%s6073_s2 + $0x10] sm:$0xff]  ;;  %v116_v37 = vld [vmem:[%s6073_s2 + $0x8] sm:$0xff] }
  0x2a   :  { %294 = vmatpush.msra.mxu2 %v108_v31  ;;  %338 = vmatpush.msrb.mxu0 %v118_v34  ;;  %v122_v36 = vld [vmem:[%s6073_s2 + $0x38] sm:$0xff]  ;;  %v121_v38 = vld [vmem:[%s6073_s2 + $0x30] sm:$0xff]  ;;  %v115_v39 = vld [vmem:[%s6073_s2] sm:$0xff] }
  0x2b   :  { %3987 = vmatmul.msk.f32.vlgmr.msrb.gmra.mxu3 %vm135_vm0, %v4751_v22  ;;  %3988 = vmatmul.msk.f32.vlgmr.msrb.gmra.mxu1 %vm135_vm0, %v4713_v12  ;;  %v120_v40 = vld [vmem:[%s6073_s2 + $0x28] sm:$0xff]  ;;  %v119_v41 = vld [vmem:[%s6073_s2 + $0x20] sm:$0xff]  ;;  %v126_v42 = vld [vmem:[%s6073_s2 + $0x58] sm:$0xff] }
  0x2c   :  { %318 = vmatpush.msra.mxu3 %v111_v32  ;;  %295 = vmatpush.msra.mxu2 %v107_v33  ;;  %v125_v43 = vld [vmem:[%s6073_s2 + $0x50] sm:$0xff]  ;;  %v130_v44 = vld [vmem:[%s6073_s2 + $0x78] sm:$0xff]  ;;  %v124_v45 = vld [vmem:[%s6073_s2 + $0x48] sm:$0xff] }
  0x2d   :  { %339 = vmatpush.msrb.mxu0 %v117_v35  ;;  %361 = vmatpush.msra.mxu1 %v122_v36  ;;  %v129_v46 = vld [vmem:[%s6073_s2 + $0x70] sm:$0xff]  ;;  %v123_v47 = vld [vmem:[%s6073_s2 + $0x40] sm:$0xff]  ;;  %v128_v48 = vld [vmem:[%s6073_s2 + $0x68] sm:$0xff] }
  0x2e   :  { %384 = vmatpush.msrb.mxu2 %v126_v42  ;;  %407 = vmatpush.msrb.mxu3 %v130_v44  ;;  %v127_v49 = vld [vmem:[%s6073_s2 + $0x60] sm:$0xff]  ;;  %v80_v23 = vld [vmem:[%s6074_s25 + $0x8] sm:$0xff] }
  0x2f   :  { %340 = vmatpush.msrb.mxu0 %v116_v37  ;;  %362 = vmatpush.msra.mxu1 %v121_v38  ;;  %v79_v13 = vld [vmem:[%s6074_s25] sm:$0xff] }
  0x30   :  { %385 = vmatpush.msrb.mxu2 %v125_v43  ;;  %408 = vmatpush.msrb.mxu3 %v129_v46 }
  0x31   :  { %3983 = vmatmul.msk.f32.gmra.mxu2 %vm135_vm0, %v4751_v22  ;;  %341 = vmatpush.msrb.mxu0 %v115_v39 }
  0x32   :  { %363 = vmatpush.msra.mxu1 %v120_v40  ;;  %3994 = vmatmul.msk.f32.vlgmr.msrb.gmra.mxu0 %vm135_vm0, %v4713_v12 }
  0x33   :  { %3989 = vmatmul.msk.f32.gmra.mxu1 %vm135_vm0, %v4751_v22  ;;  %3992 = vmatmul.msk.f32.vlgmr.msra.gmra.mxu3 %vm135_vm0, %v4713_v12 }
  0x34   :  { %364 = vmatpush.msra.mxu1 %v119_v41  ;;  %386 = vmatpush.msrb.mxu2 %v124_v45 }
  0x35   :  { %409 = vmatpush.msrb.mxu3 %v128_v48 }
  0x36   :  { %387 = vmatpush.msrb.mxu2 %v123_v47 }
  0x37   :  { %410 = vmatpush.msrb.mxu3 %v127_v49 }
  0x39   :  { %3990 = vmatmul.msk.f32.vlgmr.msra.gmra.mxu2 %vm135_vm0, %v4713_v12 }
  0x3a   :  { %3995 = vmatmul.msk.f32.gmra.mxu0 %vm135_vm0, %v4751_v22 }
  0x3b   :  { %3993 = vmatmul.msk.f32.gmra.mxu3 %vm135_vm0, %v4751_v22  ;;  %3996 = vmatmul.msk.f32.vlgmr.msra.gmra.mxu1 %vm135_vm0, %v4713_v12 }
  0x41   :  { %3991 = vmatmul.msk.f32.gmra.mxu2 %vm135_vm0, %v4751_v22 }
  0x43   :  { %3997 = vmatmul.msk.f32.gmra.mxu1 %vm135_vm0, %v4751_v22  ;;  %4000 = vmatmul.msk.f32.vlgmr.msrb.gmra.mxu3 %vm135_vm0, %v4713_v12 }
  0x49   :  { %3998 = vmatmul.msk.f32.vlgmr.msrb.gmra.mxu2 %vm135_vm0, %v4713_v12 }
  0x4b   :  { %4001 = vmatmul.msk.f32.gmra.mxu3 %vm135_vm0, %v4751_v22 }
  0x51   :  { %3999 = vmatmul.msk.f32.gmra.mxu2 %vm135_vm0, %v4751_v22 }
  0x97   :  { %v182_v50 = vpop.f32.mrf.mxu1 }
  0x9c   :  { %v159_v51 = vpop.f32.mrf.mxu2 }
  0x9e   :  { %v228_v52 = vpop.f32.mrf.mxu3 }
  0xa0   :  { %v185_v53 = vpop.f32.mrf.mxu1 }
  0xa2   :  { %v251_v60 = vpop.f32.mrf.mxu0 }
  0xa4   :  { %v162_v54 = vpop.f32.mrf.mxu2 }
  0xa6   :  { %v231_v55 = vpop.f32.mrf.mxu3 }
  0xa8   :  { %v274_v56 = vpop.f32.mrf.mxu1 }
  0xac   :  { %v205_v57 = vpop.f32.mrf.mxu2 }
  0xae   :  { %v254_v58 = vpop.f32.mrf.mxu3 }
  0xaf   :  { %4002 = vmatpush.xpose.msk.msra.mxu0 %vm418_vm1, %v254_v58  ;;  %v343_v2 = vpop.f32.mrf.mxu0 }
  0xb0   :  { %v277_v59 = vpop.f32.mrf.mxu1 }
  0xb1   :  { %4006 = vmatpush.xpose.msk.msrb.mxu1 %vm418_vm1, %v277_v59 }
  0xb3   :  { %4003 = vmatpush.xpose.msk.msra.mxu0 %vm418_vm1, %v251_v60 }
  0xb4   :  { %v208_v61 = vpop.f32.mrf.mxu2 }
  0xb5   :  { %4007 = vmatpush.xpose.msk.msrb.mxu1 %vm418_vm1, %v274_v56 }
  0xb6   :  { %v320_v62 = vpop.f32.mrf.mxu3  ;;  %4004 = vmatmul.msk.f32.vlgmr.msra.gmra.mxu0 %vm418_vm1, %v159_v51 }
  0xb7   :  { %v346_v4 = vpop.f32.mrf.mxu0 }
  0xb8   :  { %4008 = vmatmul.msk.f32.vlgmr.msrb.gmra.mxu1 %vm418_vm1, %v182_v50  ;;  %v366_v3 = vpop.f32.mrf.mxu1  ;;  %684 = vmatpush.msrb.mxu0 %v346_v4 }
  0xba   :  { %685 = vmatpush.msrb.mxu0 %v343_v2 }
  0xbc   :  { %v297_v63 = vpop.f32.mrf.mxu2 }
  0xbe   :  { %v323_v0 = vpop.f32.mrf.mxu3  ;;  %4005 = vmatmul.msk.f32.gmra.mxu0 %vm418_vm1, %v162_v54 }
  0xbf   :  { %4014 = vmatpush.xpose.msk.msra.mxu3 %vm418_vm1, %v323_v0 }
  0xc0   :  { %4009 = vmatmul.msk.f32.gmra.mxu1 %vm418_vm1, %v185_v53  ;;  %v369_v5 = vpop.f32.mrf.mxu1 }
  0xc1   :  { %713 = vmatpush.msra.mxu1 %v369_v5 }
  0xc3   :  { %4015 = vmatpush.xpose.msk.msra.mxu3 %vm418_vm1, %v320_v62  ;;  %714 = vmatpush.msra.mxu1 %v366_v3 }
  0xc4   :  { %v300_v1 = vpop.f32.mrf.mxu2 }
  0xc5   :  { %4010 = vmatpush.xpose.msk.msra.mxu2 %vm418_vm1, %v300_v1 }
  0xc6   :  { %4016 = vmatmul.msk.f32.vlgmr.msra.gmra.mxu3 %vm418_vm1, %v228_v52  ;;  %v412_v7 = vpop.f32.mrf.mxu3 }
  0xc9   :  { %4011 = vmatpush.xpose.msk.msra.mxu2 %vm418_vm1, %v297_v63 }
  0xcc   :  { %4012 = vmatmul.msk.f32.vlgmr.msra.gmra.mxu2 %vm418_vm1, %v205_v57  ;;  %v389_v6 = vpop.f32.mrf.mxu2 }
  0xce   :  { %4017 = vmatmul.msk.f32.gmra.mxu3 %vm418_vm1, %v231_v55  ;;  %v415_v9 = vpop.f32.mrf.mxu3 }
  0xcf   :  { %771 = vmatpush.msrb.mxu3 %v415_v9 }
  0xd1   :  { %772 = vmatpush.msrb.mxu3 %v412_v7 }
  0xd4   :  { %4013 = vmatmul.msk.f32.gmra.mxu2 %vm418_vm1, %v208_v61  ;;  %v392_v8 = vpop.f32.mrf.mxu2 }
  0xd5   :  { %742 = vmatpush.msrb.mxu2 %v392_v8 }
  0xd7   :  { %743 = vmatpush.msrb.mxu2 %v389_v6 }
 0x133   :  { %v448_v17 = vpop.f32.mrf.mxu0 }
 0x134   :  { %v559_v34 = vmul.f32 0.35355338, %v448_v17 }
 0x135   :  { %v483_v10 = vpop.f32.mrf.mxu1 }
 0x136   :  { %v561_v11 = vmul.f32 0.35355338, %v483_v10  ;;  %v567_v39 = vadd.f32 %v559_v34, %v79_v13 }
 0x138   :  { %v569_v14 = vadd.f32 %v561_v11, %v79_v13  ;;  %v576_v43 = vsel %vm575_vm2, %v567_v39, -inf }
 0x13a   :  { %v582_v15 = vsel %vm575_vm2, %v569_v14, -inf }
 0x13b   :  { %583 = vmax.xlane.f32.xlu2 %v582_v15  ;;  %v451_v32 = vpop.f32.mrf.mxu0 }
 0x13c   :  { %v560_v35 = vmul.f32 0.35355338, %v451_v32 }
 0x13d   :  { %v486_v40 = vpop.f32.mrf.mxu1 }
 0x13e   :  { %v568_v38 = vadd.f32 %v560_v35, %v80_v23  ;;  %v562_v41 = vmul.f32 0.35355338, %v486_v40 }
 0x140   :  { %v579_v42 = vsel %vm575_vm2, %v568_v38, -inf  ;;  %v570_v44 = vadd.f32 %v562_v41, %v80_v23 }
 0x142   :  { %v585_v45 = vsel %vm575_vm2, %v570_v44, -inf }
 0x149   :  { %v553_v16 = vpop.f32.mrf.mxu3 }
 0x14a   :  { %v565_v26 = vmul.f32 0.35355338, %v553_v16 }
 0x14c   :  { %v573_v31 = vadd.f32 %v565_v26, %v79_v13 }
 0x14e   :  { %v594_v36 = vsel %vm575_vm2, %v573_v31, -inf }
 0x14f   :  { %v518_v18 = vpop.f32.mrf.mxu2 }
 0x150   :  { %v563_v19 = vmul.f32 0.35355338, %v518_v18 }
 0x151   :  { %v556_v20 = vpop.f32.mrf.mxu3 }
 0x152   :  { %v566_v21 = vmul.f32 0.35355338, %v556_v20  ;;  %v571_v24 = vadd.f32 %v563_v19, %v79_v13 }
 0x154   :  { %v574_v25 = vadd.f32 %v566_v21, %v80_v23  ;;  %v588_v27 = vsel %vm575_vm2, %v571_v24, -inf }
 0x155   :  { %589 = vmax.xlane.f32.xlu0 %v588_v27 }
 0x156   :  { %v597_v28 = vsel %vm575_vm2, %v574_v25, -inf }
 0x157   :  { %598 = vmax.xlane.f32.xlu2 %v597_v28  ;;  %v521_v29 = vpop.f32.mrf.mxu2 }
 0x158   :  { %v564_v30 = vmul.f32 0.35355338, %v521_v29 }
 0x15a   :  { %v572_v33 = vadd.f32 %v564_v30, %v80_v23 }
 0x15c   :  { %v591_v37 = vsel %vm575_vm2, %v572_v33, -inf }
 0x15d   :  { %595 = vmax.xlane.f32.xlu0 %v594_v36  ;;  %592 = vmax.xlane.f32.xlu1 %v591_v37 }
 0x165   :  { %580 = vmax.xlane.f32.xlu0 %v579_v42  ;;  %577 = vmax.xlane.f32.xlu1 %v576_v43 }
 0x16d   :  { %586 = vmax.xlane.f32.xlu1 %v585_v45 }
 0x1ae   :  { %v584_v47 = vpop.xlane.xlu2 %583 }
 0x1af   :  { %v602_v56 = vsub.f32 %v569_v14, %v584_v47 }
 0x1b1   :  { %v612_v61 = vmul.f32 1.442695, %v602_v56 }
 0x1c8   :  { %v590_v46 = vpop.xlane.xlu0 %589 }
 0x1c9   :  { %v604_v48 = vsub.f32 %v571_v24, %v590_v46 }
 0x1ca   :  { %v599_v52 = vpop.xlane.xlu2 %598 }
 0x1cb   :  { %v616_v49 = vmul.f32 1.442695, %v604_v48  ;;  %v607_v59 = vsub.f32 %v574_v25, %v599_v52  ;;  %v133_v48 = vld [vmem:[%s6075_s27 + $0x10] sm:$0xff] }
 0x1cc   :  { %859 = vmatpush.msra.mxu2 %v133_v48  ;;  %v980_v48 = vld [vmem:[%s6037_s10 + $0x28] sm:$0xff] }
 0x1cd   :  { %4364 = vpow2.f32 %v616_v49  ;;  %v622_v62 = vmul.f32 1.442695, %v607_v59  ;;  %v134_v49 = vld [vmem:[%s6075_s27 + $0x18] sm:$0xff] }
 0x1ce   :  { %888 = vmatpush.msra.mxu3 %v134_v49  ;;  %v984_v49 = vld [vmem:[%s6037_s10 + $0x48] sm:$0xff] }
 0x1d0   :  { %v596_v50 = vpop.xlane.xlu0 %595  ;;  %v593_v51 = vpop.xlane.xlu1 %592 }
 0x1d1   :  { %v606_v53 = vsub.f32 %v573_v31, %v596_v50  ;;  %v605_v54 = vsub.f32 %v572_v33, %v593_v51  ;;  %v131_v50 = vld [vmem:[%s6075_s27] sm:$0xff]  ;;  %v132_v51 = vld [vmem:[%s6075_s27 + $0x8] sm:$0xff] }
 0x1d2   :  { %801 = vmatpush.msra.mxu0 %v131_v50  ;;  %830 = vmatpush.msrb.mxu1 %v132_v51  ;;  %v988_v50 = vld [vmem:[%s6037_s10 + $0x68] sm:$0xff]  ;;  %v975_v51 = vld [vmem:[%s6037_s10] sm:$0xff] }
 0x1d3   :  { %v4365_v55 = vpop.eup %4364  ;;  %v620_v57 = vmul.f32 1.442695, %v606_v53  ;;  %v618_v58 = vmul.f32 1.442695, %v605_v54 }
 0x1d4   :  { %v636_v60 = vsel %vm575_vm2, %v4365_v55, 0.0 }
 0x1d5   :  { %4366 = vpow2.f32 %v620_v57  ;;  %637 = vadd.xlane.f32.xlu2 %v636_v60 }
 0x1d6   :  { %4368 = vpow2.f32 %v618_v58 }
 0x1d7   :  { %4370 = vpow2.f32 %v612_v61 }
 0x1d8   :  { %v578_v63 = vpop.xlane.xlu1 %577  ;;  %v581_v0 = vpop.xlane.xlu0 %580  ;;  %4372 = vpow2.f32 %v622_v62 }
 0x1d9   :  { %v600_v1 = vsub.f32 %v567_v39, %v578_v63  ;;  %v601_v5 = vsub.f32 %v568_v38, %v581_v0 }
 0x1db   :  { %v4367_v2 = vpop.eup %4366  ;;  %v608_v3 = vmul.f32 1.442695, %v600_v1  ;;  %v610_v8 = vmul.f32 1.442695, %v601_v5 }
 0x1dc   :  { %v4369_v4 = vpop.eup %4368  ;;  %v642_v6 = vsel %vm575_vm2, %v4367_v2, 0.0 }
 0x1dd   :  { %643 = vadd.xlane.f32.xlu0 %v642_v6  ;;  %v639_v7 = vsel %vm575_vm2, %v4369_v4, 0.0  ;;  %4374 = vpow2.f32 %v608_v3  ;;  %v4371_v10 = vpop.eup %4370 }
 0x1de   :  { %640 = vadd.xlane.f32.xlu1 %v639_v7  ;;  %v4373_v13 = vpop.eup %4372  ;;  %4376 = vpow2.f32 %v610_v8  ;;  %v630_v16 = vsel %vm575_vm2, %v4371_v10, 0.0 }
 0x1df   :  { %v645_v17 = vsel %vm575_vm2, %v4373_v13, 0.0 }
 0x1e0   :  { %v587_v9 = vpop.xlane.xlu1 %586 }
 0x1e1   :  { %v603_v11 = vsub.f32 %v570_v44, %v587_v9 }
 0x1e3   :  { %v614_v14 = vmul.f32 1.442695, %v603_v11  ;;  %v4375_v15 = vpop.eup %4374 }
 0x1e4   :  { %v624_v18 = vsel %vm575_vm2, %v4375_v15, 0.0  ;;  %v4377_v19 = vpop.eup %4376 }
 0x1e5   :  { %4378 = vpow2.f32 %v614_v14  ;;  %631 = vadd.xlane.f32.xlu0 %v630_v16  ;;  %625 = vadd.xlane.f32.xlu2 %v624_v18  ;;  %v627_v23 = vsel %vm575_vm2, %v4377_v19, 0.0 }
 0x1e6   :  { %646 = vadd.xlane.f32.xlu1 %v645_v17 }
 0x1eb   :  { %v4379_v20 = vpop.eup %4378 }
 0x1ec   :  { %v633_v21 = vsel %vm575_vm2, %v4379_v20, 0.0 }
 0x1ed   :  { %634 = vadd.xlane.f32.xlu0 %v633_v21  ;;  %628 = vadd.xlane.f32.xlu2 %v627_v23 }
 0x248   :  { %v638_v24 = vpop.xlane.xlu2 %637 }
 0x249   :  { %4380 = vrcp.f32 %v638_v24  ;;  %v4550_v24 = vmov 32.0  }
 0x24f   :  { %v4381_v25 = vpop.eup %4380 }
 0x250   :  { %v660_v26 = vmul.f32 %v4381_v25, %v4365_v55  ;;  %v644_v27 = vpop.xlane.xlu0 %643 }
 0x251   :  { %4382 = vrcp.f32 %v644_v27  ;;  %v641_v28 = vpop.xlane.xlu1 %640 }
 0x252   :  { %4384 = vrcp.f32 %v641_v28  ;;  %4022 = vmatmul.msk.f32.vlgmr.msrb.gmra.mxu2 %vm575_vm2, %v660_v26 }
 0x257   :  { %v4383_v29 = vpop.eup %4382 }
 0x258   :  { %v4385_v30 = vpop.eup %4384  ;;  %v662_v31 = vmul.f32 %v4383_v29, %v4367_v2  ;;  %v632_v32 = vpop.xlane.xlu0 %631 }
 0x259   :  { %4386 = vrcp.f32 %v632_v32  ;;  %v626_v33 = vpop.xlane.xlu2 %625  ;;  %v647_v34 = vpop.xlane.xlu1 %646  ;;  %v661_v35 = vmul.f32 %v4385_v30, %v4369_v4 }
 0x25a   :  { %4388 = vrcp.f32 %v626_v33  ;;  %4024 = vmatmul.msk.f32.vlgmr.msrb.gmra.mxu3 %vm575_vm2, %v662_v31 }
 0x25b   :  { %4390 = vrcp.f32 %v647_v34  ;;  %4023 = vmatmul.msk.f32.gmra.mxu2 %vm575_vm2, %v661_v35 }
 0x25f   :  { %v4387_v36 = vpop.eup %4386 }
 0x260   :  { %v4389_v37 = vpop.eup %4388  ;;  %v658_v38 = vmul.f32 %v4387_v36, %v4371_v10  ;;  %v635_v39 = vpop.xlane.xlu0 %634 }
 0x261   :  { %v4391_v40 = vpop.eup %4390  ;;  %v656_v41 = vmul.f32 %v4389_v37, %v4375_v15  ;;  %v629_v42 = vpop.xlane.xlu2 %628  ;;  %4392 = vrcp.f32 %v635_v39  ;;  %v978_v39 = vld [vmem:[%s6037_s10 + $0x18] sm:$0xff] }
 0x262   :  { %4394 = vrcp.f32 %v629_v42  ;;  %4020 = vmatmul.msk.f32.vlgmr.msra.gmra.mxu1 %vm575_vm2, %v658_v38  ;;  %v663_v43 = vmul.f32 %v4391_v40, %v4373_v13  ;;  %v982_v40 = vld [vmem:[%s6037_s10 + $0x38] sm:$0xff] }
 0x263   :  { %4018 = vmatmul.msk.f32.vlgmr.msrb.gmra.mxu0 %vm575_vm2, %v656_v41  ;;  %4396 = vrcp.f32 %v4550_v24  ;;  %v986_v41 = vld [vmem:[%s6037_s10 + $0x58] sm:$0xff]  ;;  %1068 = vmatpush.msra.mxu1 %v982_v40 }
 0x264   :  { %4025 = vmatmul.msk.f32.gmra.mxu3 %vm575_vm2, %v663_v43  ;;  %1045 = vmatpush.msrb.mxu0 %v978_v39  ;;  %v990_v42 = vld [vmem:[%s6037_s10 + $0x78] sm:$0xff]  ;;  %v977_v43 = vld [vmem:[%s6037_s10 + $0x10] sm:$0xff] }
 0x265   :  { %1091 = vmatpush.msrb.mxu2 %v986_v41  ;;  %1114 = vmatpush.msrb.mxu3 %v990_v42  ;;  %v1017_v39 = vld [vmem:[%s6039_s12 + $0x50] sm:$0xff]  ;;  %v1010_v40 = vld [vmem:[%s6039_s12 + $0x18] sm:$0xff]  ;;  %v1016_v42 = vld [vmem:[%s6039_s12 + $0x48] sm:$0xff] }
 0x266   :  { %1046 = vmatpush.msrb.mxu0 %v977_v43  ;;  %v1014_v41 = vld [vmem:[%s6039_s12 + $0x38] sm:$0xff]  ;;  %v1009_v43 = vld [vmem:[%s6039_s12 + $0x10] sm:$0xff] }
 0x267   :  { %v4393_v44 = vpop.eup %4392 }
 0x268   :  { %v4395_v45 = vpop.eup %4394  ;;  %v659_v46 = vmul.f32 %v4393_v44, %v4379_v20  ;;  %v981_v44 = vld [vmem:[%s6037_s10 + $0x30] sm:$0xff] }
 0x269   :  { %v657_v47 = vmul.f32 %v4395_v45, %v4377_v19  ;;  %v985_v45 = vld [vmem:[%s6037_s10 + $0x50] sm:$0xff]  ;;  %1069 = vmatpush.msra.mxu1 %v981_v44 }
 0x26a   :  { %4021 = vmatmul.msk.f32.gmra.mxu1 %vm575_vm2, %v659_v46  ;;  %v989_v46 = vld [vmem:[%s6037_s10 + $0x70] sm:$0xff]  ;;  %1092 = vmatpush.msrb.mxu2 %v985_v45  ;;  %v1015_v45 = vld [vmem:[%s6039_s12 + $0x40] sm:$0xff] }
 0x26b   :  { %4019 = vmatmul.msk.f32.gmra.mxu0 %vm575_vm2, %v657_v47  ;;  %1115 = vmatpush.msrb.mxu3 %v989_v46  ;;  %v976_v47 = vld [vmem:[%s6037_s10 + $0x8] sm:$0xff]  ;;  %v1013_v44 = vld [vmem:[%s6039_s12 + $0x30] sm:$0xff] }
 0x26c   :  { %1047 = vmatpush.msrb.mxu0 %v976_v47  ;;  %1070 = vmatpush.msra.mxu1 %v980_v48  ;;  %v1008_v46 = vld [vmem:[%s6039_s12 + $0x8] sm:$0xff]  ;;  %v1022_v47 = vld [vmem:[%s6039_s12 + $0x78] sm:$0xff] }
 0x26d   :  { %1093 = vmatpush.msrb.mxu2 %v984_v49  ;;  %1116 = vmatpush.msrb.mxu3 %v988_v50  ;;  %v1012_v48 = vld [vmem:[%s6039_s12 + $0x28] sm:$0xff]  ;;  %v1007_v49 = vld [vmem:[%s6039_s12] sm:$0xff] }
 0x26e   :  { %1048 = vmatpush.msrb.mxu0 %v975_v51  ;;  %v1011_v50 = vld [vmem:[%s6039_s12 + $0x20] sm:$0xff]  ;;  %v1021_v51 = vld [vmem:[%s6039_s12 + $0x70] sm:$0xff] }
 0x2d5   :  { %v745_v52 = vpop.f32.mrf.mxu2 }
 0x2d6   :  { %4030 = vmatmul.msk.f32.vlgmr.msra.gmra.mxu2 %vm418_vm1, %v745_v52  ;;  %v979_v52 = vld [vmem:[%s6037_s10 + $0x20] sm:$0xff] }
 0x2d7   :  { %1071 = vmatpush.msra.mxu1 %v979_v52  ;;  %v1020_v52 = vld [vmem:[%s6039_s12 + $0x68] sm:$0xff] }
 0x2dd   :  { %v774_v53 = vpop.f32.mrf.mxu3 }
 0x2de   :  { %v748_v54 = vpop.f32.mrf.mxu2  ;;  %4032 = vmatmul.msk.f32.vlgmr.msra.gmra.mxu3 %vm418_vm1, %v774_v53  ;;  %v983_v53 = vld [vmem:[%s6037_s10 + $0x40] sm:$0xff] }
 0x2df   :  { %4031 = vmatmul.msk.f32.gmra.mxu2 %vm418_vm1, %v748_v54  ;;  %v716_v55 = vpop.f32.mrf.mxu1  ;;  %v987_v54 = vld [vmem:[%s6037_s10 + $0x60] sm:$0xff] }
 0x2e0   :  { %v687_v56 = vpop.f32.mrf.mxu0  ;;  %4028 = vmatmul.msk.f32.vlgmr.msrb.gmra.mxu1 %vm418_vm1, %v716_v55  ;;  %1094 = vmatpush.msrb.mxu2 %v983_v53  ;;  %v1019_v53 = vld [vmem:[%s6039_s12 + $0x60] sm:$0xff] }
 0x2e1   :  { %4026 = vmatmul.msk.f32.vlgmr.msra.gmra.mxu0 %vm418_vm1, %v687_v56  ;;  %1117 = vmatpush.msrb.mxu3 %v987_v54 }
 0x2e7   :  { %v777_v57 = vpop.f32.mrf.mxu3  ;;  %v719_v58 = vpop.f32.mrf.mxu1 }
 0x2e8   :  { %4033 = vmatmul.msk.f32.gmra.mxu3 %vm418_vm1, %v777_v57  ;;  %v690_v59 = vpop.f32.mrf.mxu0  ;;  %4029 = vmatmul.msk.f32.gmra.mxu1 %vm418_vm1, %v719_v58  ;;  %v994_v58 = vld [vmem:[%s6038_s11 + $0x18] sm:$0xff] }
 0x2e9   :  { %4027 = vmatmul.msk.f32.gmra.mxu0 %vm418_vm1, %v690_v59  ;;  %v998_v59 = vld [vmem:[%s6038_s11 + $0x38] sm:$0xff] }
 0x2ea   :  { %1143 = vmatpush.msra.mxu0 %v994_v58  ;;  %1166 = vmatpush.msrb.mxu1 %v998_v59 }
 0x359   :  { %v861_v60 = vpop.f32.mrf.mxu2 }
 0x35a   :  { %v899_v2 = vsel %vm135_vm0, %v861_v60, 0.0  ;;  %v1002_v60 = vld [vmem:[%s6038_s11 + $0x58] sm:$0xff] }
 0x35b   :  { %1189 = vmatpush.msra.mxu2 %v1002_v60 }
 0x35d   :  { %v832_v61 = vpop.f32.mrf.mxu1 }
 0x35e   :  { %v803_v62 = vpop.f32.mrf.mxu0  ;;  %v897_v63 = vsel %vm135_vm0, %v832_v61, 0.0  ;;  %v1006_v61 = vld [vmem:[%s6038_s11 + $0x78] sm:$0xff] }
 0x35f   :  { %v896_v0 = vsel %vm135_vm0, %v803_v62, 0.0  ;;  %v993_v62 = vld [vmem:[%s6038_s11 + $0x10] sm:$0xff]  ;;  %1212 = vmatpush.msra.mxu3 %v1006_v61 }
 0x360   :  { %v898_v1 = vadd.f32 %v897_v63, %v896_v0  ;;  %v997_v63 = vld [vmem:[%s6038_s11 + $0x30] sm:$0xff]  ;;  %1144 = vmatpush.msra.mxu0 %v993_v62 }
 0x361   :  { %v890_v3 = vpop.f32.mrf.mxu3  ;;  %1167 = vmatpush.msrb.mxu1 %v997_v63 }
 0x362   :  { %v900_v4 = vadd.f32 %v899_v2, %v898_v1  ;;  %v901_v5 = vsel %vm135_vm0, %v890_v3, 0.0  ;;  %v864_v8 = vpop.f32.mrf.mxu2  ;;  %v1001_v1 = vld [vmem:[%s6038_s11 + $0x50] sm:$0xff]  ;;  %v992_v3 = vld [vmem:[%s6038_s11 + $0x8] sm:$0xff] }
 0x363   :  { %v906_v16 = vsel %vm135_vm0, %v864_v8, 0.0  ;;  %v1005_v2 = vld [vmem:[%s6038_s11 + $0x70] sm:$0xff]  ;;  %1190 = vmatpush.msra.mxu2 %v1001_v1  ;;  %1145 = vmatpush.msra.mxu0 %v992_v3 }
 0x364   :  { %v902_v6 = vadd.f32 %v901_v5, %v900_v4  ;;  %v996_v5 = vld [vmem:[%s6038_s11 + $0x28] sm:$0xff]  ;;  %1213 = vmatpush.msra.mxu3 %v1005_v2 }
 0x365   :  { %v835_v7 = vpop.f32.mrf.mxu1  ;;  %1168 = vmatpush.msrb.mxu1 %v996_v5 }
 0x366   :  { %v806_v9 = vpop.f32.mrf.mxu0  ;;  %v904_v10 = vsel %vm135_vm0, %v835_v7, 0.0  ;;  %v910_v11 = vadd.f32 %v902_v6, %v4713_v12  ;;  %v4397_v12 = vpop.eup %4396  ;;  %v1000_v6 = vld [vmem:[%s6038_s11 + $0x48] sm:$0xff] }
 0x367   :  { %v903_v13 = vsel %vm135_vm0, %v806_v9, 0.0  ;;  %v921_v25 = vmul.f32 32.0, %v4397_v12  ;;  %vm925_vm3 = vweird.f32 %v4397_v12  ;;  %v1004_v7 = vld [vmem:[%s6038_s11 + $0x68] sm:$0xff]  ;;  %v991_v9 = vld [vmem:[%s6038_s11] sm:$0xff]  ;;  %1191 = vmatpush.msra.mxu2 %v1000_v6 }
 0x368   :  { %v905_v14 = vadd.f32 %v904_v10, %v903_v13  ;;  %v914_v15 = vsel %vm135_vm0, %v910_v11, 0.0  ;;  %v995_v10 = vld [vmem:[%s6038_s11 + $0x20] sm:$0xff]  ;;  %1214 = vmatpush.msra.mxu3 %v1004_v7  ;;  %1146 = vmatpush.msra.mxu0 %v991_v9 }
 0x369   :  { %915 = vadd.xlane.f32.xlu1 %v914_v15  ;;  %v922_v26 = vsub.f32 1.0, %v921_v25  ;;  %v1003_v15 = vld [vmem:[%s6038_s11 + $0x60] sm:$0xff]  ;;  %1169 = vmatpush.msrb.mxu1 %v995_v10 }
 0x36a   :  { %v907_v17 = vadd.f32 %v906_v16, %v905_v14  ;;  %v999_v14 = vld [vmem:[%s6038_s11 + $0x40] sm:$0xff]  ;;  %1215 = vmatpush.msra.mxu3 %v1003_v15 }
 0x36b   :  { %v893_v18 = vpop.f32.mrf.mxu3  ;;  %v923_v27 = vmul.f32 %v4397_v12, %v922_v26  ;;  %1192 = vmatpush.msra.mxu2 %v999_v14  ;;  %v4349_v26 = vld [vmem:[%s6036_s9] ss:$0 sm:$0xff] }
 0x36c   :  { %v908_v19 = vsel %vm135_vm0, %v893_v18, 0.0 }
 0x36d   :  { %v909_v20 = vadd.f32 %v908_v19, %v907_v17  ;;  %v924_v28 = vadd.f32 %v4397_v12, %v923_v27 }
 0x36f   :  { %v911_v21 = vadd.f32 %v909_v20, %v4751_v22  ;;  %v4954_v29 = vsel %vm925_vm3, %v4397_v12, %v924_v28 }
 0x371   :  { %v917_v23 = vsel %vm135_vm0, %v911_v21, 0.0 }
 0x372   :  { %918 = vadd.xlane.f32.xlu2 %v917_v23 }
 0x3dc   :  { %v916_v30 = vpop.xlane.xlu1 %915 }
 0x3dd   :  { %v927_v31 = vmul.f32 %v4954_v29, %v916_v30 }
 0x3df   :  { %v4957_v32 = vsub.f32 %v910_v11, %v927_v31 }
 0x3e1   :  { %v931_v22 = vmul.f32 %v4957_v32, %v4957_v32 }
 0x3e3   :  { %v933_v33 = vsel %vm135_vm0, %v931_v22, 0.0 }
 0x3e4   :  { %934 = vadd.xlane.f32.xlu0 %v933_v33 }
 0x3e5   :  { %v919_v34 = vpop.xlane.xlu2 %918 }
 0x3e6   :  { %v928_v35 = vmul.f32 %v4954_v29, %v919_v34 }
 0x3e8   :  { %v4963_v36 = vsub.f32 %v911_v21, %v928_v35  ;;  %v4348_v21 = vld [vmem:[%s6035_s8] ss:$0 sm:$0xff] }
 0x3ea   :  { %v932_v37 = vmul.f32 %v4963_v36, %v4963_v36 }
 0x3ec   :  { %v936_v38 = vsel %vm135_vm0, %v932_v37, 0.0  ;;  %v77_v37 = vld [vmem:[%s6076_s5] sm:$0xff] }
 0x3ed   :  { %937 = vadd.xlane.f32.xlu1 %v936_v38  ;;  %v1018_v38 = vld [vmem:[%s6039_s12 + $0x58] sm:$0xff] }
 0x457   :  { %v935_v55 = vpop.xlane.xlu0 %934 }
 0x458   :  { %v939_v56 = vmul.f32 %v935_v55, %v4954_v29 }
 0x45a   :  { %v941_v57 = vadd.f32 1e-05, %v939_v56 }
 0x45c   :  { %4398 = vrsqrt.f32 %v941_v57  ;;  %vm949_vm5 = vweird.f32 %v941_v57 }
 0x460   :  { %v938_v0 = vpop.xlane.xlu1 %937 }
 0x461   :  { %v940_v4 = vmul.f32 %v938_v0, %v4954_v29 }
 0x462   :  { %v4399_v8 = vpop.eup %4398 }
 0x463   :  { %v944_v11 = vmul.f32 %v4399_v8, %v941_v57  ;;  %v942_v13 = vadd.f32 1e-05, %v940_v4  ;;  %vm950_vm4 = vweird.f32 %v4399_v8 }
 0x464   :  { %vm951_vm6 = vmor %vm949_vm5, %vm950_vm4 }
 0x465   :  { %v945_v16 = vmul.f32 %v4399_v8, %v944_v11  ;;  %4400 = vrsqrt.f32 %v942_v13  ;;  %vm959_vm8 = vweird.f32 %v942_v13 }
 0x467   :  { %v946_v17 = vmul.f32 0.5, %v945_v16 }
 0x469   :  { %v947_v18 = vsub.f32 1.5, %v946_v17 }
 0x46b   :  { %v4401_v19 = vpop.eup %4400  ;;  %v948_v20 = vmul.f32 %v4399_v8, %v947_v18 }
 0x46c   :  { %v954_v23 = vmul.f32 %v4401_v19, %v942_v13  ;;  %vm960_vm7 = vweird.f32 %v4401_v19 }
 0x46d   :  { %v952_v24 = vsel %vm951_vm6, %v4399_v8, %v948_v20  ;;  %vm961_vm9 = vmor %vm959_vm8, %vm960_vm7 }
 0x46e   :  { %v963_v12 = vmul.f32 %v952_v24, %v4957_v32  ;;  %v955_v25 = vmul.f32 %v4401_v19, %v954_v23 }
 0x470   :  { %v968_v27 = vmul.f32 %v4348_v21, %v963_v12  ;;  %v956_v28 = vmul.f32 0.5, %v955_v25 }
 0x472   :  { %v957_v30 = vsub.f32 1.5, %v956_v28  ;;  %v5073_v31 = vadd.f32 %v4349_v26, %v968_v27 }
 0x474   :  { %v958_v22 = vmul.f32 %v4401_v19, %v957_v30  ;;  %4034 = vmatmul.msk.f32.vlgmr.msrb.gmra.mxu0 %vm135_vm0, %v5073_v31  ;;  %4036 = vmatmul.msk.f32.vlgmr.msra.gmra.mxu1 %vm135_vm0, %v5073_v31 }
 0x475   :  { %4038 = vmatmul.msk.f32.vlgmr.msrb.gmra.mxu2 %vm135_vm0, %v5073_v31  ;;  %4040 = vmatmul.msk.f32.vlgmr.msrb.gmra.mxu3 %vm135_vm0, %v5073_v31 }
 0x476   :  { %v962_v32 = vsel %vm961_vm9, %v4401_v19, %v958_v22  ;;  %1281 = vmatpush.msrb.mxu2 %v1018_v38  ;;  %1235 = vmatpush.msrb.mxu0 %v1010_v40 }
 0x477   :  { %v964_v33 = vmul.f32 %v962_v32, %v4963_v36  ;;  %v78_v36 = vld [vmem:[%s6076_s5 + $0x8] sm:$0xff]  ;;  %1258 = vmatpush.msra.mxu1 %v1014_v41  ;;  %1304 = vmatpush.msrb.mxu3 %v1022_v47 }
 0x478   :  { %1282 = vmatpush.msrb.mxu2 %v1017_v39  ;;  %1236 = vmatpush.msrb.mxu0 %v1009_v43 }
 0x479   :  { %v969_v34 = vmul.f32 %v4348_v21, %v964_v33  ;;  %1259 = vmatpush.msra.mxu1 %v1013_v44  ;;  %1305 = vmatpush.msrb.mxu3 %v1021_v51  ;;  %v81_v21 = vld [vmem:[%s6077_s0] sm:$0xff] }
 0x47a   :  { %1283 = vmatpush.msrb.mxu2 %v1016_v42  ;;  %1237 = vmatpush.msrb.mxu0 %v1008_v46 }
 0x47b   :  { %v5084_v35 = vadd.f32 %v4349_v26, %v969_v34  ;;  %1260 = vmatpush.msra.mxu1 %v1012_v48  ;;  %1306 = vmatpush.msrb.mxu3 %v1020_v52  ;;  %v82_v34 = vld [vmem:[%s6077_s0 + $0x8] sm:$0xff] }
 0x47c   :  { %1284 = vmatpush.msrb.mxu2 %v1015_v45  ;;  %1238 = vmatpush.msrb.mxu0 %v1007_v49 }
 0x47d   :  { %4035 = vmatmul.msk.f32.gmra.mxu0 %vm135_vm0, %v5084_v35  ;;  %4037 = vmatmul.msk.f32.gmra.mxu1 %vm135_vm0, %v5084_v35 }
 0x47e   :  { %4039 = vmatmul.msk.f32.gmra.mxu2 %vm135_vm0, %v5084_v35  ;;  %4041 = vmatmul.msk.f32.gmra.mxu3 %vm135_vm0, %v5084_v35 }
 0x47f   :  { %1261 = vmatpush.msra.mxu1 %v1011_v50  ;;  %1307 = vmatpush.msrb.mxu3 %v1019_v53 }
 0x485   :  { %4042 = vmatmul.msk.f32.vlgmr.msra.gmra.mxu0 %vm135_vm0, %v77_v37  ;;  %4044 = vmatmul.msk.f32.vlgmr.msrb.gmra.mxu1 %vm135_vm0, %v77_v37 }
 0x486   :  { %4046 = vmatmul.msk.f32.vlgmr.msra.gmra.mxu2 %vm135_vm0, %v77_v37  ;;  %4048 = vmatmul.msk.f32.vlgmr.msra.gmra.mxu3 %vm135_vm0, %v77_v37 }
 0x48d   :  { %4043 = vmatmul.msk.f32.gmra.mxu0 %vm135_vm0, %v78_v36  ;;  %4045 = vmatmul.msk.f32.gmra.mxu1 %vm135_vm0, %v78_v36 }
 0x48e   :  { %4047 = vmatmul.msk.f32.gmra.mxu2 %vm135_vm0, %v78_v36  ;;  %4049 = vmatmul.msk.f32.gmra.mxu3 %vm135_vm0, %v78_v36 }
 0x495   :  { %4050 = vmatmul.msk.f32.vlgmr.msrb.gmra.mxu0 %vm135_vm0, %v77_v37  ;;  %4052 = vmatmul.msk.f32.vlgmr.msra.gmra.mxu1 %vm135_vm0, %v77_v37 }
 0x496   :  { %4054 = vmatmul.msk.f32.vlgmr.msrb.gmra.mxu2 %vm135_vm0, %v77_v37  ;;  %4056 = vmatmul.msk.f32.vlgmr.msrb.gmra.mxu3 %vm135_vm0, %v77_v37 }
 0x49d   :  { %4051 = vmatmul.msk.f32.gmra.mxu0 %vm135_vm0, %v78_v36  ;;  %4053 = vmatmul.msk.f32.gmra.mxu1 %vm135_vm0, %v78_v36 }
 0x49e   :  { %4055 = vmatmul.msk.f32.gmra.mxu2 %vm135_vm0, %v78_v36  ;;  %4057 = vmatmul.msk.f32.gmra.mxu3 %vm135_vm0, %v78_v36 }
 0x4f1   :  { %v1050_v54 = vpop.f32.mrf.mxu0  ;;  %v1073_v55 = vpop.f32.mrf.mxu1 }
 0x4f8   :  { %v1096_v56 = vpop.f32.mrf.mxu2  ;;  %v1119_v57 = vpop.f32.mrf.mxu3 }
 0x4fa   :  { %v1053_v58 = vpop.f32.mrf.mxu0  ;;  %v1076_v59 = vpop.f32.mrf.mxu1 }
 0x501   :  { %v1099_v60 = vpop.f32.mrf.mxu2  ;;  %v1122_v61 = vpop.f32.mrf.mxu3 }
 0x502   :  { %v1148_v62 = vpop.f32.mrf.mxu0  ;;  %v1171_v63 = vpop.f32.mrf.mxu1 }
 0x509   :  { %v1194_v0 = vpop.f32.mrf.mxu2  ;;  %v1217_v1 = vpop.f32.mrf.mxu3 }
 0x50a   :  { %v1151_v2 = vpop.f32.mrf.mxu0  ;;  %v1174_v3 = vpop.f32.mrf.mxu1 }
 0x50b   :  { %4058 = vmatpush.xpose.msk.msra.mxu0 %vm418_vm1, %v1151_v2  ;;  %4062 = vmatpush.xpose.msk.msrb.mxu1 %vm418_vm1, %v1174_v3 }
 0x50f   :  { %4059 = vmatpush.xpose.msk.msra.mxu0 %vm418_vm1, %v1148_v62  ;;  %4063 = vmatpush.xpose.msk.msrb.mxu1 %vm418_vm1, %v1171_v63 }
 0x511   :  { %v1197_v4 = vpop.f32.mrf.mxu2  ;;  %v1220_v5 = vpop.f32.mrf.mxu3 }
 0x512   :  { %4066 = vmatpush.xpose.msk.msra.mxu2 %vm418_vm1, %v1197_v4  ;;  %4070 = vmatpush.xpose.msk.msra.mxu3 %vm418_vm1, %v1220_v5  ;;  %v1240_v6 = vpop.f32.mrf.mxu0  ;;  %v1263_v7 = vpop.f32.mrf.mxu1 }
 0x513   :  { %4060 = vmatmul.msk.f32.vlgmr.msra.gmra.mxu0 %vm418_vm1, %v1050_v54  ;;  %4064 = vmatmul.msk.f32.vlgmr.msrb.gmra.mxu1 %vm418_vm1, %v1073_v55 }
 0x516   :  { %4067 = vmatpush.xpose.msk.msra.mxu2 %vm418_vm1, %v1194_v0  ;;  %4071 = vmatpush.xpose.msk.msra.mxu3 %vm418_vm1, %v1217_v1 }
 0x519   :  { %4068 = vmatmul.msk.f32.vlgmr.msra.gmra.mxu2 %vm418_vm1, %v1096_v56  ;;  %4072 = vmatmul.msk.f32.vlgmr.msra.gmra.mxu3 %vm418_vm1, %v1119_v57  ;;  %v1286_v8 = vpop.f32.mrf.mxu2  ;;  %v1309_v13 = vpop.f32.mrf.mxu3 }
 0x51a   :  { %v1243_v9 = vpop.f32.mrf.mxu0  ;;  %v1266_v10 = vpop.f32.mrf.mxu1 }
 0x51b   :  { %4061 = vmatmul.msk.f32.gmra.mxu0 %vm418_vm1, %v1053_v58  ;;  %4065 = vmatmul.msk.f32.gmra.mxu1 %vm418_vm1, %v1076_v59 }
 0x51c   :  { %1579 = vmatpush.msrb.mxu0 %v1243_v9  ;;  %1608 = vmatpush.msra.mxu1 %v1266_v10 }
 0x51e   :  { %1580 = vmatpush.msrb.mxu0 %v1240_v6  ;;  %1609 = vmatpush.msra.mxu1 %v1263_v7 }
 0x521   :  { %4069 = vmatmul.msk.f32.gmra.mxu2 %vm418_vm1, %v1099_v60  ;;  %4073 = vmatmul.msk.f32.gmra.mxu3 %vm418_vm1, %v1122_v61  ;;  %v1289_v11 = vpop.f32.mrf.mxu2  ;;  %v1312_v14 = vpop.f32.mrf.mxu3 }
 0x522   :  { %1637 = vmatpush.msrb.mxu2 %v1289_v11  ;;  %1666 = vmatpush.msrb.mxu3 %v1312_v14 }
 0x524   :  { %1638 = vmatpush.msrb.mxu2 %v1286_v8  ;;  %1667 = vmatpush.msrb.mxu3 %v1309_v13 }
 0x590   :  { %v1379_v15 = vpop.f32.mrf.mxu1  ;;  %v1344_v18 = vpop.f32.mrf.mxu0 }
 0x591   :  { %v1457_v12 = vmul.f32 0.35355338, %v1379_v15  ;;  %v1455_v27 = vmul.f32 0.35355338, %v1344_v18 }
 0x593   :  { %v1465_v22 = vadd.f32 %v1457_v12, %v81_v21  ;;  %v1463_v37 = vadd.f32 %v1455_v27, %v81_v21 }
 0x595   :  { %v1477_v42 = vsel %vm575_vm2, %v1465_v22, -inf  ;;  %v1471_v44 = vsel %vm575_vm2, %v1463_v37, -inf }
 0x598   :  { %v1382_v32 = vpop.f32.mrf.mxu1  ;;  %v1347_v36 = vpop.f32.mrf.mxu0 }
 0x599   :  { %v1458_v39 = vmul.f32 0.35355338, %v1382_v32  ;;  %v1456_v43 = vmul.f32 0.35355338, %v1347_v36 }
 0x59b   :  { %v1466_v46 = vadd.f32 %v1458_v39, %v82_v34  ;;  %v1464_v47 = vadd.f32 %v1456_v43, %v82_v34 }
 0x59c   :  { %v1414_v16 = vpop.f32.mrf.mxu2  ;;  %v1449_v17 = vpop.f32.mrf.mxu3 }
 0x59d   :  { %v1459_v19 = vmul.f32 0.35355338, %v1414_v16  ;;  %v1461_v20 = vmul.f32 0.35355338, %v1449_v17  ;;  %v1480_v49 = vsel %vm575_vm2, %v1466_v46, -inf  ;;  %v1474_v50 = vsel %vm575_vm2, %v1464_v47, -inf }
 0x59f   :  { %v1469_v23 = vadd.f32 %v1461_v20, %v81_v21  ;;  %v1467_v24 = vadd.f32 %v1459_v19, %v81_v21 }
 0x5a1   :  { %v1489_v25 = vsel %vm575_vm2, %v1469_v23, -inf  ;;  %v1483_v26 = vsel %vm575_vm2, %v1467_v24, -inf }
 0x5a2   :  { %1490 = vmax.xlane.f32.xlu0 %v1489_v25  ;;  %1484 = vmax.xlane.f32.xlu2 %v1483_v26 }
 0x5a4   :  { %v1417_v28 = vpop.f32.mrf.mxu2  ;;  %v1452_v33 = vpop.f32.mrf.mxu3 }
 0x5a5   :  { %v1460_v30 = vmul.f32 0.35355338, %v1417_v28  ;;  %v1462_v40 = vmul.f32 0.35355338, %v1452_v33 }
 0x5a7   :  { %v1468_v38 = vadd.f32 %v1460_v30, %v82_v34  ;;  %v1470_v45 = vadd.f32 %v1462_v40, %v82_v34 }
 0x5a9   :  { %v1486_v41 = vsel %vm575_vm2, %v1468_v38, -inf  ;;  %v1492_v48 = vsel %vm575_vm2, %v1470_v45, -inf }
 0x5aa   :  { %1487 = vmax.xlane.f32.xlu1 %v1486_v41  ;;  %1478 = vmax.xlane.f32.xlu0 %v1477_v42 }
 0x5ab   :  { %1472 = vmax.xlane.f32.xlu2 %v1471_v44 }
 0x5b2   :  { %1493 = vmax.xlane.f32.xlu1 %v1492_v48  ;;  %1481 = vmax.xlane.f32.xlu0 %v1480_v49 }
 0x5b3   :  { %1475 = vmax.xlane.f32.xlu2 %v1474_v50 }
 0x615   :  { %v1491_v51 = vpop.xlane.xlu0 %1490  ;;  %v1485_v52 = vpop.xlane.xlu2 %1484 }
 0x616   :  { %v1501_v53 = vsub.f32 %v1469_v23, %v1491_v51  ;;  %v1499_v54 = vsub.f32 %v1467_v24, %v1485_v52 }
 0x618   :  { %v1515_v55 = vmul.f32 1.442695, %v1501_v53  ;;  %v1511_v56 = vmul.f32 1.442695, %v1499_v54  ;;  %v1025_v54 = vld [vmem:[%s6040_s13 + $0x10] sm:$0xff] }
 0x619   :  { %1754 = vmatpush.msra.mxu2 %v1025_v54  ;;  %v1914_v54 = vld [vmem:[%s6045_s18 + $0x60] sm:$0xff] }
 0x61a   :  { %4402 = vpow2.f32 %v1515_v55  ;;  %v1026_v55 = vld [vmem:[%s6040_s13 + $0x18] sm:$0xff] }
 0x61b   :  { %4404 = vpow2.f32 %v1511_v56  ;;  %1783 = vmatpush.msra.mxu3 %v1026_v55  ;;  %v1023_v56 = vld [vmem:[%s6040_s13] sm:$0xff] }
 0x61c   :  { %1696 = vmatpush.msra.mxu0 %v1023_v56 }
 0x61d   :  { %v1488_v57 = vpop.xlane.xlu1 %1487  ;;  %v1479_v58 = vpop.xlane.xlu0 %1478 }
 0x61e   :  { %v1500_v59 = vsub.f32 %v1468_v38, %v1488_v57  ;;  %v1497_v60 = vsub.f32 %v1465_v22, %v1479_v58  ;;  %v1473_v61 = vpop.xlane.xlu2 %1472  ;;  %v1024_v57 = vld [vmem:[%s6040_s13 + $0x8] sm:$0xff] }
 0x61f   :  { %v1495_v62 = vsub.f32 %v1463_v37, %v1473_v61  ;;  %1725 = vmatpush.msrb.mxu1 %v1024_v57  ;;  %v1913_v57 = vld [vmem:[%s6045_s18 + $0x58] sm:$0xff] }
 0x620   :  { %v4403_v63 = vpop.eup %4402  ;;  %v1513_v0 = vmul.f32 1.442695, %v1500_v59  ;;  %v1507_v1 = vmul.f32 1.442695, %v1497_v60 }
 0x621   :  { %v4405_v2 = vpop.eup %4404  ;;  %v1503_v3 = vmul.f32 1.442695, %v1495_v62  ;;  %v1537_v4 = vsel %vm575_vm2, %v4403_v63, 0.0 }
 0x622   :  { %4406 = vpow2.f32 %v1513_v0  ;;  %v1531_v5 = vsel %vm575_vm2, %v4405_v2, 0.0  ;;  %1538 = vadd.xlane.f32.xlu2 %v1537_v4 }
 0x623   :  { %4408 = vpow2.f32 %v1507_v1  ;;  %1532 = vadd.xlane.f32.xlu1 %v1531_v5 }
 0x624   :  { %4410 = vpow2.f32 %v1503_v3 }
 0x625   :  { %v1494_v6 = vpop.xlane.xlu1 %1493  ;;  %v1482_v7 = vpop.xlane.xlu0 %1481 }
 0x626   :  { %v1502_v8 = vsub.f32 %v1470_v45, %v1494_v6  ;;  %v1498_v9 = vsub.f32 %v1466_v46, %v1482_v7  ;;  %v1476_v10 = vpop.xlane.xlu2 %1475 }
 0x627   :  { %v1496_v11 = vsub.f32 %v1464_v47, %v1476_v10 }
 0x628   :  { %v4407_v13 = vpop.eup %4406  ;;  %v1517_v14 = vmul.f32 1.442695, %v1502_v8  ;;  %v1509_v15 = vmul.f32 1.442695, %v1498_v9 }
 0x629   :  { %v4409_v16 = vpop.eup %4408  ;;  %v1505_v17 = vmul.f32 1.442695, %v1496_v11  ;;  %v1534_v18 = vsel %vm575_vm2, %v4407_v13, 0.0 }
 0x62a   :  { %v4411_v19 = vpop.eup %4410  ;;  %4412 = vpow2.f32 %v1517_v14  ;;  %1535 = vadd.xlane.f32.xlu0 %v1534_v18  ;;  %v1525_v20 = vsel %vm575_vm2, %v4409_v16, 0.0 }
 0x62b   :  { %4414 = vpow2.f32 %v1509_v15  ;;  %v1519_v21 = vsel %vm575_vm2, %v4411_v19, 0.0  ;;  %1526 = vadd.xlane.f32.xlu2 %v1525_v20 }
 0x62c   :  { %4416 = vpow2.f32 %v1505_v17  ;;  %1520 = vadd.xlane.f32.xlu1 %v1519_v21 }
 0x630   :  { %v4413_v23 = vpop.eup %4412 }
 0x631   :  { %v4415_v24 = vpop.eup %4414  ;;  %v1540_v12 = vsel %vm575_vm2, %v4413_v23, 0.0 }
 0x632   :  { %v4417_v25 = vpop.eup %4416  ;;  %1541 = vadd.xlane.f32.xlu0 %v1540_v12  ;;  %v1528_v26 = vsel %vm575_vm2, %v4415_v24, 0.0 }
 0x633   :  { %1529 = vadd.xlane.f32.xlu2 %v1528_v26  ;;  %v1522_v27 = vsel %vm575_vm2, %v4417_v25, 0.0 }
 0x634   :  { %1523 = vadd.xlane.f32.xlu1 %v1522_v27 }
 0x695   :  { %v1539_v28 = vpop.xlane.xlu2 %1538 }
 0x696   :  { %v1533_v30 = vpop.xlane.xlu1 %1532  ;;  %4418 = vrcp.f32 %v1539_v28 }
 0x697   :  { %4420 = vrcp.f32 %v1533_v30 }
 0x69c   :  { %v4419_v22 = vpop.eup %4418 }
 0x69d   :  { %v4421_v32 = vpop.eup %4420  ;;  %v1557_v33 = vmul.f32 %v4419_v22, %v4403_v63  ;;  %v1536_v34 = vpop.xlane.xlu0 %1535 }
 0x69e   :  { %v1555_v37 = vmul.f32 %v4421_v32, %v4405_v2  ;;  %4422 = vrcp.f32 %v1536_v34  ;;  %v1527_v36 = vpop.xlane.xlu2 %1526 }
 0x69f   :  { %v1521_v38 = vpop.xlane.xlu1 %1520  ;;  %4424 = vrcp.f32 %v1527_v36  ;;  %4080 = vmatmul.msk.f32.vlgmr.msrb.gmra.mxu3 %vm575_vm2, %v1557_v33 }
 0x6a0   :  { %4426 = vrcp.f32 %v1521_v38  ;;  %4078 = vmatmul.msk.f32.vlgmr.msrb.gmra.mxu2 %vm575_vm2, %v1555_v37 }
 0x6a4   :  { %v4423_v39 = vpop.eup %4422 }
 0x6a5   :  { %v4425_v40 = vpop.eup %4424  ;;  %v1542_v41 = vpop.xlane.xlu0 %1541  ;;  %v1556_v42 = vmul.f32 %v4423_v39, %v4407_v13  ;;  %v1866_v39 = vld [vmem:[%s6043_s16 + $0x18] sm:$0xff] }
 0x6a6   :  { %v4427_v43 = vpop.eup %4426  ;;  %v1553_v44 = vmul.f32 %v4425_v40, %v4409_v16  ;;  %4428 = vrcp.f32 %v1542_v41  ;;  %v1530_v45 = vpop.xlane.xlu2 %1529  ;;  %v1865_v40 = vld [vmem:[%s6043_s16 + $0x10] sm:$0xff]  ;;  %v1864_v41 = vld [vmem:[%s6043_s16 + $0x8] sm:$0xff] }
 0x6a7   :  { %v1551_v46 = vmul.f32 %v4427_v43, %v4411_v19  ;;  %v1524_v47 = vpop.xlane.xlu1 %1523  ;;  %4430 = vrcp.f32 %v1530_v45 }
 0x6a8   :  { %4432 = vrcp.f32 %v1524_v47  ;;  %4076 = vmatmul.msk.f32.vlgmr.msra.gmra.mxu1 %vm575_vm2, %v1553_v44  ;;  %4079 = vmatmul.msk.f32.gmra.mxu2 %vm575_vm2, %v1556_v42  ;;  %v1863_v42 = vld [vmem:[%s6043_s16] sm:$0xff]  ;;  %v1916_v47 = vld [vmem:[%s6045_s18 + $0x70] sm:$0xff] }
 0x6a9   :  { %4074 = vmatmul.msk.f32.vlgmr.msrb.gmra.mxu0 %vm575_vm2, %v1551_v46  ;;  %v1917_v46 = vld [vmem:[%s6045_s18 + $0x78] sm:$0xff] }
 0x6aa   :  { %1889 = vmatpush.msrb.mxu0 %v1866_v39  ;;  %1922 = vmatpush.msra.mxu1 %v1917_v46 }
 0x6ac   :  { %v4429_v48 = vpop.eup %4428  ;;  %1890 = vmatpush.msrb.mxu0 %v1865_v40  ;;  %1923 = vmatpush.msra.mxu1 %v1916_v47 }
 0x6ad   :  { %v4431_v49 = vpop.eup %4430  ;;  %v1558_v50 = vmul.f32 %v4429_v48, %v4413_v23 }
 0x6ae   :  { %v4433_v51 = vpop.eup %4432  ;;  %v1554_v52 = vmul.f32 %v4431_v49, %v4415_v24  ;;  %1891 = vmatpush.msrb.mxu0 %v1864_v41 }
 0x6af   :  { %v1552_v53 = vmul.f32 %v4433_v51, %v4417_v25  ;;  %4081 = vmatmul.msk.f32.gmra.mxu3 %vm575_vm2, %v1558_v50  ;;  %v1915_v50 = vld [vmem:[%s6045_s18 + $0x68] sm:$0xff] }
 0x6b0   :  { %4077 = vmatmul.msk.f32.gmra.mxu1 %vm575_vm2, %v1554_v52  ;;  %1892 = vmatpush.msrb.mxu0 %v1863_v42 }
 0x6b1   :  { %4075 = vmatmul.msk.f32.gmra.mxu0 %vm575_vm2, %v1552_v53  ;;  %1924 = vmatpush.msra.mxu1 %v1915_v50  ;;  %v4095_v50 = vld [vmem:[%s6070_s24 + $0x98] sm:$0xff] }
 0x6b2   :  { %2077 = vmatpush.msrb.mxu2 %v4095_v50  ;;  %v4125_v50 = vld [vmem:[%s6073_s2 + $0x88] sm:$0xff] }
 0x6b3   :  { %1925 = vmatpush.msra.mxu1 %v1914_v54  ;;  %v4094_v54 = vld [vmem:[%s6070_s24 + $0x90] sm:$0xff] }
 0x6b4   :  { %2078 = vmatpush.msrb.mxu2 %v4094_v54  ;;  %v4124_v54 = vld [vmem:[%s6073_s2 + $0x80] sm:$0xff] }
 0x6b5   :  { %1926 = vmatpush.msra.mxu1 %v1913_v57  ;;  %v4118_v57 = vld [vmem:[%s6072_s30 + $0xd0] sm:$0xff] }
 0x722   :  { %v1669_v58 = vpop.f32.mrf.mxu3 }
 0x723   :  { %v1640_v59 = vpop.f32.mrf.mxu2  ;;  %4088 = vmatmul.msk.f32.vlgmr.msra.gmra.mxu3 %vm418_vm1, %v1669_v58 }
 0x724   :  { %4086 = vmatmul.msk.f32.vlgmr.msra.gmra.mxu2 %vm418_vm1, %v1640_v59  ;;  %v1912_v59 = vld [vmem:[%s6045_s18 + $0x50] sm:$0xff] }
 0x725   :  { %v1611_v60 = vpop.f32.mrf.mxu1  ;;  %1927 = vmatpush.msra.mxu1 %v1912_v59  ;;  %v4097_v59 = vld [vmem:[%s6070_s24 + $0xa8] sm:$0xff] }
 0x726   :  { %v1582_v61 = vpop.f32.mrf.mxu0  ;;  %4084 = vmatmul.msk.f32.vlgmr.msrb.gmra.mxu1 %vm418_vm1, %v1611_v60 }
 0x727   :  { %4082 = vmatmul.msk.f32.vlgmr.msra.gmra.mxu0 %vm418_vm1, %v1582_v61  ;;  %v1911_v61 = vld [vmem:[%s6045_s18 + $0x48] sm:$0xff] }
 0x728   :  { %1928 = vmatpush.msra.mxu1 %v1911_v61  ;;  %v4117_v61 = vld [vmem:[%s6072_s30 + $0xc8] sm:$0xff] }
 0x72b   :  { %v1643_v62 = vpop.f32.mrf.mxu2 }
 0x72c   :  { %4087 = vmatmul.msk.f32.gmra.mxu2 %vm418_vm1, %v1643_v62  ;;  %v4350_v62 = vld [vmem:[%s6041_s14] ss:$0 sm:$0xff] }
 0x72d   :  { %v1614_v63 = vpop.f32.mrf.mxu1 }
 0x72e   :  { %v1585_v0 = vpop.f32.mrf.mxu0  ;;  %4085 = vmatmul.msk.f32.gmra.mxu1 %vm418_vm1, %v1614_v63 }
 0x72f   :  { %4083 = vmatmul.msk.f32.gmra.mxu0 %vm418_vm1, %v1585_v0  ;;  %v1910_v0 = vld [vmem:[%s6045_s18 + $0x40] sm:$0xff] }
 0x730   :  { %1929 = vmatpush.msra.mxu1 %v1910_v0  ;;  %v4100_v0 = vld [vmem:[%s6070_s24 + $0xc0] sm:$0xff] }
 0x732   :  { %v1672_v1 = vpop.f32.mrf.mxu3 }
 0x733   :  { %4089 = vmatmul.msk.f32.gmra.mxu3 %vm418_vm1, %v1672_v1 }
 0x7a3   :  { %v1727_v2 = vpop.f32.mrf.mxu1 }
 0x7a4   :  { %v1698_v3 = vpop.f32.mrf.mxu0  ;;  %v1792_v4 = vsel %vm135_vm0, %v1727_v2, 0.0  ;;  %v4351_v2 = vld [vmem:[%s6042_s15] ss:$0 sm:$0xff] }
 0x7a5   :  { %v1791_v5 = vsel %vm135_vm0, %v1698_v3, 0.0 }
 0x7a6   :  { %v1793_v6 = vadd.f32 %v1792_v4, %v1791_v5  ;;  %v1785_v8 = vpop.f32.mrf.mxu3  ;;  %v1909_v4 = vld [vmem:[%s6045_s18 + $0x38] sm:$0xff] }
 0x7a7   :  { %v1756_v7 = vpop.f32.mrf.mxu2  ;;  %v1796_v11 = vsel %vm135_vm0, %v1785_v8, 0.0  ;;  %1930 = vmatpush.msra.mxu1 %v1909_v4 }
 0x7a8   :  { %v1794_v9 = vsel %vm135_vm0, %v1756_v7, 0.0  ;;  %v1908_v7 = vld [vmem:[%s6045_s18 + $0x30] sm:$0xff] }
 0x7a9   :  { %v1795_v10 = vadd.f32 %v1794_v9, %v1793_v6  ;;  %1931 = vmatpush.msra.mxu1 %v1908_v7  ;;  %v4111_v7 = vld [vmem:[%s6072_s30 + $0x98] sm:$0xff] }
 0x7ab   :  { %v1797_v13 = vadd.f32 %v1796_v11, %v1795_v10  ;;  %v1730_v16 = vpop.f32.mrf.mxu1  ;;  %v1907_v10 = vld [vmem:[%s6045_s18 + $0x28] sm:$0xff] }
 0x7ac   :  { %v1701_v15 = vpop.f32.mrf.mxu0  ;;  %v1799_v20 = vsel %vm135_vm0, %v1730_v16, 0.0  ;;  %1932 = vmatpush.msra.mxu1 %v1907_v10  ;;  %v4135_v10 = vld [vmem:[%s6073_s2 + $0xd8] sm:$0xff] }
 0x7ad   :  { %v1805_v14 = vadd.f32 %v1797_v13, %v5073_v31  ;;  %v1798_v19 = vsel %vm135_vm0, %v1701_v15, 0.0  ;;  %v1906_v13 = vld [vmem:[%s6045_s18 + $0x20] sm:$0xff]  ;;  %v1905_v15 = vld [vmem:[%s6045_s18 + $0x18] sm:$0xff] }
 0x7ae   :  { %v1800_v23 = vadd.f32 %v1799_v20, %v1798_v19  ;;  %1933 = vmatpush.msra.mxu1 %v1906_v13  ;;  %v4110_v13 = vld [vmem:[%s6072_s30 + $0x90] sm:$0xff] }
 0x7af   :  { %v1809_v17 = vsel %vm135_vm0, %v1805_v14, 0.0  ;;  %v1759_v18 = vpop.f32.mrf.mxu2 }
 0x7b0   :  { %1810 = vadd.xlane.f32.xlu0 %v1809_v17  ;;  %v1801_v21 = vsel %vm135_vm0, %v1759_v18, 0.0  ;;  %1934 = vmatpush.msra.mxu1 %v1905_v15  ;;  %v4114_v15 = vld [vmem:[%s6072_s30 + $0xb0] sm:$0xff] }
 0x7b1   :  { %v1802_v24 = vadd.f32 %v1801_v21, %v1800_v23  ;;  %v1904_v21 = vld [vmem:[%s6045_s18 + $0x10] sm:$0xff]  ;;  %v1903_v23 = vld [vmem:[%s6045_s18 + $0x8] sm:$0xff] }
 0x7b2   :  { %1935 = vmatpush.msra.mxu1 %v1904_v21  ;;  %v4113_v21 = vld [vmem:[%s6072_s30 + $0xa8] sm:$0xff] }
 0x7b4   :  { %1936 = vmatpush.msra.mxu1 %v1903_v23  ;;  %v4133_v23 = vld [vmem:[%s6073_s2 + $0xc8] sm:$0xff] }
 0x7b6   :  { %v1788_v12 = vpop.f32.mrf.mxu3 }
 0x7b7   :  { %v1803_v25 = vsel %vm135_vm0, %v1788_v12, 0.0  ;;  %v4352_v12 = vld [vmem:[%s6044_s17] ss:$0 sm:$0xff] }
 0x7b8   :  { %v1804_v26 = vadd.f32 %v1803_v25, %v1802_v24  ;;  %v1902_v24 = vld [vmem:[%s6045_s18] sm:$0xff] }
 0x7b9   :  { %1937 = vmatpush.msra.mxu1 %v1902_v24  ;;  %v4104_v24 = vld [vmem:[%s6070_s24 + $0xe0] sm:$0xff] }
 0x7ba   :  { %v1806_v31 = vadd.f32 %v1804_v26, %v5084_v35 }
 0x7bc   :  { %v1812_v27 = vsel %vm135_vm0, %v1806_v31, 0.0 }
 0x7bd   :  { %1813 = vadd.xlane.f32.xlu1 %v1812_v27 }
 0x823   :  { %v1811_v28 = vpop.xlane.xlu0 %1810 }
 0x824   :  { %v1815_v30 = vmul.f32 %v1811_v28, %v4954_v29 }
 0x826   :  { %v1817_v22 = vsub.f32 %v1805_v14, %v1815_v30 }
 0x828   :  { %v1819_v32 = vmul.f32 %v1817_v22, %v1817_v22 }
 0x82a   :  { %v1821_v33 = vsel %vm135_vm0, %v1819_v32, 0.0 }
 0x82b   :  { %1822 = vadd.xlane.f32.xlu2 %v1821_v33 }
 0x830   :  { %v1814_v34 = vpop.xlane.xlu1 %1813 }
 0x831   :  { %v1816_v37 = vmul.f32 %v1814_v34, %v4954_v29 }
 0x833   :  { %v5245_v36 = vsub.f32 %v1806_v31, %v1816_v37 }
 0x835   :  { %v1820_v38 = vmul.f32 %v5245_v36, %v5245_v36 }
 0x837   :  { %v1824_v35 = vsel %vm135_vm0, %v1820_v38, 0.0 }
 0x838   :  { %1825 = vadd.xlane.f32.xlu0 %v1824_v35 }
 0x89e   :  { %v1823_v43 = vpop.xlane.xlu2 %1822 }
 0x89f   :  { %v1827_v44 = vmul.f32 %v1823_v43, %v4954_v29 }
 0x8a1   :  { %v1829_v45 = vadd.f32 1e-05, %v1827_v44 }
 0x8a3   :  { %4434 = vrsqrt.f32 %v1829_v45  ;;  %vm1837_vm11 = vweird.f32 %v1829_v45 }
 0x8a9   :  { %v4435_v48 = vpop.eup %4434 }
 0x8aa   :  { %v1832_v49 = vmul.f32 %v4435_v48, %v1829_v45  ;;  %vm1838_vm10 = vweird.f32 %v4435_v48 }
 0x8ab   :  { %v1826_v51 = vpop.xlane.xlu0 %1825  ;;  %vm1839_vm12 = vmor %vm1837_vm11, %vm1838_vm10 }
 0x8ac   :  { %v1833_v52 = vmul.f32 %v4435_v48, %v1832_v49  ;;  %v1828_v53 = vmul.f32 %v1826_v51, %v4954_v29  ;;  %v4099_v51 = vld [vmem:[%s6070_s24 + $0xb8] sm:$0xff] }
 0x8ad   :  { %2100 = vmatpush.msrb.mxu3 %v4099_v51 }
 0x8ae   :  { %v1834_v55 = vmul.f32 0.5, %v1833_v52  ;;  %v1830_v56 = vadd.f32 1e-05, %v1828_v53  ;;  %v4103_v52 = vld [vmem:[%s6070_s24 + $0xd8] sm:$0xff] }
 0x8af   :  { %v4119_v53 = vld [vmem:[%s6072_s30 + $0xd8] sm:$0xff]  ;;  %2123 = vmatpush.msra.mxu0 %v4103_v52  ;;  %v4129_v52 = vld [vmem:[%s6073_s2 + $0xa8] sm:$0xff] }
 0x8b0   :  { %v1835_v58 = vsub.f32 1.5, %v1834_v55  ;;  %4436 = vrsqrt.f32 %v1830_v56  ;;  %vm1847_vm14 = vweird.f32 %v1830_v56  ;;  %2215 = vmatpush.msrb.mxu1 %v4119_v53  ;;  %v4098_v55 = vld [vmem:[%s6070_s24 + $0xb0] sm:$0xff]  ;;  %v4120_v53 = vld [vmem:[%s6072_s30 + $0xe0] sm:$0xff] }
 0x8b1   :  { %2101 = vmatpush.msrb.mxu3 %v4098_v55 }
 0x8b2   :  { %v1836_v60 = vmul.f32 %v4435_v48, %v1835_v58  ;;  %2216 = vmatpush.msrb.mxu1 %v4118_v57  ;;  %v4093_v58 = vld [vmem:[%s6070_s24 + $0x88] sm:$0xff] }
 0x8b3   :  { %2079 = vmatpush.msrb.mxu2 %v4093_v58  ;;  %2102 = vmatpush.msrb.mxu3 %v4097_v59 }
 0x8b4   :  { %v1840_v63 = vsel %vm1839_vm12, %v4435_v48, %v1836_v60  ;;  %v4101_v60 = vld [vmem:[%s6070_s24 + $0xc8] sm:$0xff]  ;;  %2217 = vmatpush.msrb.mxu1 %v4117_v61 }
 0x8b5   :  { %v1851_v1 = vmul.f32 %v1840_v63, %v1817_v22  ;;  %v4353_v22 = vld [vmem:[%s6046_s19] ss:$0 sm:$0xff]  ;;  %v4137_v61 = vld [vmem:[%s6073_s2 + $0xe8] sm:$0xff] }
 0x8b6   :  { %v4437_v3 = vpop.eup %4436  ;;  %v4096_v63 = vld [vmem:[%s6070_s24 + $0xa0] sm:$0xff] }
 0x8b7   :  { %v1856_v5 = vmul.f32 %v4350_v62, %v1851_v1  ;;  %v1842_v6 = vmul.f32 %v4437_v3, %v1830_v56  ;;  %vm1848_vm13 = vweird.f32 %v4437_v3  ;;  %v4102_v56 = vld [vmem:[%s6070_s24 + $0xd0] sm:$0xff]  ;;  %2103 = vmatpush.msrb.mxu3 %v4096_v63  ;;  %v4116_v1 = vld [vmem:[%s6072_s30 + $0xc0] sm:$0xff] }
 0x8b8   :  { %vm1849_vm15 = vmor %vm1847_vm14, %vm1848_vm13  ;;  %2124 = vmatpush.msra.mxu0 %v4102_v56  ;;  %2218 = vmatpush.msrb.mxu1 %v4116_v1  ;;  %v4128_v56 = vld [vmem:[%s6073_s2 + $0xa0] sm:$0xff] }
 0x8b9   :  { %v1843_v8 = vmul.f32 %v4437_v3, %v1842_v6  ;;  %v1861_v9 = vadd.f32 %v4351_v2, %v1856_v5  ;;  %v4107_v6 = vld [vmem:[%s6070_s24 + $0xf8] sm:$0xff]  ;;  %2169 = vmatpush.msra.mxu3 %v4111_v7 }
 0x8ba   :  { %2125 = vmatpush.msra.mxu0 %v4101_v60  ;;  %v4138_v60 = vld [vmem:[%s6073_s2 + $0xf0] sm:$0xff] }
 0x8bb   :  { %v1844_v11 = vmul.f32 0.5, %v1843_v8  ;;  %4090 = vmatmul.msk.f32.vlgmr.msrb.gmra.mxu0 %vm135_vm0, %v1861_v9  ;;  %v4115_v8 = vld [vmem:[%s6072_s30 + $0xb8] sm:$0xff]  ;;  %2170 = vmatpush.msra.mxu3 %v4110_v13 }
 0x8bc   :  { %2126 = vmatpush.msra.mxu0 %v4100_v0 }
 0x8bd   :  { %v1845_v14 = vsub.f32 1.5, %v1844_v11  ;;  %v4106_v11 = vld [vmem:[%s6070_s24 + $0xf0] sm:$0xff] }
 0x8be   :  { %2192 = vmatpush.msrb.mxu0 %v4115_v8 }
 0x8bf   :  { %v1846_v16 = vmul.f32 %v4437_v3, %v1845_v14 }
 0x8c0   :  { %2193 = vmatpush.msrb.mxu0 %v4114_v15 }
 0x8c1   :  { %v1850_v17 = vsel %vm1849_vm15, %v4437_v3, %v1846_v16  ;;  %v4134_v16 = vld [vmem:[%s6073_s2 + $0xd0] sm:$0xff] }
 0x8c2   :  { %v1852_v18 = vmul.f32 %v1850_v17, %v5245_v36  ;;  %2194 = vmatpush.msrb.mxu0 %v4113_v21 }
 0x8c4   :  { %v1857_v19 = vmul.f32 %v4350_v62, %v1852_v18  ;;  %v4092_v62 = vld [vmem:[%s6070_s24 + $0x80] sm:$0xff] }
 0x8c5   :  { %2080 = vmatpush.msrb.mxu2 %v4092_v62  ;;  %v4136_v62 = vld [vmem:[%s6073_s2 + $0xe0] sm:$0xff] }
 0x8c6   :  { %v1862_v20 = vadd.f32 %v4351_v2, %v1857_v19  ;;  %v4105_v19 = vld [vmem:[%s6070_s24 + $0xe8] sm:$0xff] }
 0x8c7   :  { %2146 = vmatpush.msra.mxu2 %v4107_v6 }
 0x8c8   :  { %4091 = vmatmul.msk.f32.gmra.mxu0 %vm135_vm0, %v1862_v20 }
 0x8c9   :  { %2147 = vmatpush.msra.mxu2 %v4106_v11 }
 0x8cb   :  { %2148 = vmatpush.msra.mxu2 %v4105_v19 }
 0x8cd   :  { %2149 = vmatpush.msra.mxu2 %v4104_v24 }
 0x938   :  { %v1894_v25 = vpop.f32.mrf.mxu0 }
 0x939   :  { %v1895_v26 = vadd.f32 %v4352_v12, %v1894_v25 }
 0x93b   :  { %v1900_v31 = vmax.f32 %v1895_v26, 0.0 }
 0x93d   :  { %1938 = vmatmul.f32.vlgmr.msra.gmra.mxu1 %v1900_v31  ;;  %v4112_v31 = vld [vmem:[%s6072_s30 + $0xa0] sm:$0xff] }
 0x93e   :  { %2307 = vmatpush.msra.mxu1 %v4135_v10  ;;  %2195 = vmatpush.msrb.mxu0 %v4112_v31  ;;  %v4518_v31 = vld [vmem:[%s6074_s25] sm:$0xff] }
 0x940   :  { %2308 = vmatpush.msra.mxu1 %v4134_v16 }
 0x942   :  { %2309 = vmatpush.msra.mxu1 %v4133_v23 }
 0x945   :  { %v1897_v27 = vpop.f32.mrf.mxu0 }
 0x946   :  { %v1898_v28 = vadd.f32 %v4352_v12, %v1897_v27  ;;  %v4108_v12 = vld [vmem:[%s6072_s30 + $0x80] sm:$0xff] }
 0x947   :  { %v4132_v27 = vld [vmem:[%s6073_s2 + $0xc0] sm:$0xff] }
 0x948   :  { %v1901_v30 = vmax.f32 %v1898_v28, 0.0  ;;  %2310 = vmatpush.msra.mxu1 %v4132_v27 }
 0x94a   :  { %1941 = vmatmul.f32.gmra.mxu1 %v1901_v30 }
 0x9ba   :  { %v1939_v32 = vpop.f32.mrf.mxu1 }
 0x9bb   :  { %v1940_v33 = vadd.f32 %v4353_v22, %v1939_v32 }
 0x9bd   :  { %v1945_v34 = vadd.f32 %v1940_v33, %v1861_v9  ;;  %v4355_v33 = vld [vmem:[%s6048_s21] ss:$0 sm:$0xff] }
 0x9bf   :  { %v1949_v37 = vsel %vm135_vm0, %v1945_v34, 0.0 }
 0x9c0   :  { %1950 = vadd.xlane.f32.xlu1 %v1949_v37 }
 0x9c7   :  { %v1942_v36 = vpop.f32.mrf.mxu1 }
 0x9c8   :  { %v1943_v38 = vadd.f32 %v4353_v22, %v1942_v36  ;;  %v4354_v22 = vld [vmem:[%s6047_s20] ss:$0 sm:$0xff] }
 0x9ca   :  { %v1946_v35 = vadd.f32 %v1943_v38, %v1862_v20  ;;  %v4109_v20 = vld [vmem:[%s6072_s30 + $0x88] sm:$0xff] }
 0x9cb   :  { %2171 = vmatpush.msra.mxu3 %v4109_v20 }
 0x9cc   :  { %v1952_v39 = vsel %vm135_vm0, %v1946_v35, 0.0 }
 0x9cd   :  { %1953 = vadd.xlane.f32.xlu2 %v1952_v39  ;;  %2172 = vmatpush.msra.mxu3 %v4108_v12 }
 0xa33   :  { %v1951_v40 = vpop.xlane.xlu1 %1950 }
 0xa34   :  { %v1955_v41 = vmul.f32 %v1951_v40, %v4954_v29  ;;  %v4123_v40 = vld [vmem:[%s6072_s30 + $0xf8] sm:$0xff] }
 0xa36   :  { %v5330_v42 = vsub.f32 %v1945_v34, %v1955_v41  ;;  %v4127_v41 = vld [vmem:[%s6073_s2 + $0x98] sm:$0xff] }
 0xa38   :  { %v1959_v43 = vmul.f32 %v5330_v42, %v5330_v42 }
 0xa3a   :  { %v1961_v44 = vsel %vm135_vm0, %v1959_v43, 0.0 }
 0xa3b   :  { %1962 = vadd.xlane.f32.xlu0 %v1961_v44  ;;  %v4122_v44 = vld [vmem:[%s6072_s30 + $0xf0] sm:$0xff] }
 0xa40   :  { %v1954_v45 = vpop.xlane.xlu2 %1953 }
 0xa41   :  { %v1956_v46 = vmul.f32 %v1954_v45, %v4954_v29  ;;  %v4126_v45 = vld [vmem:[%s6073_s2 + $0x90] sm:$0xff] }
 0xa43   :  { %v5336_v47 = vsub.f32 %v1946_v35, %v1956_v46 }
 0xa45   :  { %v1960_v48 = vmul.f32 %v5336_v47, %v5336_v47 }
 0xa47   :  { %v1964_v49 = vsel %vm135_vm0, %v1960_v48, 0.0  ;;  %v4130_v48 = vld [vmem:[%s6073_s2 + $0xb0] sm:$0xff] }
 0xa48   :  { %1965 = vadd.xlane.f32.xlu1 %v1964_v49  ;;  %v4121_v49 = vld [vmem:[%s6072_s30 + $0xe8] sm:$0xff] }
 0xaae   :  { %v1963_v2 = vpop.xlane.xlu0 %1962 }
 0xaaf   :  { %v1967_v3 = vmul.f32 %v1963_v2, %v4954_v29 }
 0xab1   :  { %v1969_v4 = vadd.f32 1e-05, %v1967_v3 }
 0xab3   :  { %4438 = vrsqrt.f32 %v1969_v4  ;;  %vm1977_vm4 = vweird.f32 %v1969_v4 }
 0xab9   :  { %v4439_v5 = vpop.eup %4438 }
 0xaba   :  { %v1972_v9 = vmul.f32 %v4439_v5, %v1969_v4  ;;  %vm1978_vm3 = vweird.f32 %v4439_v5 }
 0xabb   :  { %v1966_v14 = vpop.xlane.xlu1 %1965  ;;  %vm1979_vm5 = vmor %vm1977_vm4, %vm1978_vm3 }
 0xabc   :  { %v1973_v17 = vmul.f32 %v4439_v5, %v1972_v9  ;;  %v1968_v18 = vmul.f32 %v1966_v14, %v4954_v29 }
 0xabe   :  { %v1974_v25 = vmul.f32 0.5, %v1973_v17  ;;  %v1970_v26 = vadd.f32 1e-05, %v1968_v18 }
 0xac0   :  { %v1975_v28 = vsub.f32 1.5, %v1974_v25  ;;  %4440 = vrsqrt.f32 %v1970_v26  ;;  %vm1987_vm7 = vweird.f32 %v1970_v26 }
 0xac2   :  { %v1976_v30 = vmul.f32 %v4439_v5, %v1975_v28 }
 0xac4   :  { %v1980_v32 = vsel %vm1979_vm5, %v4439_v5, %v1976_v30 }
 0xac5   :  { %v1991_v34 = vmul.f32 %v1980_v32, %v5330_v42  ;;  %v4131_v42 = vld [vmem:[%s6073_s2 + $0xb8] sm:$0xff] }
 0xac6   :  { %v4441_v37 = vpop.eup %4440 }
 0xac7   :  { %v1996_v36 = vmul.f32 %v4354_v22, %v1991_v34  ;;  %v1982_v38 = vmul.f32 %v4441_v37, %v1970_v26  ;;  %vm1988_vm6 = vweird.f32 %v4441_v37 }
 0xac8   :  { %vm1989_vm8 = vmor %vm1987_vm7, %vm1988_vm6 }
 0xac9   :  { %v5446_v35 = vadd.f32 %v4355_v33, %v1996_v36  ;;  %v1983_v39 = vmul.f32 %v4441_v37, %v1982_v38  ;;  %v4519_v36 = vld [vmem:[%s6074_s25 + $0x8] sm:$0xff] }
 0xacb   :  { %v1984_v43 = vmul.f32 0.5, %v1983_v39  ;;  %4144 = vmatmul.msk.f32.vlgmr.msrb.gmra.mxu2 %vm135_vm0, %v5446_v35  ;;  %4146 = vmatmul.msk.f32.vlgmr.msrb.gmra.mxu3 %vm135_vm0, %v5446_v35 }
 0xacc   :  { %4148 = vmatmul.msk.f32.vlgmr.msra.gmra.mxu0 %vm135_vm0, %v5446_v35  ;;  %4156 = vmatmul.msk.f32.vlgmr.msrb.gmra.mxu1 %vm135_vm0, %v5446_v35 }
 0xacd   :  { %v1985_v46 = vsub.f32 1.5, %v1984_v43  ;;  %2238 = vmatpush.msrb.mxu2 %v4123_v40  ;;  %2261 = vmatpush.msrb.mxu3 %v4127_v41 }
 0xace   :  { %2284 = vmatpush.msra.mxu0 %v4131_v42 }
 0xacf   :  { %v1986_v51 = vmul.f32 %v4441_v37, %v1985_v46  ;;  %2239 = vmatpush.msrb.mxu2 %v4122_v44  ;;  %2262 = vmatpush.msrb.mxu3 %v4126_v45 }
 0xad0   :  { %2285 = vmatpush.msra.mxu0 %v4130_v48 }
 0xad1   :  { %v1990_v55 = vsel %vm1989_vm8, %v4441_v37, %v1986_v51  ;;  %2240 = vmatpush.msrb.mxu2 %v4121_v49  ;;  %2263 = vmatpush.msrb.mxu3 %v4125_v50 }
 0xad2   :  { %v1992_v57 = vmul.f32 %v1990_v55, %v5336_v47  ;;  %2286 = vmatpush.msra.mxu0 %v4129_v52  ;;  %v4139_v47 = vld [vmem:[%s6073_s2 + $0xf8] sm:$0xff] }
 0xad3   :  { %2241 = vmatpush.msrb.mxu2 %v4120_v53  ;;  %2264 = vmatpush.msrb.mxu3 %v4124_v54 }
 0xad4   :  { %v1997_v58 = vmul.f32 %v4354_v22, %v1992_v57  ;;  %2287 = vmatpush.msra.mxu0 %v4128_v56 }
 0xad6   :  { %v5493_v59 = vadd.f32 %v4355_v33, %v1997_v58 }
 0xad8   :  { %4145 = vmatmul.msk.f32.gmra.mxu2 %vm135_vm0, %v5493_v59  ;;  %4147 = vmatmul.msk.f32.gmra.mxu3 %vm135_vm0, %v5493_v59 }
 0xad9   :  { %4149 = vmatmul.msk.f32.gmra.mxu0 %vm135_vm0, %v5493_v59  ;;  %4157 = vmatmul.msk.f32.gmra.mxu1 %vm135_vm0, %v5493_v59 }
 0xae0   :  { %4150 = vmatmul.msk.f32.vlgmr.msra.gmra.mxu2 %vm135_vm0, %v5446_v35  ;;  %4152 = vmatmul.msk.f32.vlgmr.msra.gmra.mxu3 %vm135_vm0, %v5446_v35 }
 0xae1   :  { %4154 = vmatmul.msk.f32.vlgmr.msrb.gmra.mxu0 %vm135_vm0, %v5446_v35  ;;  %4164 = vmatmul.msk.f32.vlgmr.msra.gmra.mxu1 %vm135_vm0, %v5446_v35 }
 0xae2   :  { %2330 = vmatpush.msra.mxu2 %v4139_v47 }
 0xae4   :  { %2331 = vmatpush.msra.mxu2 %v4138_v60 }
 0xae6   :  { %2332 = vmatpush.msra.mxu2 %v4137_v61 }
 0xae8   :  { %4151 = vmatmul.msk.f32.gmra.mxu2 %vm135_vm0, %v5493_v59  ;;  %4153 = vmatmul.msk.f32.gmra.mxu3 %vm135_vm0, %v5493_v59 }
 0xae9   :  { %4155 = vmatmul.msk.f32.gmra.mxu0 %vm135_vm0, %v5493_v59  ;;  %4165 = vmatmul.msk.f32.gmra.mxu1 %vm135_vm0, %v5493_v59 }
 0xaea   :  { %2333 = vmatpush.msra.mxu2 %v4136_v62 }
 0xaf0   :  { %4158 = vmatmul.msk.f32.vlgmr.msrb.gmra.mxu2 %vm135_vm0, %v5446_v35  ;;  %4160 = vmatmul.msk.f32.vlgmr.msrb.gmra.mxu3 %vm135_vm0, %v5446_v35 }
 0xaf1   :  { %4162 = vmatmul.msk.f32.vlgmr.msra.gmra.mxu0 %vm135_vm0, %v5446_v35 }
 0xaf8   :  { %4159 = vmatmul.msk.f32.gmra.mxu2 %vm135_vm0, %v5493_v59  ;;  %4161 = vmatmul.msk.f32.gmra.mxu3 %vm135_vm0, %v5493_v59 }
 0xaf9   :  { %4163 = vmatmul.msk.f32.gmra.mxu0 %vm135_vm0, %v5493_v59 }
 0xb00   :  { %4166 = vmatmul.msk.f32.vlgmr.msra.gmra.mxu2 %vm135_vm0, %v5446_v35 }
 0xb08   :  { %4167 = vmatmul.msk.f32.gmra.mxu2 %vm135_vm0, %v5493_v59 }
 0xb49   :  { %v2128_v63 = vpop.f32.mrf.mxu0  ;;  %v2220_v0 = vpop.f32.mrf.mxu1 }
 0xb4e   :  { %v2082_v1 = vpop.f32.mrf.mxu2  ;;  %v2105_v2 = vpop.f32.mrf.mxu3 }
 0xb56   :  { %v2131_v3 = vpop.f32.mrf.mxu0  ;;  %v2223_v4 = vpop.f32.mrf.mxu1 }
 0xb57   :  { %4176 = vmatpush.xpose.msk.msrb.mxu1 %vm418_vm1, %v2223_v4 }
 0xb5b   :  { %4177 = vmatpush.xpose.msk.msrb.mxu1 %vm418_vm1, %v2220_v0  ;;  %v2085_v5 = vpop.f32.mrf.mxu2  ;;  %v2108_v6 = vpop.f32.mrf.mxu3 }
 0xb5e   :  { %v2197_v7 = vpop.f32.mrf.mxu0  ;;  %v2312_v8 = vpop.f32.mrf.mxu1  ;;  %4178 = vmatmul.msk.f32.vlgmr.msrb.gmra.mxu1 %vm418_vm1, %v2128_v63 }
 0xb63   :  { %v2151_v9 = vpop.f32.mrf.mxu2  ;;  %v2174_v10 = vpop.f32.mrf.mxu3 }
 0xb66   :  { %v2200_v11 = vpop.f32.mrf.mxu0  ;;  %v2315_v13 = vpop.f32.mrf.mxu1  ;;  %4179 = vmatmul.msk.f32.gmra.mxu1 %vm418_vm1, %v2131_v3 }
 0xb67   :  { %4172 = vmatpush.xpose.msk.msrb.mxu0 %vm418_vm1, %v2200_v11  ;;  %2663 = vmatpush.msra.mxu1 %v2315_v13 }
 0xb69   :  { %2664 = vmatpush.msra.mxu1 %v2312_v8 }
 0xb6b   :  { %4173 = vmatpush.xpose.msk.msrb.mxu0 %vm418_vm1, %v2197_v7  ;;  %v2154_v14 = vpop.f32.mrf.mxu2  ;;  %v2177_v15 = vpop.f32.mrf.mxu3 }
 0xb6c   :  { %4168 = vmatpush.xpose.msk.msra.mxu3 %vm418_vm1, %v2177_v15 }
 0xb6e   :  { %v2289_v16 = vpop.f32.mrf.mxu0  ;;  %4174 = vmatmul.msk.f32.vlgmr.msrb.gmra.mxu0 %vm418_vm1, %v2105_v2 }
 0xb70   :  { %4169 = vmatpush.xpose.msk.msra.mxu3 %vm418_vm1, %v2174_v10 }
 0xb73   :  { %v2243_v17 = vpop.f32.mrf.mxu2  ;;  %v2266_v18 = vpop.f32.mrf.mxu3  ;;  %4170 = vmatmul.msk.f32.vlgmr.msra.gmra.mxu3 %vm418_vm1, %v2082_v1 }
 0xb76   :  { %v2292_v19 = vpop.f32.mrf.mxu0  ;;  %4175 = vmatmul.msk.f32.gmra.mxu0 %vm418_vm1, %v2108_v6 }
 0xb77   :  { %2634 = vmatpush.msra.mxu0 %v2292_v19 }
 0xb79   :  { %2635 = vmatpush.msra.mxu0 %v2289_v16 }
 0xb7b   :  { %v2246_v20 = vpop.f32.mrf.mxu2  ;;  %v2269_v21 = vpop.f32.mrf.mxu3  ;;  %4171 = vmatmul.msk.f32.gmra.mxu3 %vm418_vm1, %v2085_v5 }
 0xb7c   :  { %4180 = vmatpush.xpose.msk.msrb.mxu2 %vm418_vm1, %v2246_v20  ;;  %2605 = vmatpush.msrb.mxu3 %v2269_v21 }
 0xb7e   :  { %2606 = vmatpush.msrb.mxu3 %v2266_v18 }
 0xb80   :  { %4181 = vmatpush.xpose.msk.msrb.mxu2 %vm418_vm1, %v2243_v17 }
 0xb83   :  { %v2335_v23 = vpop.f32.mrf.mxu2  ;;  %4182 = vmatmul.msk.f32.vlgmr.msrb.gmra.mxu2 %vm418_vm1, %v2151_v9 }
 0xb8b   :  { %v2338_v24 = vpop.f32.mrf.mxu2  ;;  %4183 = vmatmul.msk.f32.gmra.mxu2 %vm418_vm1, %v2154_v14 }
 0xb8c   :  { %2692 = vmatpush.msra.mxu2 %v2338_v24 }
 0xb8e   :  { %2693 = vmatpush.msra.mxu2 %v2335_v23 }
 0xbdb   :  { %v2440_v34 = vpop.f32.mrf.mxu1 }
 0xbdc   :  { %v2485_v39 = vmul.f32 0.35355338, %v2440_v34 }
 0xbde   :  { %v2493_v46 = vadd.f32 %v4518_v31, %v2485_v39 }
 0xbe0   :  { %v2509_v50 = vsel %vm575_vm2, %v2493_v46, -inf }
 0xbe3   :  { %v2443_v54 = vpop.f32.mrf.mxu1 }
 0xbe4   :  { %v2486_v57 = vmul.f32 0.35355338, %v2443_v54 }
 0xbe6   :  { %v2494_v58 = vadd.f32 %v4519_v36, %v2486_v57 }
 0xbe8   :  { %v2512_v47 = vsel %vm575_vm2, %v2494_v58, -inf }
 0xbeb   :  { %v2405_v12 = vpop.f32.mrf.mxu0 }
 0xbec   :  { %v2483_v28 = vmul.f32 0.35355338, %v2405_v12 }
 0xbee   :  { %v2491_v33 = vadd.f32 %v4518_v31, %v2483_v28 }
 0xbf0   :  { %v2503_v41 = vsel %vm575_vm2, %v2491_v33, -inf }
 0xbf3   :  { %v2408_v37 = vpop.f32.mrf.mxu0 }
 0xbf4   :  { %v2484_v40 = vmul.f32 0.35355338, %v2408_v37 }
 0xbf6   :  { %v2370_v25 = vpop.f32.mrf.mxu3  ;;  %v2492_v45 = vadd.f32 %v4519_v36, %v2484_v40 }
 0xbf7   :  { %v2481_v26 = vmul.f32 0.35355338, %v2370_v25 }
 0xbf8   :  { %v2506_v49 = vsel %vm575_vm2, %v2492_v45, -inf }
 0xbf9   :  { %v2489_v27 = vadd.f32 %v4518_v31, %v2481_v26 }
 0xbfb   :  { %v2497_v30 = vsel %vm575_vm2, %v2489_v27, -inf }
 0xbfc   :  { %2498 = vmax.xlane.f32.xlu2 %v2497_v30 }
 0xbfe   :  { %v2373_v22 = vpop.f32.mrf.mxu3 }
 0xbff   :  { %v2482_v32 = vmul.f32 0.35355338, %v2373_v22 }
 0xc01   :  { %v2490_v38 = vadd.f32 %v4519_v36, %v2482_v32 }
 0xc03   :  { %v2500_v43 = vsel %vm575_vm2, %v2490_v38, -inf }
 0xc04   :  { %2504 = vmax.xlane.f32.xlu2 %v2503_v41  ;;  %2501 = vmax.xlane.f32.xlu1 %v2500_v43 }
 0xc06   :  { %v2475_v42 = vpop.f32.mrf.mxu2 }
 0xc07   :  { %v2487_v44 = vmul.f32 0.35355338, %v2475_v42 }
 0xc09   :  { %v2495_v48 = vadd.f32 %v4518_v31, %v2487_v44 }
 0xc0b   :  { %v2515_v51 = vsel %vm575_vm2, %v2495_v48, -inf }
 0xc0c   :  { %2507 = vmax.xlane.f32.xlu2 %v2506_v49  ;;  %2510 = vmax.xlane.f32.xlu1 %v2509_v50 }
 0xc0d   :  { %2516 = vmax.xlane.f32.xlu0 %v2515_v51 }
 0xc0e   :  { %v2478_v52 = vpop.f32.mrf.mxu2 }
 0xc0f   :  { %v2488_v53 = vmul.f32 0.35355338, %v2478_v52 }
 0xc11   :  { %v2496_v55 = vadd.f32 %v4519_v36, %v2488_v53 }
 0xc13   :  { %v2518_v56 = vsel %vm575_vm2, %v2496_v55, -inf }
 0xc15   :  { %2519 = vmax.xlane.f32.xlu0 %v2518_v56 }
 0xc1d   :  { %2513 = vmax.xlane.f32.xlu0 %v2512_v47 }
 0xc6f   :  { %v2499_v60 = vpop.xlane.xlu2 %2498 }
 0xc70   :  { %v2521_v61 = vsub.f32 %v2489_v27, %v2499_v60 }
 0xc72   :  { %v2529_v62 = vmul.f32 1.442695, %v2521_v61 }
 0xc74   :  { %4442 = vpow2.f32 %v2529_v62 }
 0xc77   :  { %v2505_v63 = vpop.xlane.xlu2 %2504  ;;  %v2502_v0 = vpop.xlane.xlu1 %2501 }
 0xc78   :  { %v2523_v1 = vsub.f32 %v2491_v33, %v2505_v63  ;;  %v2522_v2 = vsub.f32 %v2490_v38, %v2502_v0  ;;  %v4140_v63 = vld [vmem:[%s6075_s27 + $0x20] sm:$0xff]  ;;  %v4141_v0 = vld [vmem:[%s6075_s27 + $0x28] sm:$0xff] }
 0xc79   :  { %2722 = vmatpush.msra.mxu3 %v4140_v63  ;;  %2751 = vmatpush.msrb.mxu0 %v4141_v0  ;;  %v4214_v63 = vld [vmem:[%s6037_s10 + $0xe0] sm:$0xff] }
 0xc7a   :  { %v4443_v3 = vpop.eup %4442  ;;  %v2533_v4 = vmul.f32 1.442695, %v2523_v1  ;;  %v2531_v5 = vmul.f32 1.442695, %v2522_v2  ;;  %v4142_v1 = vld [vmem:[%s6075_s27 + $0x30] sm:$0xff]  ;;  %v4143_v2 = vld [vmem:[%s6075_s27 + $0x38] sm:$0xff] }
 0xc7b   :  { %v2545_v6 = vsel %vm575_vm2, %v4443_v3, 0.0  ;;  %2780 = vmatpush.msrb.mxu1 %v4142_v1  ;;  %2809 = vmatpush.msrb.mxu2 %v4143_v2 }
 0xc7c   :  { %4444 = vpow2.f32 %v2533_v4  ;;  %2546 = vadd.xlane.f32.xlu1 %v2545_v6 }
 0xc7d   :  { %4446 = vpow2.f32 %v2531_v5 }
 0xc7f   :  { %v2508_v7 = vpop.xlane.xlu2 %2507  ;;  %v2511_v8 = vpop.xlane.xlu1 %2510 }
 0xc80   :  { %v2524_v9 = vsub.f32 %v2492_v45, %v2508_v7  ;;  %v2525_v10 = vsub.f32 %v2493_v46, %v2511_v8  ;;  %v2517_v11 = vpop.xlane.xlu0 %2516 }
 0xc81   :  { %v2527_v13 = vsub.f32 %v2495_v48, %v2517_v11 }
 0xc82   :  { %v4445_v14 = vpop.eup %4444  ;;  %v2535_v15 = vmul.f32 1.442695, %v2524_v9  ;;  %v2537_v16 = vmul.f32 1.442695, %v2525_v10 }
 0xc83   :  { %v4447_v17 = vpop.eup %4446  ;;  %v2541_v18 = vmul.f32 1.442695, %v2527_v13  ;;  %v2551_v19 = vsel %vm575_vm2, %v4445_v14, 0.0 }
 0xc84   :  { %4448 = vpow2.f32 %v2535_v15  ;;  %2552 = vadd.xlane.f32.xlu1 %v2551_v19  ;;  %v2548_v20 = vsel %vm575_vm2, %v4447_v17, 0.0 }
 0xc85   :  { %4450 = vpow2.f32 %v2537_v16  ;;  %2549 = vadd.xlane.f32.xlu0 %v2548_v20 }
 0xc86   :  { %4452 = vpow2.f32 %v2541_v18 }
 0xc88   :  { %v2520_v21 = vpop.xlane.xlu0 %2519 }
 0xc89   :  { %v2528_v23 = vsub.f32 %v2496_v55, %v2520_v21 }
 0xc8a   :  { %v4449_v24 = vpop.eup %4448 }
 0xc8b   :  { %v4451_v12 = vpop.eup %4450  ;;  %v2543_v25 = vmul.f32 1.442695, %v2528_v23  ;;  %v2554_v26 = vsel %vm575_vm2, %v4449_v24, 0.0 }
 0xc8c   :  { %v4453_v31 = vpop.eup %4452  ;;  %2555 = vadd.xlane.f32.xlu1 %v2554_v26  ;;  %v2557_v27 = vsel %vm575_vm2, %v4451_v12, 0.0 }
 0xc8d   :  { %4454 = vpow2.f32 %v2543_v25  ;;  %v2563_v28 = vsel %vm575_vm2, %v4453_v31, 0.0  ;;  %2558 = vadd.xlane.f32.xlu0 %v2557_v27 }
 0xc8e   :  { %2564 = vadd.xlane.f32.xlu2 %v2563_v28 }
 0xc90   :  { %v2514_v30 = vpop.xlane.xlu0 %2513 }
 0xc91   :  { %v2526_v22 = vsub.f32 %v2494_v58, %v2514_v30 }
 0xc93   :  { %v4455_v32 = vpop.eup %4454  ;;  %v2539_v33 = vmul.f32 1.442695, %v2526_v22 }
 0xc94   :  { %v2566_v34 = vsel %vm575_vm2, %v4455_v32, 0.0 }
 0xc95   :  { %4456 = vpow2.f32 %v2539_v33 }
 0xc96   :  { %2567 = vadd.xlane.f32.xlu2 %v2566_v34 }
 0xc9b   :  { %v4457_v37 = vpop.eup %4456 }
 0xc9c   :  { %v2560_v36 = vsel %vm575_vm2, %v4457_v37, 0.0 }
 0xc9e   :  { %2561 = vadd.xlane.f32.xlu2 %v2560_v36 }
 0xcef   :  { %v2547_v38 = vpop.xlane.xlu1 %2546 }
 0xcf0   :  { %4458 = vrcp.f32 %v2547_v38 }
 0xcf6   :  { %v4459_v39 = vpop.eup %4458 }
 0xcf7   :  { %v2577_v40 = vmul.f32 %v4459_v39, %v4443_v3  ;;  %v2553_v41 = vpop.xlane.xlu1 %2552 }
 0xcf8   :  { %4460 = vrcp.f32 %v2553_v41  ;;  %v2550_v43 = vpop.xlane.xlu0 %2549 }
 0xcf9   :  { %4462 = vrcp.f32 %v2550_v43  ;;  %4184 = vmatmul.msk.f32.vlgmr.msrb.gmra.mxu3 %vm575_vm2, %v2577_v40 }
 0xcfe   :  { %v4461_v42 = vpop.eup %4460 }
 0xcff   :  { %v4463_v44 = vpop.eup %4462  ;;  %v2579_v45 = vmul.f32 %v4461_v42, %v4445_v14  ;;  %v2556_v46 = vpop.xlane.xlu1 %2555 }
 0xd00   :  { %4464 = vrcp.f32 %v2556_v46  ;;  %v2559_v48 = vpop.xlane.xlu0 %2558  ;;  %v2578_v49 = vmul.f32 %v4463_v44, %v4447_v17 }
 0xd01   :  { %v2565_v50 = vpop.xlane.xlu2 %2564  ;;  %4466 = vrcp.f32 %v2559_v48  ;;  %4186 = vmatmul.msk.f32.vlgmr.msra.gmra.mxu0 %vm575_vm2, %v2579_v45  ;;  %v4205_v48 = vld [vmem:[%s6037_s10 + $0x98] sm:$0xff] }
 0xd02   :  { %4468 = vrcp.f32 %v2565_v50  ;;  %4185 = vmatmul.msk.f32.gmra.mxu3 %vm575_vm2, %v2578_v49  ;;  %v4209_v49 = vld [vmem:[%s6037_s10 + $0xb8] sm:$0xff] }
 0xd03   :  { %v4213_v50 = vld [vmem:[%s6037_s10 + $0xd8] sm:$0xff]  ;;  %2965 = vmatpush.msrb.mxu3 %v4205_v48  ;;  %2988 = vmatpush.msra.mxu0 %v4209_v49  ;;  %v4236_v48 = vld [vmem:[%s6039_s12 + $0x90] sm:$0xff] }
 0xd04   :  { %v4241_v49 = vld [vmem:[%s6039_s12 + $0xb8] sm:$0xff] }
 0xd06   :  { %v4465_v51 = vpop.eup %4464 }
 0xd07   :  { %v4467_v52 = vpop.eup %4466  ;;  %v2580_v53 = vmul.f32 %v4465_v51, %v4449_v24  ;;  %v4217_v51 = vld [vmem:[%s6037_s10 + $0xf8] sm:$0xff] }
 0xd08   :  { %v4469_v54 = vpop.eup %4468  ;;  %v2581_v55 = vmul.f32 %v4467_v52, %v4451_v12  ;;  %v4204_v52 = vld [vmem:[%s6037_s10 + $0x90] sm:$0xff] }
 0xd09   :  { %v2583_v56 = vmul.f32 %v4469_v54, %v4453_v31  ;;  %v2568_v57 = vpop.xlane.xlu2 %2567  ;;  %4187 = vmatmul.msk.f32.gmra.mxu0 %vm575_vm2, %v2580_v53  ;;  %v4208_v53 = vld [vmem:[%s6037_s10 + $0xb0] sm:$0xff]  ;;  %2966 = vmatpush.msrb.mxu3 %v4204_v52 }
 0xd0a   :  { %4470 = vrcp.f32 %v2568_v57  ;;  %4188 = vmatmul.msk.f32.vlgmr.msra.gmra.mxu1 %vm575_vm2, %v2581_v55  ;;  %v4212_v54 = vld [vmem:[%s6037_s10 + $0xd0] sm:$0xff]  ;;  %2989 = vmatpush.msra.mxu0 %v4208_v53  ;;  %v4207_v57 = vld [vmem:[%s6037_s10 + $0xa8] sm:$0xff] }
 0xd0b   :  { %4190 = vmatmul.msk.f32.vlgmr.msra.gmra.mxu2 %vm575_vm2, %v2583_v56  ;;  %3011 = vmatpush.msra.mxu1 %v4213_v50  ;;  %v4216_v55 = vld [vmem:[%s6037_s10 + $0xf0] sm:$0xff]  ;;  %v4203_v56 = vld [vmem:[%s6037_s10 + $0x88] sm:$0xff]  ;;  %v4245_v50 = vld [vmem:[%s6039_s12 + $0xd8] sm:$0xff] }
 0xd0c   :  { %3034 = vmatpush.msra.mxu2 %v4217_v51  ;;  %2967 = vmatpush.msrb.mxu3 %v4203_v56  ;;  %v4240_v51 = vld [vmem:[%s6039_s12 + $0xb0] sm:$0xff]  ;;  %v4239_v53 = vld [vmem:[%s6039_s12 + $0xa8] sm:$0xff] }
 0xd0d   :  { %3012 = vmatpush.msra.mxu1 %v4212_v54  ;;  %2990 = vmatpush.msra.mxu0 %v4207_v57  ;;  %v4244_v52 = vld [vmem:[%s6039_s12 + $0xd0] sm:$0xff]  ;;  %v4243_v54 = vld [vmem:[%s6039_s12 + $0xc8] sm:$0xff]  ;;  %v4234_v57 = vld [vmem:[%s6039_s12 + $0x80] sm:$0xff] }
 0xd0e   :  { %3035 = vmatpush.msra.mxu2 %v4216_v55  ;;  %v4249_v55 = vld [vmem:[%s6039_s12 + $0xf8] sm:$0xff]  ;;  %v4235_v56 = vld [vmem:[%s6039_s12 + $0x88] sm:$0xff] }
 0xd10   :  { %v4471_v58 = vpop.eup %4470 }
 0xd11   :  { %v2562_v47 = vpop.xlane.xlu2 %2561  ;;  %v2584_v60 = vmul.f32 %v4471_v58, %v4455_v32  ;;  %v4211_v58 = vld [vmem:[%s6037_s10 + $0xc8] sm:$0xff] }
 0xd12   :  { %4472 = vrcp.f32 %v2562_v47  ;;  %v4215_v47 = vld [vmem:[%s6037_s10 + $0xe8] sm:$0xff]  ;;  %3013 = vmatpush.msra.mxu1 %v4211_v58  ;;  %v4248_v58 = vld [vmem:[%s6039_s12 + $0xf0] sm:$0xff] }
 0xd13   :  { %4191 = vmatmul.msk.f32.gmra.mxu2 %vm575_vm2, %v2584_v60  ;;  %v4202_v60 = vld [vmem:[%s6037_s10 + $0x80] sm:$0xff] }
 0xd14   :  { %3036 = vmatpush.msra.mxu2 %v4215_v47  ;;  %2968 = vmatpush.msrb.mxu3 %v4202_v60  ;;  %v4238_v47 = vld [vmem:[%s6039_s12 + $0xa0] sm:$0xff] }
 0xd15   :  { %v4242_v60 = vld [vmem:[%s6039_s12 + $0xc0] sm:$0xff] }
 0xd16   :  { %3037 = vmatpush.msra.mxu2 %v4214_v63 }
 0xd18   :  { %v4473_v61 = vpop.eup %4472 }
 0xd19   :  { %v2582_v62 = vmul.f32 %v4473_v61, %v4457_v37  ;;  %v4206_v61 = vld [vmem:[%s6037_s10 + $0xa0] sm:$0xff] }
 0xd1a   :  { %2991 = vmatpush.msra.mxu0 %v4206_v61  ;;  %v4247_v61 = vld [vmem:[%s6039_s12 + $0xe8] sm:$0xff] }
 0xd1b   :  { %4189 = vmatmul.msk.f32.gmra.mxu1 %vm575_vm2, %v2582_v62  ;;  %v4210_v62 = vld [vmem:[%s6037_s10 + $0xc0] sm:$0xff] }
 0xd1c   :  { %3014 = vmatpush.msra.mxu1 %v4210_v62  ;;  %v4246_v62 = vld [vmem:[%s6039_s12 + $0xe0] sm:$0xff] }
 0xd7c   :  { %v2608_v3 = vpop.f32.mrf.mxu3 }
 0xd7d   :  { %4192 = vmatmul.msk.f32.vlgmr.msra.gmra.mxu3 %vm418_vm1, %v2608_v3  ;;  %v4221_v3 = vld [vmem:[%s6038_s11 + $0x98] sm:$0xff] }
 0xd7e   :  { %v2637_v4 = vpop.f32.mrf.mxu0  ;;  %3057 = vmatpush.msra.mxu3 %v4221_v3 }
 0xd7f   :  { %4194 = vmatmul.msk.f32.vlgmr.msrb.gmra.mxu0 %vm418_vm1, %v2637_v4  ;;  %v4225_v4 = vld [vmem:[%s6038_s11 + $0xb8] sm:$0xff] }
 0xd80   :  { %3080 = vmatpush.msrb.mxu0 %v4225_v4 }
 0xd85   :  { %v2611_v5 = vpop.f32.mrf.mxu3 }
 0xd86   :  { %4193 = vmatmul.msk.f32.gmra.mxu3 %vm418_vm1, %v2611_v5  ;;  %v2640_v6 = vpop.f32.mrf.mxu0  ;;  %v4229_v5 = vld [vmem:[%s6038_s11 + $0xd8] sm:$0xff] }
 0xd87   :  { %v2666_v7 = vpop.f32.mrf.mxu1  ;;  %4195 = vmatmul.msk.f32.gmra.mxu0 %vm418_vm1, %v2640_v6  ;;  %v4233_v6 = vld [vmem:[%s6038_s11 + $0xf8] sm:$0xff] }
 0xd88   :  { %4196 = vmatmul.msk.f32.vlgmr.msrb.gmra.mxu1 %vm418_vm1, %v2666_v7  ;;  %v4220_v7 = vld [vmem:[%s6038_s11 + $0x90] sm:$0xff] }
 0xd89   :  { %3103 = vmatpush.msrb.mxu1 %v4229_v5  ;;  %3058 = vmatpush.msra.mxu3 %v4220_v7 }
 0xd8e   :  { %v2695_v8 = vpop.f32.mrf.mxu2 }
 0xd8f   :  { %4198 = vmatmul.msk.f32.vlgmr.msrb.gmra.mxu2 %vm418_vm1, %v2695_v8  ;;  %v4224_v8 = vld [vmem:[%s6038_s11 + $0xb0] sm:$0xff] }
 0xd90   :  { %3126 = vmatpush.msrb.mxu2 %v4233_v6  ;;  %3081 = vmatpush.msrb.mxu0 %v4224_v8 }
 0xd96   :  { %v2698_v9 = vpop.f32.mrf.mxu2 }
 0xd97   :  { %4199 = vmatmul.msk.f32.gmra.mxu2 %vm418_vm1, %v2698_v9 }
 0xd98   :  { %v2669_v10 = vpop.f32.mrf.mxu1 }
 0xd99   :  { %4197 = vmatmul.msk.f32.gmra.mxu1 %vm418_vm1, %v2669_v10  ;;  %v4228_v10 = vld [vmem:[%s6038_s11 + $0xd0] sm:$0xff] }
 0xd9a   :  { %3104 = vmatpush.msrb.mxu1 %v4228_v10 }
 0xdfc   :  { %v2753_v13 = vpop.f32.mrf.mxu0 }
 0xdfd   :  { %v2818_v16 = vsel %vm135_vm0, %v2753_v13, 0.0  ;;  %v4219_v13 = vld [vmem:[%s6038_s11 + $0x88] sm:$0xff] }
 0xdfe   :  { %3059 = vmatpush.msra.mxu3 %v4219_v13 }
 0xe00   :  { %v2724_v11 = vpop.f32.mrf.mxu3 }
 0xe01   :  { %v2817_v15 = vsel %vm135_vm0, %v2724_v11, 0.0  ;;  %v4232_v11 = vld [vmem:[%s6038_s11 + $0xf0] sm:$0xff] }
 0xe02   :  { %v2819_v18 = vadd.f32 %v2818_v16, %v2817_v15  ;;  %v4223_v15 = vld [vmem:[%s6038_s11 + $0xa8] sm:$0xff]  ;;  %3127 = vmatpush.msrb.mxu2 %v4232_v11 }
 0xe03   :  { %v4227_v16 = vld [vmem:[%s6038_s11 + $0xc8] sm:$0xff]  ;;  %3082 = vmatpush.msrb.mxu0 %v4223_v15 }
 0xe04   :  { %v2756_v24 = vpop.f32.mrf.mxu0  ;;  %3105 = vmatpush.msrb.mxu1 %v4227_v16 }
 0xe05   :  { %v2782_v14 = vpop.f32.mrf.mxu1  ;;  %v2825_v27 = vsel %vm135_vm0, %v2756_v24, 0.0  ;;  %v4230_v24 = vld [vmem:[%s6038_s11 + $0xe0] sm:$0xff] }
 0xe06   :  { %v2820_v17 = vsel %vm135_vm0, %v2782_v14, 0.0 }
 0xe07   :  { %v2821_v19 = vadd.f32 %v2820_v17, %v2819_v18  ;;  %v4231_v17 = vld [vmem:[%s6038_s11 + $0xe8] sm:$0xff]  ;;  %v4218_v18 = vld [vmem:[%s6038_s11 + $0x80] sm:$0xff] }
 0xe08   :  { %3128 = vmatpush.msrb.mxu2 %v4231_v17  ;;  %3060 = vmatpush.msra.mxu3 %v4218_v18 }
 0xe09   :  { %v2727_v20 = vpop.f32.mrf.mxu3 }
 0xe0a   :  { %v2824_v25 = vsel %vm135_vm0, %v2727_v20, 0.0  ;;  %3129 = vmatpush.msrb.mxu2 %v4230_v24 }
 0xe0b   :  { %v2826_v30 = vadd.f32 %v2825_v27, %v2824_v25 }
 0xe12   :  { %v2811_v21 = vpop.f32.mrf.mxu2 }
 0xe13   :  { %v2822_v23 = vsel %vm135_vm0, %v2811_v21, 0.0 }
 0xe14   :  { %v2823_v12 = vadd.f32 %v2822_v23, %v2821_v19  ;;  %v4222_v19 = vld [vmem:[%s6038_s11 + $0xa0] sm:$0xff] }
 0xe15   :  { %v4226_v23 = vld [vmem:[%s6038_s11 + $0xc0] sm:$0xff]  ;;  %3083 = vmatpush.msrb.mxu0 %v4222_v19 }
 0xe16   :  { %v2785_v26 = vpop.f32.mrf.mxu1  ;;  %v2831_v31 = vadd.f32 %v2823_v12, %v5446_v35  ;;  %3106 = vmatpush.msrb.mxu1 %v4226_v23 }
 0xe17   :  { %v2827_v28 = vsel %vm135_vm0, %v2785_v26, 0.0 }
 0xe18   :  { %v2837_v22 = vsel %vm135_vm0, %v2831_v31, 0.0  ;;  %v2828_v32 = vadd.f32 %v2827_v28, %v2826_v30 }
 0xe19   :  { %2838 = vadd.xlane.f32.xlu0 %v2837_v22  ;;  %v4356_v22 = vld [vmem:[%s6035_s8 + $0x1] ss:$0 sm:$0xff] }
 0xe1a   :  { %v2814_v33 = vpop.f32.mrf.mxu2 }
 0xe1b   :  { %v2829_v34 = vsel %vm135_vm0, %v2814_v33, 0.0 }
 0xe1c   :  { %v2830_v37 = vadd.f32 %v2829_v34, %v2828_v32  ;;  %v4357_v34 = vld [vmem:[%s6036_s9 + $0x1] ss:$0 sm:$0xff] }
 0xe1e   :  { %v2832_v36 = vadd.f32 %v2830_v37, %v5493_v59 }
 0xe20   :  { %v2840_v38 = vsel %vm135_vm0, %v2832_v36, 0.0 }
 0xe21   :  { %2841 = vadd.xlane.f32.xlu1 %v2840_v38 }
 0xe8c   :  { %v2839_v39 = vpop.xlane.xlu0 %2838 }
 0xe8d   :  { %v2843_v35 = vmul.f32 %v2839_v39, %v4954_v29 }
 0xe8f   :  { %v5626_v40 = vsub.f32 %v2831_v31, %v2843_v35 }
 0xe91   :  { %v2847_v41 = vmul.f32 %v5626_v40, %v5626_v40 }
 0xe93   :  { %v2849_v43 = vsel %vm135_vm0, %v2847_v41, 0.0 }
 0xe94   :  { %2850 = vadd.xlane.f32.xlu2 %v2849_v43  ;;  %v2842_v42 = vpop.xlane.xlu1 %2841 }
 0xe95   :  { %v2844_v44 = vmul.f32 %v2842_v42, %v4954_v29 }
 0xe97   :  { %v5632_v45 = vsub.f32 %v2832_v36, %v2844_v44 }
 0xe99   :  { %v2848_v59 = vmul.f32 %v5632_v45, %v5632_v45 }
 0xe9b   :  { %v2852_v46 = vsel %vm135_vm0, %v2848_v59, 0.0  ;;  %v4520_v59 = vld [vmem:[%s6076_s5] sm:$0xff] }
 0xe9c   :  { %2853 = vadd.xlane.f32.xlu0 %v2852_v46  ;;  %v4237_v46 = vld [vmem:[%s6039_s12 + $0x98] sm:$0xff]  ;;  %s4552_s12 = smov 128  }
 0xf07   :  { %v2851_v0 = vpop.xlane.xlu2 %2850 }
 0xf08   :  { %v2855_v1 = vmul.f32 %v2851_v0, %v4954_v29 }
 0xf0a   :  { %v2857_v2 = vadd.f32 1e-05, %v2855_v1 }
 0xf0c   :  { %4474 = vrsqrt.f32 %v2857_v2  ;;  %vm2865_vm10 = vweird.f32 %v2857_v2 }
 0xf0f   :  { %v2854_v9 = vpop.xlane.xlu0 %2853 }
 0xf10   :  { %v2856_v14 = vmul.f32 %v2854_v9, %v4954_v29 }
 0xf12   :  { %v4475_v20 = vpop.eup %4474  ;;  %v2858_v21 = vadd.f32 1e-05, %v2856_v14 }
 0xf13   :  { %v2860_v12 = vmul.f32 %v4475_v20, %v2857_v2  ;;  %vm2866_vm9 = vweird.f32 %v4475_v20 }
 0xf14   :  { %4476 = vrsqrt.f32 %v2858_v21  ;;  %vm2867_vm11 = vmor %vm2865_vm10, %vm2866_vm9  ;;  %vm2875_vm13 = vweird.f32 %v2858_v21 }
 0xf15   :  { %v2861_v25 = vmul.f32 %v4475_v20, %v2860_v12 }
 0xf17   :  { %v2862_v26 = vmul.f32 0.5, %v2861_v25 }
 0xf19   :  { %v2863_v31 = vsub.f32 1.5, %v2862_v26 }
 0xf1a   :  { %v4477_v27 = vpop.eup %4476 }
 0xf1b   :  { %v2864_v28 = vmul.f32 %v4475_v20, %v2863_v31  ;;  %v2870_v30 = vmul.f32 %v4477_v27, %v2858_v21  ;;  %vm2876_vm12 = vweird.f32 %v4477_v27 }
 0xf1c   :  { %vm2877_vm14 = vmor %vm2875_vm13, %vm2876_vm12 }
 0xf1d   :  { %v2868_v32 = vsel %vm2867_vm11, %v4475_v20, %v2864_v28  ;;  %v2871_v33 = vmul.f32 %v4477_v27, %v2870_v30  ;;  %v4522_v30 = vld [vmem:[%s6077_s0] sm:$0xff] }
 0xf1e   :  { %v2879_v37 = vmul.f32 %v2868_v32, %v5626_v40 }
 0xf1f   :  { %v2872_v36 = vmul.f32 0.5, %v2871_v33 }
 0xf20   :  { %v2884_v38 = vmul.f32 %v4356_v22, %v2879_v37 }
 0xf21   :  { %v2873_v39 = vsub.f32 1.5, %v2872_v36 }
 0xf22   :  { %v5742_v35 = vadd.f32 %v4357_v34, %v2884_v38 }
 0xf23   :  { %v2874_v41 = vmul.f32 %v4477_v27, %v2873_v39 }
 0xf24   :  { %4254 = vmatmul.msk.f32.vlgmr.msrb.gmra.mxu3 %vm135_vm0, %v5742_v35  ;;  %4256 = vmatmul.msk.f32.vlgmr.msra.gmra.mxu0 %vm135_vm0, %v5742_v35 }
 0xf25   :  { %v2878_v43 = vsel %vm2877_vm14, %v4477_v27, %v2874_v41  ;;  %4258 = vmatmul.msk.f32.vlgmr.msra.gmra.mxu1 %vm135_vm0, %v5742_v35  ;;  %4260 = vmatmul.msk.f32.vlgmr.msra.gmra.mxu2 %vm135_vm0, %v5742_v35 }
 0xf26   :  { %v2880_v40 = vmul.f32 %v2878_v43, %v5632_v45  ;;  %v4521_v45 = vld [vmem:[%s6076_s5 + $0x8] sm:$0xff]  ;;  %3149 = vmatpush.msrb.mxu3 %v4237_v46  ;;  %3172 = vmatpush.msra.mxu0 %v4241_v49 }
 0xf27   :  { %3195 = vmatpush.msra.mxu1 %v4245_v50  ;;  %3218 = vmatpush.msra.mxu2 %v4249_v55 }
 0xf28   :  { %v2885_v42 = vmul.f32 %v4356_v22, %v2880_v40  ;;  %3150 = vmatpush.msrb.mxu3 %v4236_v48  ;;  %3173 = vmatpush.msra.mxu0 %v4240_v51 }
 0xf29   :  { %3196 = vmatpush.msra.mxu1 %v4244_v52  ;;  %3219 = vmatpush.msra.mxu2 %v4248_v58 }
 0xf2a   :  { %v5753_v44 = vadd.f32 %v4357_v34, %v2885_v42  ;;  %3151 = vmatpush.msrb.mxu3 %v4235_v56  ;;  %3174 = vmatpush.msra.mxu0 %v4239_v53 }
 0xf2b   :  { %3197 = vmatpush.msra.mxu1 %v4243_v54  ;;  %3220 = vmatpush.msra.mxu2 %v4247_v61 }
 0xf2c   :  { %4255 = vmatmul.msk.f32.gmra.mxu3 %vm135_vm0, %v5753_v44  ;;  %4257 = vmatmul.msk.f32.gmra.mxu0 %vm135_vm0, %v5753_v44 }
 0xf2d   :  { %4259 = vmatmul.msk.f32.gmra.mxu1 %vm135_vm0, %v5753_v44  ;;  %4261 = vmatmul.msk.f32.gmra.mxu2 %vm135_vm0, %v5753_v44 }
 0xf2e   :  { %3152 = vmatpush.msrb.mxu3 %v4234_v57  ;;  %3175 = vmatpush.msra.mxu0 %v4238_v47 }
 0xf2f   :  { %3198 = vmatpush.msra.mxu1 %v4242_v60  ;;  %3221 = vmatpush.msra.mxu2 %v4246_v62 }
 0xf34   :  { %4262 = vmatmul.msk.f32.vlgmr.msra.gmra.mxu3 %vm135_vm0, %v4520_v59  ;;  %4264 = vmatmul.msk.f32.vlgmr.msrb.gmra.mxu0 %vm135_vm0, %v4520_v59 }
 0xf35   :  { %4266 = vmatmul.msk.f32.vlgmr.msrb.gmra.mxu1 %vm135_vm0, %v4520_v59  ;;  %4268 = vmatmul.msk.f32.vlgmr.msrb.gmra.mxu2 %vm135_vm0, %v4520_v59 }
 0xf3c   :  { %4263 = vmatmul.msk.f32.gmra.mxu3 %vm135_vm0, %v4521_v45  ;;  %4265 = vmatmul.msk.f32.gmra.mxu0 %vm135_vm0, %v4521_v45 }
 0xf3d   :  { %4267 = vmatmul.msk.f32.gmra.mxu1 %vm135_vm0, %v4521_v45  ;;  %4269 = vmatmul.msk.f32.gmra.mxu2 %vm135_vm0, %v4521_v45 }
 0xf44   :  { %4272 = vmatmul.msk.f32.vlgmr.msra.gmra.mxu0 %vm135_vm0, %v4520_v59  ;;  %4270 = vmatmul.msk.f32.vlgmr.msrb.gmra.mxu3 %vm135_vm0, %v4520_v59 }
 0xf45   :  { %4274 = vmatmul.msk.f32.vlgmr.msra.gmra.mxu1 %vm135_vm0, %v4520_v59  ;;  %4276 = vmatmul.msk.f32.vlgmr.msra.gmra.mxu2 %vm135_vm0, %v4520_v59  ;;  %v4523_v59 = vld [vmem:[%s6077_s0 + $0x8] sm:$0xff] }
 0xf4c   :  { %4273 = vmatmul.msk.f32.gmra.mxu0 %vm135_vm0, %v4521_v45  ;;  %4271 = vmatmul.msk.f32.gmra.mxu3 %vm135_vm0, %v4521_v45 }
 0xf4d   :  { %4275 = vmatmul.msk.f32.gmra.mxu1 %vm135_vm0, %v4521_v45  ;;  %4277 = vmatmul.msk.f32.gmra.mxu2 %vm135_vm0, %v4521_v45 }
 0xfa1   :  { %v2993_v63 = vpop.f32.mrf.mxu0 }
 0xfa2   :  { %v3016_v0 = vpop.f32.mrf.mxu1 }
 0xfa7   :  { %v2970_v1 = vpop.f32.mrf.mxu3 }
 0xfa8   :  { %v3039_v2 = vpop.f32.mrf.mxu2 }
 0xfa9   :  { %v2996_v3 = vpop.f32.mrf.mxu0 }
 0xfaa   :  { %v3019_v4 = vpop.f32.mrf.mxu1 }
 0xfaf   :  { %v2973_v5 = vpop.f32.mrf.mxu3 }
 0xfb0   :  { %v3042_v6 = vpop.f32.mrf.mxu2 }
 0xfb1   :  { %v3085_v7 = vpop.f32.mrf.mxu0 }
 0xfb2   :  { %v3108_v8 = vpop.f32.mrf.mxu1 }
 0xfb7   :  { %v3062_v9 = vpop.f32.mrf.mxu3 }
 0xfb8   :  { %v3131_v10 = vpop.f32.mrf.mxu2 }
 0xfb9   :  { %v3088_v11 = vpop.f32.mrf.mxu0 }
 0xfba   :  { %v3111_v13 = vpop.f32.mrf.mxu1  ;;  %4282 = vmatpush.xpose.msk.msrb.mxu0 %vm418_vm1, %v3088_v11 }
 0xfbb   :  { %4286 = vmatpush.xpose.msk.msrb.mxu1 %vm418_vm1, %v3111_v13 }
 0xfbe   :  { %4283 = vmatpush.xpose.msk.msrb.mxu0 %vm418_vm1, %v3085_v7 }
 0xfbf   :  { %4287 = vmatpush.xpose.msk.msrb.mxu1 %vm418_vm1, %v3108_v8  ;;  %v3065_v14 = vpop.f32.mrf.mxu3 }
 0xfc0   :  { %v3134_v15 = vpop.f32.mrf.mxu2  ;;  %4278 = vmatpush.xpose.msk.msra.mxu3 %vm418_vm1, %v3065_v14 }
 0xfc1   :  { %4290 = vmatpush.xpose.msk.msrb.mxu2 %vm418_vm1, %v3134_v15  ;;  %4284 = vmatmul.msk.f32.vlgmr.msrb.gmra.mxu0 %vm418_vm1, %v2993_v63  ;;  %v3177_v16 = vpop.f32.mrf.mxu0 }
 0xfc2   :  { %4288 = vmatmul.msk.f32.vlgmr.msrb.gmra.mxu1 %vm418_vm1, %v3016_v0  ;;  %v3200_v17 = vpop.f32.mrf.mxu1 }
 0xfc4   :  { %4279 = vmatpush.xpose.msk.msra.mxu3 %vm418_vm1, %v3062_v9 }
 0xfc5   :  { %4291 = vmatpush.xpose.msk.msrb.mxu2 %vm418_vm1, %v3131_v10 }
 0xfc7   :  { %4280 = vmatmul.msk.f32.vlgmr.msra.gmra.mxu3 %vm418_vm1, %v2970_v1  ;;  %v3154_v18 = vpop.f32.mrf.mxu3 }
 0xfc8   :  { %4292 = vmatmul.msk.f32.vlgmr.msrb.gmra.mxu2 %vm418_vm1, %v3039_v2  ;;  %v3223_v21 = vpop.f32.mrf.mxu2 }
 0xfc9   :  { %4285 = vmatmul.msk.f32.gmra.mxu0 %vm418_vm1, %v2996_v3  ;;  %v3180_v19 = vpop.f32.mrf.mxu0 }
 0xfca   :  { %4289 = vmatmul.msk.f32.gmra.mxu1 %vm418_vm1, %v3019_v4  ;;  %v3203_v20 = vpop.f32.mrf.mxu1  ;;  %3522 = vmatpush.msra.mxu0 %v3180_v19 }
 0xfcb   :  { %3551 = vmatpush.msra.mxu1 %v3203_v20 }
 0xfcc   :  { %3523 = vmatpush.msra.mxu0 %v3177_v16 }
 0xfcd   :  { %3552 = vmatpush.msra.mxu1 %v3200_v17 }
 0xfcf   :  { %4281 = vmatmul.msk.f32.gmra.mxu3 %vm418_vm1, %v2973_v5  ;;  %v3157_v23 = vpop.f32.mrf.mxu3 }
 0xfd0   :  { %4293 = vmatmul.msk.f32.gmra.mxu2 %vm418_vm1, %v3042_v6  ;;  %3493 = vmatpush.msrb.mxu3 %v3157_v23  ;;  %v3226_v24 = vpop.f32.mrf.mxu2 }
 0xfd1   :  { %3580 = vmatpush.msra.mxu2 %v3226_v24 }
 0xfd2   :  { %3494 = vmatpush.msrb.mxu3 %v3154_v18 }
 0xfd3   :  { %3581 = vmatpush.msra.mxu2 %v3223_v21 }
0x103e   :  { %v3293_v12 = vpop.f32.mrf.mxu0 }
0x103f   :  { %v3328_v26 = vpop.f32.mrf.mxu1  ;;  %v3371_v33 = vmul.f32 0.35355338, %v3293_v12 }
0x1040   :  { %v3373_v48 = vmul.f32 0.35355338, %v3328_v26 }
0x1041   :  { %v3379_v41 = vadd.f32 %v4522_v30, %v3371_v33 }
0x1042   :  { %v3381_v55 = vadd.f32 %v4522_v30, %v3373_v48 }
0x1043   :  { %v3391_v50 = vsel %vm575_vm2, %v3379_v41, -inf }
0x1044   :  { %v3397_v58 = vsel %vm575_vm2, %v3381_v55, -inf }
0x1046   :  { %v3296_v43 = vpop.f32.mrf.mxu0 }
0x1047   :  { %v3331_v42 = vpop.f32.mrf.mxu1  ;;  %v3372_v49 = vmul.f32 0.35355338, %v3296_v43 }
0x1048   :  { %v3374_v52 = vmul.f32 0.35355338, %v3331_v42 }
0x1049   :  { %v3380_v54 = vadd.f32 %v4523_v59, %v3372_v49 }
0x104a   :  { %v3258_v25 = vpop.f32.mrf.mxu3  ;;  %v3382_v56 = vadd.f32 %v4523_v59, %v3374_v52 }
0x104b   :  { %v3369_v31 = vmul.f32 0.35355338, %v3258_v25  ;;  %v3363_v27 = vpop.f32.mrf.mxu2  ;;  %v3394_v57 = vsel %vm575_vm2, %v3380_v54, -inf }
0x104c   :  { %v3375_v28 = vmul.f32 0.35355338, %v3363_v27  ;;  %v3400_v47 = vsel %vm575_vm2, %v3382_v56, -inf }
0x104d   :  { %v3377_v22 = vadd.f32 %v4522_v30, %v3369_v31 }
0x104e   :  { %v3383_v32 = vadd.f32 %v4522_v30, %v3375_v28 }
0x104f   :  { %v3385_v34 = vsel %vm575_vm2, %v3377_v22, -inf }
0x1050   :  { %v3403_v37 = vsel %vm575_vm2, %v3383_v32, -inf  ;;  %3386 = vmax.xlane.f32.xlu1 %v3385_v34 }
0x1051   :  { %3404 = vmax.xlane.f32.xlu2 %v3403_v37 }
0x1052   :  { %v3261_v36 = vpop.f32.mrf.mxu3 }
0x1053   :  { %v3370_v38 = vmul.f32 0.35355338, %v3261_v36  ;;  %v3366_v39 = vpop.f32.mrf.mxu2 }
0x1054   :  { %v3376_v40 = vmul.f32 0.35355338, %v3366_v39 }
0x1055   :  { %v3378_v45 = vadd.f32 %v4523_v59, %v3370_v38 }
0x1056   :  { %v3384_v46 = vadd.f32 %v4523_v59, %v3376_v40 }
0x1057   :  { %v3388_v51 = vsel %vm575_vm2, %v3378_v45, -inf }
0x1058   :  { %v3406_v53 = vsel %vm575_vm2, %v3384_v46, -inf  ;;  %3392 = vmax.xlane.f32.xlu1 %v3391_v50  ;;  %3389 = vmax.xlane.f32.xlu0 %v3388_v51 }
0x1059   :  { %3407 = vmax.xlane.f32.xlu2 %v3406_v53 }
0x1060   :  { %3395 = vmax.xlane.f32.xlu1 %v3394_v57  ;;  %3398 = vmax.xlane.f32.xlu0 %v3397_v58 }
0x1061   :  { %3401 = vmax.xlane.f32.xlu2 %v3400_v47 }
0x10c3   :  { %v3387_v60 = vpop.xlane.xlu1 %3386 }
0x10c4   :  { %v3405_v61 = vpop.xlane.xlu2 %3404  ;;  %v3409_v62 = vsub.f32 %v3377_v22, %v3387_v60 }
0x10c5   :  { %v3415_v63 = vsub.f32 %v3383_v32, %v3405_v61 }
0x10c6   :  { %v3417_v0 = vmul.f32 1.442695, %v3409_v62 }
0x10c7   :  { %v3429_v1 = vmul.f32 1.442695, %v3415_v63 }
0x10c8   :  { %4478 = vpow2.f32 %v3417_v0  ;;  %v4253_v0 = vld [vmem:[%s6040_s13 + $0x38] sm:$0xff] }
0x10c9   :  { %4480 = vpow2.f32 %v3429_v1  ;;  %3697 = vmatpush.msrb.mxu2 %v4253_v0  ;;  %v4251_v1 = vld [vmem:[%s6040_s13 + $0x28] sm:$0xff] }
0x10ca   :  { %3639 = vmatpush.msrb.mxu0 %v4251_v1  ;;  %v4329_v1 = vld [vmem:[%s6045_s18 + $0xd0] sm:$0xff] }
0x10cb   :  { %v3393_v2 = vpop.xlane.xlu1 %3392  ;;  %v3390_v3 = vpop.xlane.xlu0 %3389 }
0x10cc   :  { %v3408_v4 = vpop.xlane.xlu2 %3407  ;;  %v3411_v5 = vsub.f32 %v3379_v41, %v3393_v2  ;;  %v3410_v6 = vsub.f32 %v3378_v45, %v3390_v3  ;;  %v4250_v41 = vld [vmem:[%s6040_s13 + $0x20] sm:$0xff]  ;;  %v4252_v2 = vld [vmem:[%s6040_s13 + $0x30] sm:$0xff] }
0x10cd   :  { %v3416_v7 = vsub.f32 %v3384_v46, %v3408_v4  ;;  %3610 = vmatpush.msra.mxu3 %v4250_v41  ;;  %3668 = vmatpush.msrb.mxu1 %v4252_v2 }
0x10ce   :  { %v4479_v8 = vpop.eup %4478  ;;  %v3421_v9 = vmul.f32 1.442695, %v3411_v5  ;;  %v3419_v10 = vmul.f32 1.442695, %v3410_v6 }
0x10cf   :  { %v4481_v11 = vpop.eup %4480  ;;  %v3431_v13 = vmul.f32 1.442695, %v3416_v7  ;;  %v3433_v14 = vsel %vm575_vm2, %v4479_v8, 0.0 }
0x10d0   :  { %4482 = vpow2.f32 %v3421_v9  ;;  %v3451_v15 = vsel %vm575_vm2, %v4481_v11, 0.0  ;;  %3434 = vadd.xlane.f32.xlu0 %v3433_v14 }
0x10d1   :  { %4484 = vpow2.f32 %v3431_v13  ;;  %3452 = vadd.xlane.f32.xlu1 %v3451_v15 }
0x10d2   :  { %4486 = vpow2.f32 %v3419_v10 }
0x10d3   :  { %v3396_v16 = vpop.xlane.xlu1 %3395  ;;  %v3399_v17 = vpop.xlane.xlu0 %3398 }
0x10d4   :  { %v3402_v18 = vpop.xlane.xlu2 %3401  ;;  %v3412_v19 = vsub.f32 %v3380_v54, %v3396_v16  ;;  %v3413_v20 = vsub.f32 %v3381_v55, %v3399_v17 }
0x10d5   :  { %v3414_v21 = vsub.f32 %v3382_v56, %v3402_v18 }
0x10d6   :  { %v4483_v23 = vpop.eup %4482  ;;  %v3423_v24 = vmul.f32 1.442695, %v3412_v19  ;;  %v3425_v12 = vmul.f32 1.442695, %v3413_v20 }
0x10d7   :  { %v4485_v25 = vpop.eup %4484  ;;  %v3427_v26 = vmul.f32 1.442695, %v3414_v21  ;;  %v3439_v31 = vsel %vm575_vm2, %v4483_v23, 0.0 }
0x10d8   :  { %v4487_v27 = vpop.eup %4486  ;;  %4488 = vpow2.f32 %v3423_v24  ;;  %v3454_v28 = vsel %vm575_vm2, %v4485_v25, 0.0  ;;  %3440 = vadd.xlane.f32.xlu0 %v3439_v31 }
0x10d9   :  { %4490 = vpow2.f32 %v3427_v26  ;;  %3455 = vadd.xlane.f32.xlu1 %v3454_v28  ;;  %v3436_v30 = vsel %vm575_vm2, %v4487_v27, 0.0 }
0x10da   :  { %4492 = vpow2.f32 %v3425_v12  ;;  %3437 = vadd.xlane.f32.xlu2 %v3436_v30 }
0x10de   :  { %v4489_v22 = vpop.eup %4488 }
0x10df   :  { %v4491_v32 = vpop.eup %4490  ;;  %v3442_v33 = vsel %vm575_vm2, %v4489_v22, 0.0 }
0x10e0   :  { %v4493_v34 = vpop.eup %4492  ;;  %v3448_v37 = vsel %vm575_vm2, %v4491_v32, 0.0  ;;  %3443 = vadd.xlane.f32.xlu0 %v3442_v33 }
0x10e1   :  { %3449 = vadd.xlane.f32.xlu1 %v3448_v37  ;;  %v3445_v36 = vsel %vm575_vm2, %v4493_v34, 0.0 }
0x10e2   :  { %3446 = vadd.xlane.f32.xlu2 %v3445_v36 }
0x1143   :  { %v3435_v38 = vpop.xlane.xlu0 %3434 }
0x1144   :  { %v3453_v39 = vpop.xlane.xlu1 %3452  ;;  %4494 = vrcp.f32 %v3435_v38 }
0x1145   :  { %4496 = vrcp.f32 %v3453_v39 }
0x114a   :  { %v4495_v43 = vpop.eup %4494 }
0x114b   :  { %v4497_v40 = vpop.eup %4496  ;;  %v3465_v42 = vmul.f32 %v4495_v43, %v4479_v8  ;;  %v3441_v59 = vpop.xlane.xlu0 %3440 }
0x114c   :  { %v3471_v45 = vmul.f32 %v4497_v40, %v4481_v11  ;;  %v3456_v46 = vpop.xlane.xlu1 %3455  ;;  %4498 = vrcp.f32 %v3441_v59 }
0x114d   :  { %4500 = vrcp.f32 %v3456_v46  ;;  %v3438_v48 = vpop.xlane.xlu2 %3437  ;;  %4294 = vmatmul.msk.f32.vlgmr.msrb.gmra.mxu3 %vm575_vm2, %v3465_v42 }
0x114e   :  { %4502 = vrcp.f32 %v3438_v48  ;;  %4300 = vmatmul.msk.f32.vlgmr.msra.gmra.mxu2 %vm575_vm2, %v3471_v45  ;;  %v4315_v48 = vld [vmem:[%s6043_s16 + $0x38] sm:$0xff] }
0x114f   :  { %3807 = vmatpush.msrb.mxu3 %v4315_v48 }
0x1152   :  { %v4499_v49 = vpop.eup %4498 }
0x1153   :  { %v4501_v50 = vpop.eup %4500  ;;  %v3467_v51 = vmul.f32 %v4499_v49, %v4483_v23  ;;  %v3444_v52 = vpop.xlane.xlu0 %3443  ;;  %v4314_v49 = vld [vmem:[%s6043_s16 + $0x30] sm:$0xff] }
0x1154   :  { %v4503_v53 = vpop.eup %4502  ;;  %4504 = vrcp.f32 %v3444_v52  ;;  %v3472_v54 = vmul.f32 %v4501_v50, %v4485_v25  ;;  %v3450_v57 = vpop.xlane.xlu1 %3449  ;;  %3808 = vmatpush.msrb.mxu3 %v4314_v49  ;;  %v4313_v50 = vld [vmem:[%s6043_s16 + $0x28] sm:$0xff] }
0x1155   :  { %v3447_v55 = vpop.xlane.xlu2 %3446  ;;  %v3466_v56 = vmul.f32 %v4503_v53, %v4487_v27  ;;  %4296 = vmatmul.msk.f32.vlgmr.msra.gmra.mxu0 %vm575_vm2, %v3467_v51  ;;  %v4312_v51 = vld [vmem:[%s6043_s16 + $0x20] sm:$0xff] }
0x1156   :  { %4506 = vrcp.f32 %v3447_v55  ;;  %4301 = vmatmul.msk.f32.gmra.mxu2 %vm575_vm2, %v3472_v54  ;;  %3809 = vmatpush.msrb.mxu3 %v4313_v50  ;;  %v4334_v55 = vld [vmem:[%s6045_s18 + $0xf8] sm:$0xff] }
0x1157   :  { %4295 = vmatmul.msk.f32.gmra.mxu3 %vm575_vm2, %v3466_v56  ;;  %4508 = vrcp.f32 %v3450_v57  ;;  %v4333_v56 = vld [vmem:[%s6045_s18 + $0xf0] sm:$0xff]  ;;  %3842 = vmatpush.msra.mxu0 %v4334_v55  ;;  %v4332_v57 = vld [vmem:[%s6045_s18 + $0xe8] sm:$0xff] }
0x1158   :  { %3810 = vmatpush.msrb.mxu3 %v4312_v51 }
0x1159   :  { %3843 = vmatpush.msra.mxu0 %v4333_v56 }
0x115a   :  { %v4505_v58 = vpop.eup %4504 }
0x115b   :  { %v3468_v47 = vmul.f32 %v4505_v58, %v4489_v22  ;;  %3844 = vmatpush.msra.mxu0 %v4332_v57 }
0x115c   :  { %v4507_v60 = vpop.eup %4506 }
0x115d   :  { %v3469_v61 = vmul.f32 %v4507_v60, %v4493_v34  ;;  %4297 = vmatmul.msk.f32.gmra.mxu0 %vm575_vm2, %v3468_v47  ;;  %v4509_v62 = vpop.eup %4508  ;;  %v4331_v60 = vld [vmem:[%s6045_s18 + $0xe0] sm:$0xff] }
0x115e   :  { %v3470_v63 = vmul.f32 %v4509_v62, %v4491_v32  ;;  %3845 = vmatpush.msra.mxu0 %v4331_v60 }
0x115f   :  { %4298 = vmatmul.msk.f32.vlgmr.msra.gmra.mxu1 %vm575_vm2, %v3469_v61 }
0x1167   :  { %4299 = vmatmul.msk.f32.gmra.mxu1 %vm575_vm2, %v3470_v63  ;;  %v4330_v63 = vld [vmem:[%s6045_s18 + $0xd8] sm:$0xff] }
0x1168   :  { %3846 = vmatpush.msra.mxu0 %v4330_v63 }
0x116a   :  { %3847 = vmatpush.msra.mxu0 %v4329_v1 }
0x11d0   :  { %v3496_v3 = vpop.f32.mrf.mxu3 }
0x11d1   :  { %v3583_v4 = vpop.f32.mrf.mxu2  ;;  %4302 = vmatmul.msk.f32.vlgmr.msra.gmra.mxu3 %vm418_vm1, %v3496_v3  ;;  %v4328_v3 = vld [vmem:[%s6045_s18 + $0xc8] sm:$0xff] }
0x11d2   :  { %4308 = vmatmul.msk.f32.vlgmr.msrb.gmra.mxu2 %vm418_vm1, %v3583_v4  ;;  %v3525_v5 = vpop.f32.mrf.mxu0  ;;  %3848 = vmatpush.msra.mxu0 %v4328_v3 }
0x11d3   :  { %4304 = vmatmul.msk.f32.vlgmr.msrb.gmra.mxu0 %vm418_vm1, %v3525_v5  ;;  %v4327_v5 = vld [vmem:[%s6045_s18 + $0xc0] sm:$0xff] }
0x11d4   :  { %3849 = vmatpush.msra.mxu0 %v4327_v5 }
0x11d9   :  { %v3586_v6 = vpop.f32.mrf.mxu2 }
0x11da   :  { %v3499_v7 = vpop.f32.mrf.mxu3  ;;  %4309 = vmatmul.msk.f32.gmra.mxu2 %vm418_vm1, %v3586_v6  ;;  %v3528_v8 = vpop.f32.mrf.mxu0 }
0x11db   :  { %4303 = vmatmul.msk.f32.gmra.mxu3 %vm418_vm1, %v3499_v7  ;;  %4305 = vmatmul.msk.f32.gmra.mxu0 %vm418_vm1, %v3528_v8  ;;  %v4326_v8 = vld [vmem:[%s6045_s18 + $0xb8] sm:$0xff] }
0x11dc   :  { %v3554_v9 = vpop.f32.mrf.mxu1  ;;  %3850 = vmatpush.msra.mxu0 %v4326_v8 }
0x11dd   :  { %4306 = vmatmul.msk.f32.vlgmr.msrb.gmra.mxu1 %vm418_vm1, %v3554_v9 }
0x11e4   :  { %v3557_v10 = vpop.f32.mrf.mxu1 }
0x11e5   :  { %4307 = vmatmul.msk.f32.gmra.mxu1 %vm418_vm1, %v3557_v10 }
0x1250   :  { %v3641_v11 = vpop.f32.mrf.mxu0 }
0x1251   :  { %v3706_v16 = vsel %vm135_vm0, %v3641_v11, 0.0  ;;  %v4358_v11 = vld [vmem:[%s6041_s14 + $0x1] ss:$0 sm:$0xff]  ;;  %s6079_s14 = sld [smem:[#allocation14_spill]] }
0x1254   :  { %v3612_v13 = vpop.f32.mrf.mxu3 }
0x1255   :  { %v3705_v14 = vsel %vm135_vm0, %v3612_v13, 0.0  ;;  %v3699_v15 = vpop.f32.mrf.mxu2  ;;  %v4325_v13 = vld [vmem:[%s6045_s18 + $0xb0] sm:$0xff] }
0x1256   :  { %v3707_v17 = vadd.f32 %v3706_v16, %v3705_v14  ;;  %v3710_v21 = vsel %vm135_vm0, %v3699_v15, 0.0  ;;  %v4359_v16 = vld [vmem:[%s6042_s15 + $0x1] ss:$0 sm:$0xff]  ;;  %3851 = vmatpush.msra.mxu0 %v4325_v13 }
0x1257   :  { %s3966_s24 = sshll.u32 %s6079_s14, 4  ;;  %s3967_s24 = int_to_ptr.hbm [resolvable:$true] %s3966_s24 }
0x1258   :  { %v3644_v23 = vpop.f32.mrf.mxu0 }
0x1259   :  { %v3713_v31 = vsel %vm135_vm0, %v3644_v23, 0.0 }
0x125a   :  { %v3670_v18 = vpop.f32.mrf.mxu1 }
0x125b   :  { %v3708_v19 = vsel %vm135_vm0, %v3670_v18, 0.0  ;;  %v4324_v18 = vld [vmem:[%s6045_s18 + $0xa8] sm:$0xff] }
0x125c   :  { %v3709_v20 = vadd.f32 %v3708_v19, %v3707_v17  ;;  %3852 = vmatpush.msra.mxu0 %v4324_v18 }
0x125d   :  { %v3702_v28 = vpop.f32.mrf.mxu2 }
0x125e   :  { %v3711_v24 = vadd.f32 %v3710_v21, %v3709_v20  ;;  %v3615_v12 = vpop.f32.mrf.mxu3  ;;  %v3717_v34 = vsel %vm135_vm0, %v3702_v28, 0.0  ;;  %v4323_v21 = vld [vmem:[%s6045_s18 + $0xa0] sm:$0xff] }
0x125f   :  { %v3712_v25 = vsel %vm135_vm0, %v3615_v12, 0.0  ;;  %v4322_v12 = vld [vmem:[%s6045_s18 + $0x98] sm:$0xff]  ;;  %3853 = vmatpush.msra.mxu0 %v4323_v21 }
0x1260   :  { %v3719_v26 = vadd.f32 %v3711_v24, %v5742_v35  ;;  %v3714_v27 = vadd.f32 %v3713_v31, %v3712_v25 }
0x1261   :  { %3854 = vmatpush.msra.mxu0 %v4322_v12 }
0x1262   :  { %v3673_v30 = vpop.f32.mrf.mxu1  ;;  %v3725_v22 = vsel %vm135_vm0, %v3719_v26, 0.0 }
0x1263   :  { %v3715_v32 = vsel %vm135_vm0, %v3673_v30, 0.0  ;;  %3726 = vadd.xlane.f32.xlu2 %v3725_v22  ;;  %v4321_v30 = vld [vmem:[%s6045_s18 + $0x90] sm:$0xff]  ;;  %v4320_v22 = vld [vmem:[%s6045_s18 + $0x88] sm:$0xff] }
0x1264   :  { %v3716_v33 = vadd.f32 %v3715_v32, %v3714_v27  ;;  %3855 = vmatpush.msra.mxu0 %v4321_v30  ;;  %v4319_v32 = vld [vmem:[%s6045_s18 + $0x80] sm:$0xff] }
0x1266   :  { %v3718_v37 = vadd.f32 %v3717_v34, %v3716_v33  ;;  %3856 = vmatpush.msra.mxu0 %v4320_v22  ;;  %v4360_v33 = vld [vmem:[%s6044_s17 + $0x1] ss:$0 sm:$0xff] }
0x1268   :  { %v3720_v36 = vadd.f32 %v3718_v37, %v5753_v44  ;;  %3857 = vmatpush.msra.mxu0 %v4319_v32 }
0x126a   :  { %v3728_v38 = vsel %vm135_vm0, %v3720_v36, 0.0 }
0x126b   :  { %3729 = vadd.xlane.f32.xlu0 %v3728_v38 }
0x12d6   :  { %v3727_v35 = vpop.xlane.xlu2 %3726 }
0x12d7   :  { %v3731_v39 = vmul.f32 %v3727_v35, %v4954_v29 }
0x12d9   :  { %v3733_v41 = vsub.f32 %v3719_v26, %v3731_v39 }
0x12db   :  { %v3735_v43 = vmul.f32 %v3733_v41, %v3733_v41 }
0x12dd   :  { %v3737_v40 = vsel %vm135_vm0, %v3735_v43, 0.0 }
0x12de   :  { %3738 = vadd.xlane.f32.xlu1 %v3737_v40  ;;  %v3730_v42 = vpop.xlane.xlu0 %3729 }
0x12df   :  { %v3732_v59 = vmul.f32 %v3730_v42, %v4954_v29 }
0x12e1   :  { %v5914_v45 = vsub.f32 %v3720_v36, %v3732_v59 }
0x12e3   :  { %v3736_v46 = vmul.f32 %v5914_v45, %v5914_v45 }
0x12e5   :  { %v3740_v44 = vsel %vm135_vm0, %v3736_v46, 0.0 }
0x12e6   :  { %3741 = vadd.xlane.f32.xlu2 %v3740_v44 }
0x1351   :  { %v3739_v52 = vpop.xlane.xlu1 %3738 }
0x1352   :  { %v3743_v53 = vmul.f32 %v3739_v52, %v4954_v29 }
0x1354   :  { %v3745_v54 = vadd.f32 1e-05, %v3743_v53 }
0x1356   :  { %4510 = vrsqrt.f32 %v3745_v54  ;;  %vm3753_vm2 = vweird.f32 %v3745_v54 }
0x1359   :  { %v3742_v58 = vpop.xlane.xlu2 %3741 }
0x135a   :  { %v3744_v47 = vmul.f32 %v3742_v58, %v4954_v29 }
0x135c   :  { %v4511_v61 = vpop.eup %4510  ;;  %v3746_v62 = vadd.f32 1e-05, %v3744_v47 }
0x135d   :  { %v3748_v0 = vmul.f32 %v4511_v61, %v3745_v54  ;;  %vm3754_vm1 = vweird.f32 %v4511_v61 }
0x135e   :  { %4512 = vrsqrt.f32 %v3746_v62  ;;  %vm3755_vm15 = vmor %vm3753_vm2, %vm3754_vm1  ;;  %vm3763_vm4 = vweird.f32 %v3746_v62 }
0x135f   :  { %v3749_v2 = vmul.f32 %v4511_v61, %v3748_v0 }
0x1361   :  { %v3750_v4 = vmul.f32 0.5, %v3749_v2 }
0x1363   :  { %v3751_v6 = vsub.f32 1.5, %v3750_v4 }
0x1364   :  { %v4513_v7 = vpop.eup %4512 }
0x1365   :  { %v3752_v9 = vmul.f32 %v4511_v61, %v3751_v6  ;;  %v3758_v10 = vmul.f32 %v4513_v7, %v3746_v62  ;;  %vm3764_vm3 = vweird.f32 %v4513_v7 }
0x1366   :  { %vm3765_vm5 = vmor %vm3763_vm4, %vm3764_vm3 }
0x1367   :  { %v3756_v14 = vsel %vm3755_vm15, %v4511_v61, %v3752_v9  ;;  %v3759_v15 = vmul.f32 %v4513_v7, %v3758_v10 }
0x1368   :  { %v3767_v17 = vmul.f32 %v3756_v14, %v3733_v41  ;;  %v4361_v41 = vld [vmem:[%s6046_s19 + $0x1] ss:$0 sm:$0xff]  ;;  %s6078_s19 = sld [smem:[#allocation13_spill]] }
0x1369   :  { %v3760_v19 = vmul.f32 0.5, %v3759_v15  ;;  %v4362_v14 = vld [vmem:[%s6047_s20 + $0x1] ss:$0 sm:$0xff]  ;;  %s4551_s20 = smov [#allocation2]  }
0x136a   :  { %v3772_v20 = vmul.f32 %v4358_v11, %v3767_v17 }
0x136b   :  { %v3761_v23 = vsub.f32 1.5, %v3760_v19 }
0x136c   :  { %v3777_v24 = vadd.f32 %v4359_v16, %v3772_v20 }
0x136d   :  { %v3762_v25 = vmul.f32 %v4513_v7, %v3761_v23 }
0x136e   :  { %4317 = vmatmul.msk.f32.vlgmr.msrb.gmra.mxu3 %vm135_vm0, %v3777_v24  ;;  %v3928_v47 = vld [vmem:[%s6078_s19 + $0x18] sm:$0xff]  ;;  %v3927_v60 = vld [vmem:[%s6078_s19 + $0x10] sm:$0xff]  ;;  %v3926_v61 = vld [vmem:[%s6078_s19 + $0x8] sm:$0xff] }
0x136f   :  { %v3766_v26 = vsel %vm3765_vm5, %v4513_v7, %v3762_v25  ;;  %3947 = vmatpush.msra.mxu1 %v3928_v47  ;;  %v3925_v62 = vld [vmem:[%s6078_s19] sm:$0xff] }
0x1370   :  { %v3768_v31 = vmul.f32 %v3766_v26, %v5914_v45 }
0x1371   :  { %3948 = vmatpush.msra.mxu1 %v3927_v60 }
0x1372   :  { %v3773_v27 = vmul.f32 %v4358_v11, %v3768_v31 }
0x1373   :  { %3949 = vmatpush.msra.mxu1 %v3926_v61 }
0x1374   :  { %v3778_v28 = vadd.f32 %v4359_v16, %v3773_v27 }
0x1375   :  { %3950 = vmatpush.msra.mxu1 %v3925_v62 }
0x1376   :  { %4318 = vmatmul.msk.f32.gmra.mxu3 %vm135_vm0, %v3778_v28 }
0x13f1   :  { %v3812_v34 = vpop.f32.mrf.mxu3 }
0x13f2   :  { %v3813_v37 = vadd.f32 %v4360_v33, %v3812_v34 }
0x13f4   :  { %v3818_v36 = vmax.f32 %v3813_v37, 0.0 }
0x13f6   :  { %3858 = vmatmul.f32.vlgmr.msra.gmra.mxu0 %v3818_v36 }
0x13f9   :  { %v3815_v38 = vpop.f32.mrf.mxu3 }
0x13fa   :  { %v3816_v35 = vadd.f32 %v4360_v33, %v3815_v38 }
0x13fc   :  { %v3819_v39 = vmax.f32 %v3816_v35, 0.0 }
0x13fe   :  { %3861 = vmatmul.f32.gmra.mxu0 %v3819_v39 }
0x1473   :  { %v3859_v43 = vpop.f32.mrf.mxu0 }
0x1474   :  { %v3860_v40 = vadd.f32 %v4361_v41, %v3859_v43 }
0x1476   :  { %v3865_v42 = vadd.f32 %v3860_v40, %v3777_v24 }
0x1478   :  { %v3871_v59 = vsel %vm135_vm0, %v3865_v42, 0.0 }
0x1479   :  { %3872 = vadd.xlane.f32.xlu0 %v3871_v59 }
0x147b   :  { %v3862_v45 = vpop.f32.mrf.mxu0 }
0x147c   :  { %v3863_v46 = vadd.f32 %v4361_v41, %v3862_v45 }
0x147e   :  { %v3866_v44 = vadd.f32 %v3863_v46, %v3778_v28 }
0x1480   :  { %v3874_v48 = vsel %vm135_vm0, %v3866_v44, 0.0 }
0x1481   :  { %3875 = vadd.xlane.f32.xlu1 %v3874_v48 }
0x14ec   :  { %v3873_v49 = vpop.xlane.xlu0 %3872 }
0x14ed   :  { %v3877_v50 = vmul.f32 %v3873_v49, %v4954_v29 }
0x14ef   :  { %v3879_v51 = vsub.f32 %v3865_v42, %v3877_v50 }
0x14f1   :  { %v3881_v52 = vmul.f32 %v3879_v51, %v3879_v51 }
0x14f3   :  { %v3883_v53 = vsel %vm135_vm0, %v3881_v52, 0.0 }
0x14f4   :  { %v3876_v54 = vpop.xlane.xlu1 %3875  ;;  %3884 = vadd.xlane.f32.xlu2 %v3883_v53 }
0x14f5   :  { %v3878_v55 = vmul.f32 %v3876_v54, %v4954_v29 }
0x14f7   :  { %v3880_v56 = vsub.f32 %v3866_v44, %v3878_v55 }
0x14f9   :  { %v3882_v57 = vmul.f32 %v3880_v56, %v3880_v56 }
0x14fb   :  { %v3886_v58 = vsel %vm135_vm0, %v3882_v57, 0.0 }
0x14fc   :  { %3887 = vadd.xlane.f32.xlu0 %v3886_v58 }
0x1567   :  { %v3885_v63 = vpop.xlane.xlu2 %3884 }
0x1568   :  { %v3889_v0 = vmul.f32 %v3885_v63, %v4954_v29 }
0x156a   :  { %v3891_v1 = vadd.f32 1e-05, %v3889_v0 }
0x156c   :  { %4514 = vrsqrt.f32 %v3891_v1  ;;  %vm3899_vm7 = vweird.f32 %v3891_v1 }
0x156f   :  { %v3888_v2 = vpop.xlane.xlu0 %3887 }
0x1570   :  { %v3890_v3 = vmul.f32 %v3888_v2, %v4954_v29  ;;  %v4363_v29 = vld [vmem:[%s6048_s21 + $0x1] ss:$0 sm:$0xff]  ;;  %s3964_s21 = sshll.u32 %s4551_s20, 4  ;;  %s3965_s21 = int_to_ptr.vmem [resolvable:$true] %s3964_s21 }
0x1572   :  { %v4515_v4 = vpop.eup %4514  ;;  %v3892_v5 = vadd.f32 1e-05, %v3890_v3 }
0x1573   :  { %v3894_v6 = vmul.f32 %v4515_v4, %v3891_v1  ;;  %vm3900_vm6 = vweird.f32 %v4515_v4 }
0x1574   :  { %4516 = vrsqrt.f32 %v3892_v5  ;;  %vm3901_vm8 = vmor %vm3899_vm7, %vm3900_vm6  ;;  %vm3909_vm10 = vweird.f32 %v3892_v5 }
0x1575   :  { %v3895_v7 = vmul.f32 %v4515_v4, %v3894_v6 }
0x1577   :  { %v3896_v8 = vmul.f32 0.5, %v3895_v7 }
0x1579   :  { %v3897_v9 = vsub.f32 1.5, %v3896_v8 }
0x157a   :  { %v4517_v10 = vpop.eup %4516 }
0x157b   :  { %v3898_v11 = vmul.f32 %v4515_v4, %v3897_v9  ;;  %v3904_v13 = vmul.f32 %v4517_v10, %v3892_v5  ;;  %vm3910_vm9 = vweird.f32 %v4517_v10 }
0x157c   :  { %vm3911_vm11 = vmor %vm3909_vm10, %vm3910_vm9 }
0x157d   :  { %v3902_v15 = vsel %vm3901_vm8, %v4515_v4, %v3898_v11  ;;  %v3905_v16 = vmul.f32 %v4517_v10, %v3904_v13 }
0x157e   :  { %v3913_v17 = vmul.f32 %v3902_v15, %v3879_v51 }
0x157f   :  { %v3906_v18 = vmul.f32 0.5, %v3905_v16 }
0x1580   :  { %v3918_v19 = vmul.f32 %v4362_v14, %v3913_v17 }
0x1581   :  { %v3907_v20 = vsub.f32 1.5, %v3906_v18 }
0x1582   :  { %v3923_v21 = vadd.f32 %v4363_v29, %v3918_v19 }
0x1583   :  { %v3908_v23 = vmul.f32 %v4517_v10, %v3907_v20 }
0x1584   :  { %4338 = vmatmul.msk.f32.vlgmr.msra.gmra.mxu1 %vm135_vm0, %v3923_v21 }
0x1585   :  { %v3912_v24 = vsel %vm3911_vm11, %v4517_v10, %v3908_v23 }
0x1586   :  { %v3914_v12 = vmul.f32 %v3912_v24, %v3880_v56 }
0x1588   :  { %v3919_v25 = vmul.f32 %v4362_v14, %v3914_v12 }
0x158a   :  { %v3924_v26 = vadd.f32 %v4363_v29, %v3919_v25 }
0x158c   :  { %4339 = vmatmul.msk.f32.gmra.mxu1 %vm135_vm0, %v3924_v26 }
0x1601   :  { %v3952_v31 = vpop.f32.mrf.mxu1 }
0x1602   :  { %3958 = vst [vmem:[#allocation2] sm:$0xff] %v3952_v31 }
0x1609   :  { %v3955_v27 = vpop.f32.mrf.mxu1 }
0x160a   :  { %3959 = vst [vmem:[#allocation2 + $0x8] sm:$0xff] %v3955_v27 }
0x160b   :  { %3972 = dma.vmem_to_hbm [thread:$0]  %s3965_s21, 256, %s3967_s24, [#allocation3], %s4552_s12, %s4552_s12, %s4553_s29  }
0x160c   :  { %4548 = dma.done.wait [#allocation3], 256  }
0x160d   :  { %4549 = vsyncadd [#allocation3], 4294967040 }
0x160e   :  { %3977 = vsyncpa [#allocation3], 1 }

</bundles_post_ra>
